<compile_context>
chip_gen: v7x
topology: tpu7x:2x2x1
jax: 0.10.0
libtpu: 0.0.40
codegen_flags: <defaults>
</compile_context>

<pallas_src>
import jax
import jax.numpy as jnp
from jax import lax
from jax.experimental import pallas as pl
from jax.experimental.pallas import tpu as pltpu

# ----------------------------------------------------------------------------
# Small-config hyperparameters (scaled down from EMBED_DIM=768 / NUM_HEAD=12 /
# MAX_SEQUENCE=128 of the reference module so the synthetic run is fast).
# ----------------------------------------------------------------------------
EMBED_DIM = 64
NUM_HEAD = 4
HEAD_DIM = EMBED_DIM // NUM_HEAD        # 16
NUM_KV_HEAD = 2
REP = NUM_HEAD // NUM_KV_HEAD           # 2
MLP_SCALE = 4
HIDDEN = EMBED_DIM * MLP_SCALE          # 256
NUM_LAYER = 2
MAX_SEQUENCE = 8
VOCAB_SIZE = 32
VOCAB_PAD = 128                         # lane-dense output width (sliced in XLA)
EPS_NORM = 1e-5
ROPE_BASE = 10000.0
PATCH = 4
IMG_SIZE = 32
IMG_CHANNELS = 3
BATCH = 2
NUM_PATCH = (IMG_SIZE // PATCH) ** 2    # 64


# ----------------------------------------------------------------------------
# In-kernel helpers
# ----------------------------------------------------------------------------
def _rms(x, w):
    # x: (M, E) f32, w: (1, E) f32 — keep norm math in f32 (v5e VPU/EUP).
    ms = jnp.mean(x * x, axis=-1, keepdims=True)
    return x * lax.rsqrt(ms + EPS_NORM) * w


def _rope_halves(xh, cos, sin):
    # xh: (M, D) f32 in de-interleaved [even | odd] per-head layout.
    # cos/sin: (M, D//2) f32.  The pair-swap is realized as a half-width lane
    # concat (XLU), not a second projection matmul.
    half = HEAD_DIM // 2
    e, o = xh[:, :half], xh[:, half:]
    return jnp.concatenate([e * cos - o * sin, o * cos + e * sin], axis=-1)


# ----------------------------------------------------------------------------
# Kernel 1: full encoder (feature extractor + NUM_LAYER layers + final norm)
# ----------------------------------------------------------------------------
def _encoder_kernel(patches_ref, patch_w_ref, patch_b_ref,
                    head_w_ref, head_b_ref,
                    sa_norm_ref, wvo_ref,
                    mlp_norm_ref, wg_ref, wu_ref, wd_ref,
                    enc_norm_ref, o_ref):
    f32, bf16 = jnp.float32, jnp.bfloat16
    # Simplified swin_t(num_classes=EMBED_DIM): patch-embed matmul -> global
    # average pool (VPU/XLU mean, not a matmul) -> linear head.
    # TODO(synk): Swin-T shifted-window attention stages / hierarchical
    # LayerNorms are not reimplemented here.
    patches = patches_ref[...]                                     # bf16 (B*P, 48)
    emb = jnp.dot(patches, patch_w_ref[...],
                  preferred_element_type=f32) + patch_b_ref[...]   # (B*P, E) f32
    pooled = jnp.mean(emb.reshape(BATCH, NUM_PATCH, EMBED_DIM), axis=1)  # (B, E)
    x = jnp.dot(pooled.astype(bf16), head_w_ref[...],
                preferred_element_type=f32) + head_b_ref[...]      # (B, E) f32

    for l in range(NUM_LAYER):
        # Self-attention over a length-1 sequence: softmax over 1 key == 1, so
        # attn_out == h @ (Wv_rep @ Wo) — folded at init into a single (E,E).
        h = _rms(x, sa_norm_ref[l]).astype(bf16)
        x = x + jnp.dot(h, wvo_ref[l], preferred_element_type=f32)
        # SwiGLU MLP.
        h2 = _rms(x, mlp_norm_ref[l]).astype(bf16)
        gg = jnp.dot(h2, wg_ref[l], preferred_element_type=f32)
        uu = jnp.dot(h2, wu_ref[l], preferred_element_type=f32)
        act = (gg * jax.nn.sigmoid(gg)) * uu                       # f32 EUP/VPU
        x = x + jnp.dot(act.astype(bf16), wd_ref[l],
                        preferred_element_type=f32)

    o_ref[...] = _rms(x, enc_norm_ref[...]).astype(bf16)           # (B, E) bf16


# ----------------------------------------------------------------------------
# Kernel 2: full decoder stack (all layers + final norm + vocab projection).
# Cross-attention per layer is the precomputed linear map enc @ W_cross[l].
# ----------------------------------------------------------------------------
def _decoder_kernel(x_ref, enc_ref, mask_ref, cos_ref, sin_ref,
                    sa_norm_ref, wq_ref, wk_ref, wv_ref, wo_ref, wcross_ref,
                    mlp_norm_ref, wg_ref, wu_ref, wd_ref,
                    dec_norm_ref, w_out_ref, o_ref):
    f32, bf16 = jnp.float32, jnp.bfloat16
    B, S, H, KVH, D, E = BATCH, MAX_SEQUENCE, NUM_HEAD, NUM_KV_HEAD, HEAD_DIM, EMBED_DIM
    scale = 1.0 / (float(D) ** 0.5)

    x = x_ref[...].astype(f32)                                     # (B*S, E)
    enc = enc_ref[...]                                             # (B, E) bf16
    mask3 = mask_ref[...]                                          # (1, S, S) f32, hoisted
    cos = cos_ref[...]                                             # (B*S, D/2) f32
    sin = sin_ref[...]                                             # (B*S, D/2) f32

    # TODO(synk): at reference head/layer counts switch these unrolled Python
    # loops to lax.fori_loop (v5e: 64 vregs, static loops don't bound live ranges).
    for l in range(NUM_LAYER):
        # ---- causal GQA self-attention: ONE Q/K/V projection per layer -----
        hb = _rms(x, sa_norm_ref[l]).astype(bf16)
        q_full = jnp.dot(hb, wq_ref[l], preferred_element_type=f32)   # (B*S, H*D)
        k_full = jnp.dot(hb, wk_ref[l], preferred_element_type=f32)   # (B*S, KVH*D)
        v_full = jnp.dot(hb, wv_ref[l], preferred_element_type=f32)   # (B*S, KVH*D)

        ks, vs = [], []
        for g in range(KVH):
            k_rot = _rope_halves(k_full[:, g * D:(g + 1) * D], cos, sin)
            ks.append(k_rot.reshape(B, S, D).astype(bf16))
            vs.append(v_full[:, g * D:(g + 1) * D].reshape(B, S, D).astype(bf16))

        heads_out = []
        for hh in range(H):
            g = hh // REP                                          # GQA: no repeat
            q_rot = _rope_halves(q_full[:, hh * D:(hh + 1) * D], cos, sin) * scale
            q3 = q_rot.reshape(B, S, D).astype(bf16)
            s = jnp.einsum('bqd,bkd->bqk', q3, ks[g],
                           preferred_element_type=f32)             # (B,S,S) f32
            s = s + mask3                                          # causal, f32
            m = jnp.max(s, axis=-1, keepdims=True)
            p = jnp.exp(s - m)
            denom = jnp.sum(p, axis=-1, keepdims=True)
            p = (p * pl.reciprocal(denom, approx=True)).astype(bf16)
            o = jnp.einsum('bqk,bkd->bqd', p, vs[g],
                           preferred_element_type=f32)             # (B,S,D)
            heads_out.append(o.reshape(B * S, D))

        # ONE output projection on the lane-dense (B*S, H*D) slab.
        attn_cat = jnp.concatenate(heads_out, axis=-1).astype(bf16)
        attn = jnp.dot(attn_cat, wo_ref[l], preferred_element_type=f32)

        # Residual + precomputed cross-attention contribution (enc @ W_cross[l]).
        cross = jnp.dot(enc, wcross_ref[l], preferred_element_type=f32)   # (B, E)
        xb = (x.reshape(B, S, E) + attn.reshape(B, S, E) + cross[:, None, :])
        x = xb.reshape(B * S, E)

        # ---- SwiGLU MLP ----------------------------------------------------
        h2b = _rms(x, mlp_norm_ref[l]).astype(bf16)
        gg = jnp.dot(h2b, wg_ref[l], preferred_element_type=f32)
        uu = jnp.dot(h2b, wu_ref[l], preferred_element_type=f32)
        act = (gg * jax.nn.sigmoid(gg)) * uu                       # f32
        x = x + jnp.dot(act.astype(bf16), wd_ref[l],
                        preferred_element_type=f32)

    # ---- final RMSNorm + lane-dense (padded-to-128) vocab projection -------
    xf = _rms(x, dec_norm_ref[...]).astype(bf16)
    o_ref[...] = jnp.dot(xf, w_out_ref[...], preferred_element_type=f32)


# ----------------------------------------------------------------------------
# pallas_call wrapper: whole-array blocks (everything here fits VMEM easily)
# ----------------------------------------------------------------------------
def _call(kernel, out_shape, args):
    in_specs = [pl.BlockSpec(a.shape, (lambda i, n=a.ndim: (0,) * n))
                for a in args]
    out_specs = pl.BlockSpec(out_shape.shape,
                             (lambda i, n=len(out_shape.shape): (0,) * n))
    return pl.pallas_call(
        kernel,
        out_shape=out_shape,
        grid=(1,),
        in_specs=in_specs,
        out_specs=out_specs,
        compiler_params=pltpu.CompilerParams(
            dimension_semantics=("arbitrary",)),
    )(*args)


# ----------------------------------------------------------------------------
# JAX-side glue
# ----------------------------------------------------------------------------
def _im2col(image_nchw):
    x = jnp.transpose(image_nchw, (0, 2, 3, 1))                    # NHWC
    b, h, w, c = x.shape
    gh, gw = h // PATCH, w // PATCH
    x = x.reshape(b, gh, PATCH, gw, PATCH, c)
    x = x.transpose(0, 1, 3, 2, 4, 5).reshape(b * gh * gw, PATCH * PATCH * c)
    return x


@jax.jit
def forward(params, image, caption):
    p = params
    patches = _im2col(image).astype(jnp.bfloat16)                  # bf16 DMA

    enc_feat = _call(
        _encoder_kernel,
        jax.ShapeDtypeStruct((BATCH, EMBED_DIM), jnp.bfloat16),
        (patches, p['patch_w'], p['patch_b'], p['head_w'], p['head_b'],
         p['enc_sa_norm'], p['enc_wvo'],
         p['enc_mlp_norm'], p['enc_wg'], p['enc_wu'], p['enc_wd'],
         p['enc_norm']))

    # Token embedding gather stays an XLA op (no clean Pallas equivalent needed).
    x = jnp.take(p['tok_emb'], caption, axis=0)                    # bf16
    x = x.reshape(BATCH * MAX_SEQUENCE, EMBED_DIM)

    logits_pad = _call(
        _decoder_kernel,
        jax.ShapeDtypeStruct((BATCH * MAX_SEQUENCE, VOCAB_PAD), jnp.float32),
        (x, enc_feat, p['mask'], p['rope_cos'], p['rope_sin'],
         p['dec_sa_norm'], p['dec_wq'], p['dec_wk'], p['dec_wv'], p['dec_wo'],
         p['dec_cross'], p['dec_mlp_norm'], p['dec_wg'], p['dec_wu'],
         p['dec_wd'], p['dec_norm'], p['out_w']))

    logits = logits_pad[:, :VOCAB_SIZE]
    return logits.reshape(BATCH, MAX_SEQUENCE, VOCAB_SIZE)


# ----------------------------------------------------------------------------
# Deterministic parameter init (fused per-layer layouts, bf16 for MXU)
# ----------------------------------------------------------------------------
def _rope_tables(seq, dim, base=ROPE_BASE):
    # torchtune interleaved-pair RoPE, expressed for the de-interleaved
    # [even | odd] head layout: cos/sin indexed by pair j, shape (seq, dim//2).
    half = dim // 2
    theta = 1.0 / (base ** (jnp.arange(half, dtype=jnp.float32) * 2.0 / dim))
    ang = jnp.arange(seq, dtype=jnp.float32)[:, None] * theta[None, :]
    return jnp.cos(ang), jnp.sin(ang)


def init_params(key):
    f32, bf16 = jnp.float32, jnp.bfloat16
    keys = iter(jax.random.split(key, 128))
    nk = lambda: next(keys)
    dense = lambda shape: 0.02 * jax.random.normal(nk(), shape, f32)
    kvd = NUM_KV_HEAD * HEAD_DIM

    def deinterleave(w, nheads):
        # (E, nheads*D) with interleaved RoPE pairs -> [even | odd] per head.
        e_in = w.shape[0]
        w = w.reshape(e_in, nheads, HEAD_DIM // 2, 2)
        w = jnp.concatenate([w[..., 0], w[..., 1]], axis=-1)       # (E, nh, D)
        return w.reshape(e_in, nheads * HEAD_DIM)

    def expand_kv(wv):
        # (E, KVH*D) -> (E, H*D): repeat each KV group REP times (GQA).
        w3 = wv.reshape(EMBED_DIM, NUM_KV_HEAD, HEAD_DIM)
        return jnp.repeat(w3, REP, axis=1).reshape(EMBED_DIM, EMBED_DIM)

    # Encoder: seq-len-1 self-attention is folded to W_vo = Wv_rep @ Wo at init
    # (q/k projections, RoPE@pos0 and softmax are provably dead at inference).
    enc_wvo, enc_wg, enc_wu, enc_wd = [], [], [], []
    for _ in range(NUM_LAYER):
        wv = dense((EMBED_DIM, kvd))
        wo = dense((EMBED_DIM, EMBED_DIM))
        enc_wvo.append((expand_kv(wv) @ wo).astype(bf16))
        enc_wg.append(dense((EMBED_DIM, HIDDEN)).astype(bf16))
        enc_wu.append(dense((EMBED_DIM, HIDDEN)).astype(bf16))
        enc_wd.append(dense((HIDDEN, EMBED_DIM)).astype(bf16))

    # Decoder: fused head-axis layouts; cross-attention folded to W_cross.
    # TODO(synk): TransformerDecoderLayer source not given; attn2 assumed to be
    # cross-attention (Q from decoder hidden, K/V from the encoder feature).
    dec_wq, dec_wk, dec_wv, dec_wo, dec_cross = [], [], [], [], []
    dec_wg, dec_wu, dec_wd = [], [], []
    for _ in range(NUM_LAYER):
        dec_wq.append(deinterleave(dense((EMBED_DIM, EMBED_DIM)),
                                   NUM_HEAD).astype(bf16))          # (E, H*D)
        dec_wk.append(deinterleave(dense((EMBED_DIM, kvd)),
                                   NUM_KV_HEAD).astype(bf16))        # (E, KVH*D)
        dec_wv.append(dense((EMBED_DIM, kvd)).astype(bf16))          # (E, KVH*D)
        dec_wo.append(dense((EMBED_DIM, EMBED_DIM)).astype(bf16))    # (H*D, E)
        wv2 = dense((EMBED_DIM, kvd))
        wo2 = dense((EMBED_DIM, EMBED_DIM))
        dec_cross.append((expand_kv(wv2) @ wo2).astype(bf16))        # (E, E)
        dec_wg.append(dense((EMBED_DIM, HIDDEN)).astype(bf16))
        dec_wu.append(dense((EMBED_DIM, HIDDEN)).astype(bf16))
        dec_wd.append(dense((HIDDEN, EMBED_DIM)).astype(bf16))

    ones_norm = jnp.ones((NUM_LAYER, 1, EMBED_DIM), f32)

    cos, sin = _rope_tables(MAX_SEQUENCE, HEAD_DIM)                 # (S, D/2)
    row = jnp.arange(MAX_SEQUENCE)[:, None]
    col = jnp.arange(MAX_SEQUENCE)[None, :]
    mask = jnp.where(col <= row, 0.0, -1e30).astype(f32)[None]      # (1, S, S)

    out_w = jnp.zeros((EMBED_DIM, VOCAB_PAD), f32)
    out_w = out_w.at[:, :VOCAB_SIZE].set(dense((EMBED_DIM, VOCAB_SIZE)))

    return dict(
        # feature extractor
        patch_w=dense((IMG_CHANNELS * PATCH * PATCH, EMBED_DIM)).astype(bf16),
        patch_b=jnp.zeros((1, EMBED_DIM), f32),
        head_w=dense((EMBED_DIM, EMBED_DIM)).astype(bf16),
        head_b=jnp.zeros((1, EMBED_DIM), f32),
        # encoder stack
        enc_sa_norm=ones_norm,
        enc_wvo=jnp.stack(enc_wvo),
        enc_mlp_norm=ones_norm,
        enc_wg=jnp.stack(enc_wg), enc_wu=jnp.stack(enc_wu), enc_wd=jnp.stack(enc_wd),
        enc_norm=jnp.ones((1, EMBED_DIM), f32),
        # decoder stack
        tok_emb=dense((VOCAB_SIZE, EMBED_DIM)).astype(bf16),
        dec_sa_norm=ones_norm,
        dec_wq=jnp.stack(dec_wq), dec_wk=jnp.stack(dec_wk),
        dec_wv=jnp.stack(dec_wv), dec_wo=jnp.stack(dec_wo),
        dec_cross=jnp.stack(dec_cross),
        dec_mlp_norm=ones_norm,
        dec_wg=jnp.stack(dec_wg), dec_wu=jnp.stack(dec_wu), dec_wd=jnp.stack(dec_wd),
        dec_norm=jnp.ones((1, EMBED_DIM), f32),
        out_w=out_w.astype(bf16),
        # constants
        rope_cos=jnp.tile(cos, (BATCH, 1)),                         # (B*S, D/2)
        rope_sin=jnp.tile(sin, (BATCH, 1)),
        mask=mask,
    )


if __name__ == "__main__":
    key = jax.random.PRNGKey(0)
    kp, ki, kc = jax.random.split(key, 3)
    params = init_params(kp)
    image = jax.random.normal(ki, (BATCH, IMG_CHANNELS, IMG_SIZE, IMG_SIZE),
                              jnp.float32)                          # NCHW input
    caption = jax.random.randint(kc, (BATCH, MAX_SEQUENCE), 0, VOCAB_SIZE,
                                 dtype=jnp.int32)

    logits = forward(params, image, caption)
    jax.block_until_ready(logits)
    assert logits.shape == (BATCH, MAX_SEQUENCE, VOCAB_SIZE)
    assert bool(jnp.all(jnp.isfinite(logits)))
    print("KERNEL_OK")
</pallas_src>

<mosaic_0001>
module attributes {stable_mosaic.version = 11 : i64} {
  func.func @_encoder_kernel(%arg0: i32, %arg1: memref<128x48xbf16, #tpu.memory_space<vmem>>, %arg2: memref<48x64xbf16, #tpu.memory_space<vmem>>, %arg3: memref<1x64xf32, #tpu.memory_space<vmem>>, %arg4: memref<64x64xbf16, #tpu.memory_space<vmem>>, %arg5: memref<1x64xf32, #tpu.memory_space<vmem>>, %arg6: memref<2x1x64xf32, #tpu.memory_space<vmem>>, %arg7: memref<2x64x64xbf16, #tpu.memory_space<vmem>>, %arg8: memref<2x1x64xf32, #tpu.memory_space<vmem>>, %arg9: memref<2x64x256xbf16, #tpu.memory_space<vmem>>, %arg10: memref<2x64x256xbf16, #tpu.memory_space<vmem>>, %arg11: memref<2x256x64xbf16, #tpu.memory_space<vmem>>, %arg12: memref<1x64xf32, #tpu.memory_space<vmem>>, %arg13: memref<2x64xbf16, #tpu.memory_space<vmem>>) attributes {dimension_semantics = [#tpu.dimension_semantics<arbitrary>], iteration_bounds = array<i64: 1>, scalar_prefetch = 0 : i64, scratch_operands = 0 : i64, tpu.core_type = #tpu.core_type<tc>, window_params = [{pipeline_mode = #tpu.pipeline_mode<synchronous>, transform_indices = @transform_0, window_bounds = array<i64: 128, 48>}, {pipeline_mode = #tpu.pipeline_mode<synchronous>, transform_indices = @transform_1, window_bounds = array<i64: 48, 64>}, {pipeline_mode = #tpu.pipeline_mode<synchronous>, transform_indices = @transform_2, window_bounds = array<i64: 1, 64>}, {pipeline_mode = #tpu.pipeline_mode<synchronous>, transform_indices = @transform_3, window_bounds = array<i64: 64, 64>}, {pipeline_mode = #tpu.pipeline_mode<synchronous>, transform_indices = @transform_4, window_bounds = array<i64: 1, 64>}, {pipeline_mode = #tpu.pipeline_mode<synchronous>, transform_indices = @transform_5, window_bounds = array<i64: 2, 1, 64>}, {pipeline_mode = #tpu.pipeline_mode<synchronous>, transform_indices = @transform_6, window_bounds = array<i64: 2, 64, 64>}, {pipeline_mode = #tpu.pipeline_mode<synchronous>, transform_indices = @transform_7, window_bounds = array<i64: 2, 1, 64>}, {pipeline_mode = #tpu.pipeline_mode<synchronous>, transform_indices = @transform_8, window_bounds = array<i64: 2, 64, 256>}, {pipeline_mode = #tpu.pipeline_mode<synchronous>, transform_indices = @transform_9, window_bounds = array<i64: 2, 64, 256>}, {pipeline_mode = #tpu.pipeline_mode<synchronous>, transform_indices = @transform_10, window_bounds = array<i64: 2, 256, 64>}, {pipeline_mode = #tpu.pipeline_mode<synchronous>, transform_indices = @transform_11, window_bounds = array<i64: 1, 64>}, {pipeline_mode = #tpu.pipeline_mode<synchronous>, transform_indices = @transform_12, window_bounds = array<i64: 2, 64>}]} {
    %c0 = arith.constant 0 : index
    %c0_0 = arith.constant 0 : index
    %0 = vector.load %arg1[%c0, %c0_0] : memref<128x48xbf16, #tpu.memory_space<vmem>>, vector<128x48xbf16>
    %c0_1 = arith.constant 0 : index
    %c0_2 = arith.constant 0 : index
    %1 = vector.load %arg2[%c0_1, %c0_2] : memref<48x64xbf16, #tpu.memory_space<vmem>>, vector<48x64xbf16>
    %cst = arith.constant dense<0.000000e+00> : vector<128x64xf32>
    %2 = tpu.matmul %0, %1, %cst {dimension_numbers = #tpu.dot_dimension_numbers<[1], [0], [0], [1], [0, 0, 1, 1], [], []>} : vector<128x48xbf16>, vector<48x64xbf16>, vector<128x64xf32> -> vector<128x64xf32>
    %c0_3 = arith.constant 0 : index
    %c0_4 = arith.constant 0 : index
    %3 = vector.load %arg3[%c0_3, %c0_4] : memref<1x64xf32, #tpu.memory_space<vmem>>, vector<1x64xf32>
    %4 = vector.broadcast %3 : vector<1x64xf32> to vector<128x64xf32>
    %5 = arith.addf %2, %4 : vector<128x64xf32>
    %6 = vector.shape_cast %5 : vector<128x64xf32> to vector<2x64x64xf32>
    %cst_5 = arith.constant dense<0.000000e+00> : vector<2x64xf32>
    %7 = vector.multi_reduction <add>, %6, %cst_5 [1] : vector<2x64x64xf32> to vector<2x64xf32>
    %cst_6 = arith.constant 6.400000e+01 : f32
    %8 = vector.broadcast %cst_6 : f32 to vector<2x64xf32>
    %9 = arith.divf %7, %8 : vector<2x64xf32>
    %10 = arith.truncf %9 : vector<2x64xf32> to vector<2x64xbf16>
    %c0_7 = arith.constant 0 : index
    %c0_8 = arith.constant 0 : index
    %11 = vector.load %arg4[%c0_7, %c0_8] : memref<64x64xbf16, #tpu.memory_space<vmem>>, vector<64x64xbf16>
    %cst_9 = arith.constant dense<0.000000e+00> : vector<2x64xf32>
    %12 = tpu.matmul %10, %11, %cst_9 {dimension_numbers = #tpu.dot_dimension_numbers<[1], [0], [0], [1], [0, 0, 1, 1], [], []>} : vector<2x64xbf16>, vector<64x64xbf16>, vector<2x64xf32> -> vector<2x64xf32>
    %c0_10 = arith.constant 0 : index
    %c0_11 = arith.constant 0 : index
    %13 = vector.load %arg5[%c0_10, %c0_11] : memref<1x64xf32, #tpu.memory_space<vmem>>, vector<1x64xf32>
    %14 = vector.broadcast %13 : vector<1x64xf32> to vector<2x64xf32>
    %15 = arith.addf %12, %14 : vector<2x64xf32>
    %c0_12 = arith.constant 0 : index
    %c0_13 = arith.constant 0 : index
    %c0_14 = arith.constant 0 : index
    %16 = vector.load %arg6[%c0_12, %c0_13, %c0_14] : memref<2x1x64xf32, #tpu.memory_space<vmem>>, vector<1x1x64xf32>
    %17 = vector.shape_cast %16 : vector<1x1x64xf32> to vector<1x64xf32>
    %18 = arith.mulf %15, %15 : vector<2x64xf32>
    %cst_15 = arith.constant dense<0.000000e+00> : vector<2xf32>
    %19 = vector.multi_reduction <add>, %18, %cst_15 [1] : vector<2x64xf32> to vector<2xf32>
    %20 = vector.shape_cast %19 : vector<2xf32> to vector<2x1xf32>
    %cst_16 = arith.constant 6.400000e+01 : f32
    %21 = vector.broadcast %cst_16 : f32 to vector<2x1xf32>
    %22 = arith.divf %20, %21 : vector<2x1xf32>
    %cst_17 = arith.constant 9.99999974E-6 : f32
    %23 = vector.broadcast %cst_17 : f32 to vector<2x1xf32>
    %24 = arith.addf %22, %23 : vector<2x1xf32>
    %25 = math.rsqrt %24 : vector<2x1xf32>
    %26 = vector.broadcast %25 : vector<2x1xf32> to vector<2x64xf32>
    %27 = arith.mulf %15, %26 : vector<2x64xf32>
    %28 = vector.broadcast %17 : vector<1x64xf32> to vector<2x64xf32>
    %29 = arith.mulf %27, %28 : vector<2x64xf32>
    %30 = arith.truncf %29 : vector<2x64xf32> to vector<2x64xbf16>
    %c0_18 = arith.constant 0 : index
    %c0_19 = arith.constant 0 : index
    %c0_20 = arith.constant 0 : index
    %31 = vector.load %arg7[%c0_18, %c0_19, %c0_20] : memref<2x64x64xbf16, #tpu.memory_space<vmem>>, vector<1x64x64xbf16>
    %32 = vector.shape_cast %31 : vector<1x64x64xbf16> to vector<64x64xbf16>
    %cst_21 = arith.constant dense<0.000000e+00> : vector<2x64xf32>
    %33 = tpu.matmul %30, %32, %cst_21 {dimension_numbers = #tpu.dot_dimension_numbers<[1], [0], [0], [1], [0, 0, 1, 1], [], []>} : vector<2x64xbf16>, vector<64x64xbf16>, vector<2x64xf32> -> vector<2x64xf32>
    %34 = arith.addf %15, %33 : vector<2x64xf32>
    %c0_22 = arith.constant 0 : index
    %c0_23 = arith.constant 0 : index
    %c0_24 = arith.constant 0 : index
    %35 = vector.load %arg8[%c0_22, %c0_23, %c0_24] : memref<2x1x64xf32, #tpu.memory_space<vmem>>, vector<1x1x64xf32>
    %36 = vector.shape_cast %35 : vector<1x1x64xf32> to vector<1x64xf32>
    %37 = arith.mulf %34, %34 : vector<2x64xf32>
    %cst_25 = arith.constant dense<0.000000e+00> : vector<2xf32>
    %38 = vector.multi_reduction <add>, %37, %cst_25 [1] : vector<2x64xf32> to vector<2xf32>
    %39 = vector.shape_cast %38 : vector<2xf32> to vector<2x1xf32>
    %cst_26 = arith.constant 6.400000e+01 : f32
    %40 = vector.broadcast %cst_26 : f32 to vector<2x1xf32>
    %41 = arith.divf %39, %40 : vector<2x1xf32>
    %cst_27 = arith.constant 9.99999974E-6 : f32
    %42 = vector.broadcast %cst_27 : f32 to vector<2x1xf32>
    %43 = arith.addf %41, %42 : vector<2x1xf32>
    %44 = math.rsqrt %43 : vector<2x1xf32>
    %45 = vector.broadcast %44 : vector<2x1xf32> to vector<2x64xf32>
    %46 = arith.mulf %34, %45 : vector<2x64xf32>
    %47 = vector.broadcast %36 : vector<1x64xf32> to vector<2x64xf32>
    %48 = arith.mulf %46, %47 : vector<2x64xf32>
    %49 = arith.truncf %48 : vector<2x64xf32> to vector<2x64xbf16>
    %c0_28 = arith.constant 0 : index
    %c0_29 = arith.constant 0 : index
    %c0_30 = arith.constant 0 : index
    %50 = vector.load %arg9[%c0_28, %c0_29, %c0_30] : memref<2x64x256xbf16, #tpu.memory_space<vmem>>, vector<1x64x256xbf16>
    %51 = vector.shape_cast %50 : vector<1x64x256xbf16> to vector<64x256xbf16>
    %cst_31 = arith.constant dense<0.000000e+00> : vector<2x256xf32>
    %52 = tpu.matmul %49, %51, %cst_31 {dimension_numbers = #tpu.dot_dimension_numbers<[1], [0], [0], [1], [0, 0, 1, 1], [], []>} : vector<2x64xbf16>, vector<64x256xbf16>, vector<2x256xf32> -> vector<2x256xf32>
    %c0_32 = arith.constant 0 : index
    %c0_33 = arith.constant 0 : index
    %c0_34 = arith.constant 0 : index
    %53 = vector.load %arg10[%c0_32, %c0_33, %c0_34] : memref<2x64x256xbf16, #tpu.memory_space<vmem>>, vector<1x64x256xbf16>
    %54 = vector.shape_cast %53 : vector<1x64x256xbf16> to vector<64x256xbf16>
    %cst_35 = arith.constant dense<0.000000e+00> : vector<2x256xf32>
    %55 = tpu.matmul %49, %54, %cst_35 {dimension_numbers = #tpu.dot_dimension_numbers<[1], [0], [0], [1], [0, 0, 1, 1], [], []>} : vector<2x64xbf16>, vector<64x256xbf16>, vector<2x256xf32> -> vector<2x256xf32>
    %56 = arith.negf %52 : vector<2x256xf32>
    %57 = math.exp %56 : vector<2x256xf32>
    %cst_36 = arith.constant 1.000000e+00 : f32
    %58 = vector.broadcast %cst_36 : f32 to vector<2x256xf32>
    %59 = arith.addf %58, %57 : vector<2x256xf32>
    %60 = arith.divf %58, %59 : vector<2x256xf32>
    %61 = arith.mulf %52, %60 : vector<2x256xf32>
    %62 = arith.mulf %61, %55 : vector<2x256xf32>
    %63 = arith.truncf %62 : vector<2x256xf32> to vector<2x256xbf16>
    %c0_37 = arith.constant 0 : index
    %c0_38 = arith.constant 0 : index
    %c0_39 = arith.constant 0 : index
    %64 = vector.load %arg11[%c0_37, %c0_38, %c0_39] : memref<2x256x64xbf16, #tpu.memory_space<vmem>>, vector<1x256x64xbf16>
    %65 = vector.shape_cast %64 : vector<1x256x64xbf16> to vector<256x64xbf16>
    %cst_40 = arith.constant dense<0.000000e+00> : vector<2x64xf32>
    %66 = tpu.matmul %63, %65, %cst_40 {dimension_numbers = #tpu.dot_dimension_numbers<[1], [0], [0], [1], [0, 0, 1, 1], [], []>} : vector<2x256xbf16>, vector<256x64xbf16>, vector<2x64xf32> -> vector<2x64xf32>
    %67 = arith.addf %34, %66 : vector<2x64xf32>
    %c1 = arith.constant 1 : index
    %c0_41 = arith.constant 0 : index
    %c0_42 = arith.constant 0 : index
    %68 = vector.load %arg6[%c1, %c0_41, %c0_42] : memref<2x1x64xf32, #tpu.memory_space<vmem>>, vector<1x1x64xf32>
    %69 = vector.shape_cast %68 : vector<1x1x64xf32> to vector<1x64xf32>
    %70 = arith.mulf %67, %67 : vector<2x64xf32>
    %cst_43 = arith.constant dense<0.000000e+00> : vector<2xf32>
    %71 = vector.multi_reduction <add>, %70, %cst_43 [1] : vector<2x64xf32> to vector<2xf32>
    %72 = vector.shape_cast %71 : vector<2xf32> to vector<2x1xf32>
    %cst_44 = arith.constant 6.400000e+01 : f32
    %73 = vector.broadcast %cst_44 : f32 to vector<2x1xf32>
    %74 = arith.divf %72, %73 : vector<2x1xf32>
    %cst_45 = arith.constant 9.99999974E-6 : f32
    %75 = vector.broadcast %cst_45 : f32 to vector<2x1xf32>
    %76 = arith.addf %74, %75 : vector<2x1xf32>
    %77 = math.rsqrt %76 : vector<2x1xf32>
    %78 = vector.broadcast %77 : vector<2x1xf32> to vector<2x64xf32>
    %79 = arith.mulf %67, %78 : vector<2x64xf32>
    %80 = vector.broadcast %69 : vector<1x64xf32> to vector<2x64xf32>
    %81 = arith.mulf %79, %80 : vector<2x64xf32>
    %82 = arith.truncf %81 : vector<2x64xf32> to vector<2x64xbf16>
    %c1_46 = arith.constant 1 : index
    %c0_47 = arith.constant 0 : index
    %c0_48 = arith.constant 0 : index
    %83 = vector.load %arg7[%c1_46, %c0_47, %c0_48] : memref<2x64x64xbf16, #tpu.memory_space<vmem>>, vector<1x64x64xbf16>
    %84 = vector.shape_cast %83 : vector<1x64x64xbf16> to vector<64x64xbf16>
    %cst_49 = arith.constant dense<0.000000e+00> : vector<2x64xf32>
    %85 = tpu.matmul %82, %84, %cst_49 {dimension_numbers = #tpu.dot_dimension_numbers<[1], [0], [0], [1], [0, 0, 1, 1], [], []>} : vector<2x64xbf16>, vector<64x64xbf16>, vector<2x64xf32> -> vector<2x64xf32>
    %86 = arith.addf %67, %85 : vector<2x64xf32>
    %c1_50 = arith.constant 1 : index
    %c0_51 = arith.constant 0 : index
    %c0_52 = arith.constant 0 : index
    %87 = vector.load %arg8[%c1_50, %c0_51, %c0_52] : memref<2x1x64xf32, #tpu.memory_space<vmem>>, vector<1x1x64xf32>
    %88 = vector.shape_cast %87 : vector<1x1x64xf32> to vector<1x64xf32>
    %89 = arith.mulf %86, %86 : vector<2x64xf32>
    %cst_53 = arith.constant dense<0.000000e+00> : vector<2xf32>
    %90 = vector.multi_reduction <add>, %89, %cst_53 [1] : vector<2x64xf32> to vector<2xf32>
    %91 = vector.shape_cast %90 : vector<2xf32> to vector<2x1xf32>
    %cst_54 = arith.constant 6.400000e+01 : f32
    %92 = vector.broadcast %cst_54 : f32 to vector<2x1xf32>
    %93 = arith.divf %91, %92 : vector<2x1xf32>
    %cst_55 = arith.constant 9.99999974E-6 : f32
    %94 = vector.broadcast %cst_55 : f32 to vector<2x1xf32>
    %95 = arith.addf %93, %94 : vector<2x1xf32>
    %96 = math.rsqrt %95 : vector<2x1xf32>
    %97 = vector.broadcast %96 : vector<2x1xf32> to vector<2x64xf32>
    %98 = arith.mulf %86, %97 : vector<2x64xf32>
    %99 = vector.broadcast %88 : vector<1x64xf32> to vector<2x64xf32>
    %100 = arith.mulf %98, %99 : vector<2x64xf32>
    %101 = arith.truncf %100 : vector<2x64xf32> to vector<2x64xbf16>
    %c1_56 = arith.constant 1 : index
    %c0_57 = arith.constant 0 : index
    %c0_58 = arith.constant 0 : index
    %102 = vector.load %arg9[%c1_56, %c0_57, %c0_58] : memref<2x64x256xbf16, #tpu.memory_space<vmem>>, vector<1x64x256xbf16>
    %103 = vector.shape_cast %102 : vector<1x64x256xbf16> to vector<64x256xbf16>
    %cst_59 = arith.constant dense<0.000000e+00> : vector<2x256xf32>
    %104 = tpu.matmul %101, %103, %cst_59 {dimension_numbers = #tpu.dot_dimension_numbers<[1], [0], [0], [1], [0, 0, 1, 1], [], []>} : vector<2x64xbf16>, vector<64x256xbf16>, vector<2x256xf32> -> vector<2x256xf32>
    %c1_60 = arith.constant 1 : index
    %c0_61 = arith.constant 0 : index
    %c0_62 = arith.constant 0 : index
    %105 = vector.load %arg10[%c1_60, %c0_61, %c0_62] : memref<2x64x256xbf16, #tpu.memory_space<vmem>>, vector<1x64x256xbf16>
    %106 = vector.shape_cast %105 : vector<1x64x256xbf16> to vector<64x256xbf16>
    %cst_63 = arith.constant dense<0.000000e+00> : vector<2x256xf32>
    %107 = tpu.matmul %101, %106, %cst_63 {dimension_numbers = #tpu.dot_dimension_numbers<[1], [0], [0], [1], [0, 0, 1, 1], [], []>} : vector<2x64xbf16>, vector<64x256xbf16>, vector<2x256xf32> -> vector<2x256xf32>
    %108 = arith.negf %104 : vector<2x256xf32>
    %109 = math.exp %108 : vector<2x256xf32>
    %cst_64 = arith.constant 1.000000e+00 : f32
    %110 = vector.broadcast %cst_64 : f32 to vector<2x256xf32>
    %111 = arith.addf %110, %109 : vector<2x256xf32>
    %112 = arith.divf %110, %111 : vector<2x256xf32>
    %113 = arith.mulf %104, %112 : vector<2x256xf32>
    %114 = arith.mulf %113, %107 : vector<2x256xf32>
    %115 = arith.truncf %114 : vector<2x256xf32> to vector<2x256xbf16>
    %c1_65 = arith.constant 1 : index
    %c0_66 = arith.constant 0 : index
    %c0_67 = arith.constant 0 : index
    %116 = vector.load %arg11[%c1_65, %c0_66, %c0_67] : memref<2x256x64xbf16, #tpu.memory_space<vmem>>, vector<1x256x64xbf16>
    %117 = vector.shape_cast %116 : vector<1x256x64xbf16> to vector<256x64xbf16>
    %cst_68 = arith.constant dense<0.000000e+00> : vector<2x64xf32>
    %118 = tpu.matmul %115, %117, %cst_68 {dimension_numbers = #tpu.dot_dimension_numbers<[1], [0], [0], [1], [0, 0, 1, 1], [], []>} : vector<2x256xbf16>, vector<256x64xbf16>, vector<2x64xf32> -> vector<2x64xf32>
    %119 = arith.addf %86, %118 : vector<2x64xf32>
    %c0_69 = arith.constant 0 : index
    %c0_70 = arith.constant 0 : index
    %120 = vector.load %arg12[%c0_69, %c0_70] : memref<1x64xf32, #tpu.memory_space<vmem>>, vector<1x64xf32>
    %121 = arith.mulf %119, %119 : vector<2x64xf32>
    %cst_71 = arith.constant dense<0.000000e+00> : vector<2xf32>
    %122 = vector.multi_reduction <add>, %121, %cst_71 [1] : vector<2x64xf32> to vector<2xf32>
    %123 = vector.shape_cast %122 : vector<2xf32> to vector<2x1xf32>
    %cst_72 = arith.constant 6.400000e+01 : f32
    %124 = vector.broadcast %cst_72 : f32 to vector<2x1xf32>
    %125 = arith.divf %123, %124 : vector<2x1xf32>
    %cst_73 = arith.constant 9.99999974E-6 : f32
    %126 = vector.broadcast %cst_73 : f32 to vector<2x1xf32>
    %127 = arith.addf %125, %126 : vector<2x1xf32>
    %128 = math.rsqrt %127 : vector<2x1xf32>
    %129 = vector.broadcast %128 : vector<2x1xf32> to vector<2x64xf32>
    %130 = arith.mulf %119, %129 : vector<2x64xf32>
    %131 = vector.broadcast %120 : vector<1x64xf32> to vector<2x64xf32>
    %132 = arith.mulf %130, %131 : vector<2x64xf32>
    %133 = arith.truncf %132 : vector<2x64xf32> to vector<2x64xbf16>
    %c0_74 = arith.constant 0 : index
    %c0_75 = arith.constant 0 : index
    %134 = vector.load %arg13[%c0_74, %c0_75] : memref<2x64xbf16, #tpu.memory_space<vmem>>, vector<2x64xbf16>
    tpu.vector_store %arg13[%c0_74, %c0_75], %133 {strides = array<i32>} : memref<2x64xbf16, #tpu.memory_space<vmem>>, vector<2x64xbf16>,
    return
  }
  func.func @transform_0(%arg0: i32) -> (i32, i32) {
    %c0_i32 = arith.constant 0 : i32
    %c0_i32_0 = arith.constant 0 : i32
    %c0_i32_1 = arith.constant 0 : i32
    return %c0_i32, %c0_i32_0 : i32, i32
  }
  func.func @transform_1(%arg0: i32) -> (i32, i32) {
    %c0_i32 = arith.constant 0 : i32
    %c0_i32_0 = arith.constant 0 : i32
    %c0_i32_1 = arith.constant 0 : i32
    return %c0_i32, %c0_i32_0 : i32, i32
  }
  func.func @transform_2(%arg0: i32) -> (i32, i32) {
    %c0_i32 = arith.constant 0 : i32
    %c0_i32_0 = arith.constant 0 : i32
    %c0_i32_1 = arith.constant 0 : i32
    return %c0_i32, %c0_i32_0 : i32, i32
  }
  func.func @transform_3(%arg0: i32) -> (i32, i32) {
    %c0_i32 = arith.constant 0 : i32
    %c0_i32_0 = arith.constant 0 : i32
    %c0_i32_1 = arith.constant 0 : i32
    return %c0_i32, %c0_i32_0 : i32, i32
  }
  func.func @transform_4(%arg0: i32) -> (i32, i32) {
    %c0_i32 = arith.constant 0 : i32
    %c0_i32_0 = arith.constant 0 : i32
    %c0_i32_1 = arith.constant 0 : i32
    return %c0_i32, %c0_i32_0 : i32, i32
  }
  func.func @transform_5(%arg0: i32) -> (i32, i32, i32) {
    %c0_i32 = arith.constant 0 : i32
    %c0_i32_0 = arith.constant 0 : i32
    %c0_i32_1 = arith.constant 0 : i32
    %c0_i32_2 = arith.constant 0 : i32
    return %c0_i32, %c0_i32_0, %c0_i32_1 : i32, i32, i32
  }
  func.func @transform_6(%arg0: i32) -> (i32, i32, i32) {
    %c0_i32 = arith.constant 0 : i32
    %c0_i32_0 = arith.constant 0 : i32
    %c0_i32_1 = arith.constant 0 : i32
    %c0_i32_2 = arith.constant 0 : i32
    return %c0_i32, %c0_i32_0, %c0_i32_1 : i32, i32, i32
  }
  func.func @transform_7(%arg0: i32) -> (i32, i32, i32) {
    %c0_i32 = arith.constant 0 : i32
    %c0_i32_0 = arith.constant 0 : i32
    %c0_i32_1 = arith.constant 0 : i32
    %c0_i32_2 = arith.constant 0 : i32
    return %c0_i32, %c0_i32_0, %c0_i32_1 : i32, i32, i32
  }
  func.func @transform_8(%arg0: i32) -> (i32, i32, i32) {
    %c0_i32 = arith.constant 0 : i32
    %c0_i32_0 = arith.constant 0 : i32
    %c0_i32_1 = arith.constant 0 : i32
    %c0_i32_2 = arith.constant 0 : i32
    return %c0_i32, %c0_i32_0, %c0_i32_1 : i32, i32, i32
  }
  func.func @transform_9(%arg0: i32) -> (i32, i32, i32) {
    %c0_i32 = arith.constant 0 : i32
    %c0_i32_0 = arith.constant 0 : i32
    %c0_i32_1 = arith.constant 0 : i32
    %c0_i32_2 = arith.constant 0 : i32
    return %c0_i32, %c0_i32_0, %c0_i32_1 : i32, i32, i32
  }
  func.func @transform_10(%arg0: i32) -> (i32, i32, i32) {
    %c0_i32 = arith.constant 0 : i32
    %c0_i32_0 = arith.constant 0 : i32
    %c0_i32_1 = arith.constant 0 : i32
    %c0_i32_2 = arith.constant 0 : i32
    return %c0_i32, %c0_i32_0, %c0_i32_1 : i32, i32, i32
  }
  func.func @transform_11(%arg0: i32) -> (i32, i32) {
    %c0_i32 = arith.constant 0 : i32
    %c0_i32_0 = arith.constant 0 : i32
    %c0_i32_1 = arith.constant 0 : i32
    return %c0_i32, %c0_i32_0 : i32, i32
  }
  func.func @transform_12(%arg0: i32) -> (i32, i32) {
    %c0_i32 = arith.constant 0 : i32
    %c0_i32_0 = arith.constant 0 : i32
    %c0_i32_1 = arith.constant 0 : i32
    return %c0_i32, %c0_i32_0 : i32, i32
  }
}

module attributes {stable_mosaic.version = 11 : i64} {
  func.func @_decoder_kernel(%arg0: i32, %arg1: memref<16x64xbf16, #tpu.memory_space<vmem>>, %arg2: memref<2x64xbf16, #tpu.memory_space<vmem>>, %arg3: memref<1x8x8xf32, #tpu.memory_space<vmem>>, %arg4: memref<16x8xf32, #tpu.memory_space<vmem>>, %arg5: memref<16x8xf32, #tpu.memory_space<vmem>>, %arg6: memref<2x1x64xf32, #tpu.memory_space<vmem>>, %arg7: memref<2x64x64xbf16, #tpu.memory_space<vmem>>, %arg8: memref<2x64x32xbf16, #tpu.memory_space<vmem>>, %arg9: memref<2x64x32xbf16, #tpu.memory_space<vmem>>, %arg10: memref<2x64x64xbf16, #tpu.memory_space<vmem>>, %arg11: memref<2x64x64xbf16, #tpu.memory_space<vmem>>, %arg12: memref<2x1x64xf32, #tpu.memory_space<vmem>>, %arg13: memref<2x64x256xbf16, #tpu.memory_space<vmem>>, %arg14: memref<2x64x256xbf16, #tpu.memory_space<vmem>>, %arg15: memref<2x256x64xbf16, #tpu.memory_space<vmem>>, %arg16: memref<1x64xf32, #tpu.memory_space<vmem>>, %arg17: memref<64x128xbf16, #tpu.memory_space<vmem>>, %arg18: memref<16x128xf32, #tpu.memory_space<vmem>>) attributes {dimension_semantics = [#tpu.dimension_semantics<arbitrary>], iteration_bounds = array<i64: 1>, scalar_prefetch = 0 : i64, scratch_operands = 0 : i64, tpu.core_type = #tpu.core_type<tc>, window_params = [{pipeline_mode = #tpu.pipeline_mode<synchronous>, transform_indices = @transform_0, window_bounds = array<i64: 16, 64>}, {pipeline_mode = #tpu.pipeline_mode<synchronous>, transform_indices = @transform_1, window_bounds = array<i64: 2, 64>}, {pipeline_mode = #tpu.pipeline_mode<synchronous>, transform_indices = @transform_2, window_bounds = array<i64: 1, 8, 8>}, {pipeline_mode = #tpu.pipeline_mode<synchronous>, transform_indices = @transform_3, window_bounds = array<i64: 16, 8>}, {pipeline_mode = #tpu.pipeline_mode<synchronous>, transform_indices = @transform_4, window_bounds = array<i64: 16, 8>}, {pipeline_mode = #tpu.pipeline_mode<synchronous>, transform_indices = @transform_5, window_bounds = array<i64: 2, 1, 64>}, {pipeline_mode = #tpu.pipeline_mode<synchronous>, transform_indices = @transform_6, window_bounds = array<i64: 2, 64, 64>}, {pipeline_mode = #tpu.pipeline_mode<synchronous>, transform_indices = @transform_7, window_bounds = array<i64: 2, 64, 32>}, {pipeline_mode = #tpu.pipeline_mode<synchronous>, transform_indices = @transform_8, window_bounds = array<i64: 2, 64, 32>}, {pipeline_mode = #tpu.pipeline_mode<synchronous>, transform_indices = @transform_9, window_bounds = array<i64: 2, 64, 64>}, {pipeline_mode = #tpu.pipeline_mode<synchronous>, transform_indices = @transform_10, window_bounds = array<i64: 2, 64, 64>}, {pipeline_mode = #tpu.pipeline_mode<synchronous>, transform_indices = @transform_11, window_bounds = array<i64: 2, 1, 64>}, {pipeline_mode = #tpu.pipeline_mode<synchronous>, transform_indices = @transform_12, window_bounds = array<i64: 2, 64, 256>}, {pipeline_mode = #tpu.pipeline_mode<synchronous>, transform_indices = @transform_13, window_bounds = array<i64: 2, 64, 256>}, {pipeline_mode = #tpu.pipeline_mode<synchronous>, transform_indices = @transform_14, window_bounds = array<i64: 2, 256, 64>}, {pipeline_mode = #tpu.pipeline_mode<synchronous>, transform_indices = @transform_15, window_bounds = array<i64: 1, 64>}, {pipeline_mode = #tpu.pipeline_mode<synchronous>, transform_indices = @transform_16, window_bounds = array<i64: 64, 128>}, {pipeline_mode = #tpu.pipeline_mode<synchronous>, transform_indices = @transform_17, window_bounds = array<i64: 16, 128>}]} {
    %c0 = arith.constant 0 : index
    %c0_0 = arith.constant 0 : index
    %0 = vector.load %arg1[%c0, %c0_0] : memref<16x64xbf16, #tpu.memory_space<vmem>>, vector<16x64xbf16>
    %1 = arith.extf %0 : vector<16x64xbf16> to vector<16x64xf32>
    %c0_1 = arith.constant 0 : index
    %c0_2 = arith.constant 0 : index
    %2 = vector.load %arg2[%c0_1, %c0_2] : memref<2x64xbf16, #tpu.memory_space<vmem>>, vector<2x64xbf16>
    %c0_3 = arith.constant 0 : index
    %c0_4 = arith.constant 0 : index
    %c0_5 = arith.constant 0 : index
    %3 = vector.load %arg3[%c0_3, %c0_4, %c0_5] : memref<1x8x8xf32, #tpu.memory_space<vmem>>, vector<1x8x8xf32>
    %c0_6 = arith.constant 0 : index
    %c0_7 = arith.constant 0 : index
    %4 = vector.load %arg4[%c0_6, %c0_7] : memref<16x8xf32, #tpu.memory_space<vmem>>, vector<16x8xf32>
    %c0_8 = arith.constant 0 : index
    %c0_9 = arith.constant 0 : index
    %5 = vector.load %arg5[%c0_8, %c0_9] : memref<16x8xf32, #tpu.memory_space<vmem>>, vector<16x8xf32>
    %c0_10 = arith.constant 0 : index
    %c0_11 = arith.constant 0 : index
    %c0_12 = arith.constant 0 : index
    %6 = vector.load %arg6[%c0_10, %c0_11, %c0_12] : memref<2x1x64xf32, #tpu.memory_space<vmem>>, vector<1x1x64xf32>
    %7 = vector.shape_cast %6 : vector<1x1x64xf32> to vector<1x64xf32>
    %8 = arith.mulf %1, %1 : vector<16x64xf32>
    %cst = arith.constant dense<0.000000e+00> : vector<16xf32>
    %9 = vector.multi_reduction <add>, %8, %cst [1] : vector<16x64xf32> to vector<16xf32>
    %10 = vector.shape_cast %9 : vector<16xf32> to vector<16x1xf32>
    %cst_13 = arith.constant 6.400000e+01 : f32
    %11 = vector.broadcast %cst_13 : f32 to vector<16x1xf32>
    %12 = arith.divf %10, %11 : vector<16x1xf32>
    %cst_14 = arith.constant 9.99999974E-6 : f32
    %13 = vector.broadcast %cst_14 : f32 to vector<16x1xf32>
    %14 = arith.addf %12, %13 : vector<16x1xf32>
    %15 = math.rsqrt %14 : vector<16x1xf32>
    %16 = vector.broadcast %15 : vector<16x1xf32> to vector<16x64xf32>
    %17 = arith.mulf %1, %16 : vector<16x64xf32>
    %18 = vector.broadcast %7 : vector<1x64xf32> to vector<16x64xf32>
    %19 = arith.mulf %17, %18 : vector<16x64xf32>
    %20 = arith.truncf %19 : vector<16x64xf32> to vector<16x64xbf16>
    %c0_15 = arith.constant 0 : index
    %c0_16 = arith.constant 0 : index
    %c0_17 = arith.constant 0 : index
    %21 = vector.load %arg7[%c0_15, %c0_16, %c0_17] : memref<2x64x64xbf16, #tpu.memory_space<vmem>>, vector<1x64x64xbf16>
    %22 = vector.shape_cast %21 : vector<1x64x64xbf16> to vector<64x64xbf16>
    %cst_18 = arith.constant dense<0.000000e+00> : vector<16x64xf32>
    %23 = tpu.matmul %20, %22, %cst_18 {dimension_numbers = #tpu.dot_dimension_numbers<[1], [0], [0], [1], [0, 0, 1, 1], [], []>} : vector<16x64xbf16>, vector<64x64xbf16>, vector<16x64xf32> -> vector<16x64xf32>
    %c0_19 = arith.constant 0 : index
    %c0_20 = arith.constant 0 : index
    %c0_21 = arith.constant 0 : index
    %24 = vector.load %arg8[%c0_19, %c0_20, %c0_21] : memref<2x64x32xbf16, #tpu.memory_space<vmem>>, vector<1x64x32xbf16>
    %25 = vector.shape_cast %24 : vector<1x64x32xbf16> to vector<64x32xbf16>
    %cst_22 = arith.constant dense<0.000000e+00> : vector<16x32xf32>
    %26 = tpu.matmul %20, %25, %cst_22 {dimension_numbers = #tpu.dot_dimension_numbers<[1], [0], [0], [1], [0, 0, 1, 1], [], []>} : vector<16x64xbf16>, vector<64x32xbf16>, vector<16x32xf32> -> vector<16x32xf32>
    %c0_23 = arith.constant 0 : index
    %c0_24 = arith.constant 0 : index
    %c0_25 = arith.constant 0 : index
    %27 = vector.load %arg9[%c0_23, %c0_24, %c0_25] : memref<2x64x32xbf16, #tpu.memory_space<vmem>>, vector<1x64x32xbf16>
    %28 = vector.shape_cast %27 : vector<1x64x32xbf16> to vector<64x32xbf16>
    %cst_26 = arith.constant dense<0.000000e+00> : vector<16x32xf32>
    %29 = tpu.matmul %20, %28, %cst_26 {dimension_numbers = #tpu.dot_dimension_numbers<[1], [0], [0], [1], [0, 0, 1, 1], [], []>} : vector<16x64xbf16>, vector<64x32xbf16>, vector<16x32xf32> -> vector<16x32xf32>
    %30 = vector.extract_strided_slice %26 {offsets = [0, 0], sizes = [16, 16], strides = [1, 1]} : vector<16x32xf32> to vector<16x16xf32>
    %31 = vector.extract_strided_slice %30 {offsets = [0, 0], sizes = [16, 8], strides = [1, 1]} : vector<16x16xf32> to vector<16x8xf32>
    %32 = vector.extract_strided_slice %30 {offsets = [0, 8], sizes = [16, 8], strides = [1, 1]} : vector<16x16xf32> to vector<16x8xf32>
    %33 = arith.mulf %31, %4 : vector<16x8xf32>
    %34 = arith.mulf %32, %5 : vector<16x8xf32>
    %35 = arith.subf %33, %34 : vector<16x8xf32>
    %36 = arith.mulf %32, %4 : vector<16x8xf32>
    %37 = arith.mulf %31, %5 : vector<16x8xf32>
    %38 = arith.addf %36, %37 : vector<16x8xf32>
    %39 = tpu.concatenate %35, %38 in 1 : vector<16x8xf32>, vector<16x8xf32> -> vector<16x16xf32>
    %40 = vector.shape_cast %39 : vector<16x16xf32> to vector<2x8x16xf32>
    %41 = arith.truncf %40 : vector<2x8x16xf32> to vector<2x8x16xbf16>
    %42 = vector.extract_strided_slice %29 {offsets = [0, 0], sizes = [16, 16], strides = [1, 1]} : vector<16x32xf32> to vector<16x16xf32>
    %43 = vector.shape_cast %42 : vector<16x16xf32> to vector<2x8x16xf32>
    %44 = arith.truncf %43 : vector<2x8x16xf32> to vector<2x8x16xbf16>
    %45 = vector.extract_strided_slice %26 {offsets = [0, 16], sizes = [16, 16], strides = [1, 1]} : vector<16x32xf32> to vector<16x16xf32>
    %46 = vector.extract_strided_slice %45 {offsets = [0, 0], sizes = [16, 8], strides = [1, 1]} : vector<16x16xf32> to vector<16x8xf32>
    %47 = vector.extract_strided_slice %45 {offsets = [0, 8], sizes = [16, 8], strides = [1, 1]} : vector<16x16xf32> to vector<16x8xf32>
    %48 = arith.mulf %46, %4 : vector<16x8xf32>
    %49 = arith.mulf %47, %5 : vector<16x8xf32>
    %50 = arith.subf %48, %49 : vector<16x8xf32>
    %51 = arith.mulf %47, %4 : vector<16x8xf32>
    %52 = arith.mulf %46, %5 : vector<16x8xf32>
    %53 = arith.addf %51, %52 : vector<16x8xf32>
    %54 = tpu.concatenate %50, %53 in 1 : vector<16x8xf32>, vector<16x8xf32> -> vector<16x16xf32>
    %55 = vector.shape_cast %54 : vector<16x16xf32> to vector<2x8x16xf32>
    %56 = arith.truncf %55 : vector<2x8x16xf32> to vector<2x8x16xbf16>
    %57 = vector.extract_strided_slice %29 {offsets = [0, 16], sizes = [16, 16], strides = [1, 1]} : vector<16x32xf32> to vector<16x16xf32>
    %58 = vector.shape_cast %57 : vector<16x16xf32> to vector<2x8x16xf32>
    %59 = arith.truncf %58 : vector<2x8x16xf32> to vector<2x8x16xbf16>
    %60 = vector.extract_strided_slice %23 {offsets = [0, 0], sizes = [16, 16], strides = [1, 1]} : vector<16x64xf32> to vector<16x16xf32>
    %61 = vector.extract_strided_slice %60 {offsets = [0, 0], sizes = [16, 8], strides = [1, 1]} : vector<16x16xf32> to vector<16x8xf32>
    %62 = vector.extract_strided_slice %60 {offsets = [0, 8], sizes = [16, 8], strides = [1, 1]} : vector<16x16xf32> to vector<16x8xf32>
    %63 = arith.mulf %61, %4 : vector<16x8xf32>
    %64 = arith.mulf %62, %5 : vector<16x8xf32>
    %65 = arith.subf %63, %64 : vector<16x8xf32>
    %66 = arith.mulf %62, %4 : vector<16x8xf32>
    %67 = arith.mulf %61, %5 : vector<16x8xf32>
    %68 = arith.addf %66, %67 : vector<16x8xf32>
    %69 = tpu.concatenate %65, %68 in 1 : vector<16x8xf32>, vector<16x8xf32> -> vector<16x16xf32>
    %cst_27 = arith.constant 2.500000e-01 : f32
    %70 = vector.broadcast %cst_27 : f32 to vector<16x16xf32>
    %71 = arith.mulf %69, %70 : vector<16x16xf32>
    %72 = vector.shape_cast %71 : vector<16x16xf32> to vector<2x8x16xf32>
    %73 = arith.truncf %72 : vector<2x8x16xf32> to vector<2x8x16xbf16>
    "tpu.trace_start"() <{level = 10 : i32, message = "bqd,bkd->bqk"}> : () -> ()
    %cst_28 = arith.constant dense<0.000000e+00> : vector<2x8x8xf32>
    %74 = tpu.matmul %73, %41, %cst_28 {dimension_numbers = #tpu.dot_dimension_numbers<[2], [2], [1], [1], [0, 0, 0, 1, 1, 1], [0], [0]>} : vector<2x8x16xbf16>, vector<2x8x16xbf16>, vector<2x8x8xf32> -> vector<2x8x8xf32>
    "tpu.trace_stop"() : () -> ()
    %75 = vector.broadcast %3 : vector<1x8x8xf32> to vector<2x8x8xf32>
    %76 = arith.addf %74, %75 : vector<2x8x8xf32>
    %cst_29 = arith.constant dense<0xFF800000> : vector<2x8xf32>
    %77 = vector.multi_reduction <maximumf>, %76, %cst_29 [2] : vector<2x8x8xf32> to vector<2x8xf32>
    %78 = vector.shape_cast %77 : vector<2x8xf32> to vector<2x8x1xf32>
    %79 = vector.broadcast %78 : vector<2x8x1xf32> to vector<2x8x8xf32>
    %80 = arith.subf %76, %79 : vector<2x8x8xf32>
    %81 = math.exp %80 : vector<2x8x8xf32>
    %cst_30 = arith.constant dense<0.000000e+00> : vector<2x8xf32>
    %82 = vector.multi_reduction <add>, %81, %cst_30 [2] : vector<2x8x8xf32> to vector<2x8xf32>
    %83 = vector.shape_cast %82 : vector<2x8xf32> to vector<2x8x1xf32>
    %84 = tpu.reciprocal %83 {approx = true} : vector<2x8x1xf32> -> vector<2x8x1xf32>
    %85 = vector.broadcast %84 : vector<2x8x1xf32> to vector<2x8x8xf32>
    %86 = arith.mulf %81, %85 : vector<2x8x8xf32>
    %87 = arith.truncf %86 : vector<2x8x8xf32> to vector<2x8x8xbf16>
    "tpu.trace_start"() <{level = 10 : i32, message = "bqk,bkd->bqd"}> : () -> ()
    %cst_31 = arith.constant dense<0.000000e+00> : vector<2x8x16xf32>
    %88 = tpu.matmul %87, %44, %cst_31 {dimension_numbers = #tpu.dot_dimension_numbers<[2], [1], [1], [2], [0, 0, 0, 1, 1, 2], [0], [0]>} : vector<2x8x8xbf16>, vector<2x8x16xbf16>, vector<2x8x16xf32> -> vector<2x8x16xf32>
    "tpu.trace_stop"() : () -> ()
    %89 = vector.shape_cast %88 : vector<2x8x16xf32> to vector<16x16xf32>
    %90 = vector.extract_strided_slice %23 {offsets = [0, 16], sizes = [16, 16], strides = [1, 1]} : vector<16x64xf32> to vector<16x16xf32>
    %91 = vector.extract_strided_slice %90 {offsets = [0, 0], sizes = [16, 8], strides = [1, 1]} : vector<16x16xf32> to vector<16x8xf32>
    %92 = vector.extract_strided_slice %90 {offsets = [0, 8], sizes = [16, 8], strides = [1, 1]} : vector<16x16xf32> to vector<16x8xf32>
    %93 = arith.mulf %91, %4 : vector<16x8xf32>
    %94 = arith.mulf %92, %5 : vector<16x8xf32>
    %95 = arith.subf %93, %94 : vector<16x8xf32>
    %96 = arith.mulf %92, %4 : vector<16x8xf32>
    %97 = arith.mulf %91, %5 : vector<16x8xf32>
    %98 = arith.addf %96, %97 : vector<16x8xf32>
    %99 = tpu.concatenate %95, %98 in 1 : vector<16x8xf32>, vector<16x8xf32> -> vector<16x16xf32>
    %cst_32 = arith.constant 2.500000e-01 : f32
    %100 = vector.broadcast %cst_32 : f32 to vector<16x16xf32>
    %101 = arith.mulf %99, %100 : vector<16x16xf32>
    %102 = vector.shape_cast %101 : vector<16x16xf32> to vector<2x8x16xf32>
    %103 = arith.truncf %102 : vector<2x8x16xf32> to vector<2x8x16xbf16>
    "tpu.trace_start"() <{level = 10 : i32, message = "bqd,bkd->bqk"}> : () -> ()
    %cst_33 = arith.constant dense<0.000000e+00> : vector<2x8x8xf32>
    %104 = tpu.matmul %103, %41, %cst_33 {dimension_numbers = #tpu.dot_dimension_numbers<[2], [2], [1], [1], [0, 0, 0, 1, 1, 1], [0], [0]>} : vector<2x8x16xbf16>, vector<2x8x16xbf16>, vector<2x8x8xf32> -> vector<2x8x8xf32>
    "tpu.trace_stop"() : () -> ()
    %105 = vector.broadcast %3 : vector<1x8x8xf32> to vector<2x8x8xf32>
    %106 = arith.addf %104, %105 : vector<2x8x8xf32>
    %cst_34 = arith.constant dense<0xFF800000> : vector<2x8xf32>
    %107 = vector.multi_reduction <maximumf>, %106, %cst_34 [2] : vector<2x8x8xf32> to vector<2x8xf32>
    %108 = vector.shape_cast %107 : vector<2x8xf32> to vector<2x8x1xf32>
    %109 = vector.broadcast %108 : vector<2x8x1xf32> to vector<2x8x8xf32>
    %110 = arith.subf %106, %109 : vector<2x8x8xf32>
    %111 = math.exp %110 : vector<2x8x8xf32>
    %cst_35 = arith.constant dense<0.000000e+00> : vector<2x8xf32>
    %112 = vector.multi_reduction <add>, %111, %cst_35 [2] : vector<2x8x8xf32> to vector<2x8xf32>
    %113 = vector.shape_cast %112 : vector<2x8xf32> to vector<2x8x1xf32>
    %114 = tpu.reciprocal %113 {approx = true} : vector<2x8x1xf32> -> vector<2x8x1xf32>
    %115 = vector.broadcast %114 : vector<2x8x1xf32> to vector<2x8x8xf32>
    %116 = arith.mulf %111, %115 : vector<2x8x8xf32>
    %117 = arith.truncf %116 : vector<2x8x8xf32> to vector<2x8x8xbf16>
    "tpu.trace_start"() <{level = 10 : i32, message = "bqk,bkd->bqd"}> : () -> ()
    %cst_36 = arith.constant dense<0.000000e+00> : vector<2x8x16xf32>
    %118 = tpu.matmul %117, %44, %cst_36 {dimension_numbers = #tpu.dot_dimension_numbers<[2], [1], [1], [2], [0, 0, 0, 1, 1, 2], [0], [0]>} : vector<2x8x8xbf16>, vector<2x8x16xbf16>, vector<2x8x16xf32> -> vector<2x8x16xf32>
    "tpu.trace_stop"() : () -> ()
    %119 = vector.shape_cast %118 : vector<2x8x16xf32> to vector<16x16xf32>
    %120 = vector.extract_strided_slice %23 {offsets = [0, 32], sizes = [16, 16], strides = [1, 1]} : vector<16x64xf32> to vector<16x16xf32>
    %121 = vector.extract_strided_slice %120 {offsets = [0, 0], sizes = [16, 8], strides = [1, 1]} : vector<16x16xf32> to vector<16x8xf32>
    %122 = vector.extract_strided_slice %120 {offsets = [0, 8], sizes = [16, 8], strides = [1, 1]} : vector<16x16xf32> to vector<16x8xf32>
    %123 = arith.mulf %121, %4 : vector<16x8xf32>
    %124 = arith.mulf %122, %5 : vector<16x8xf32>
    %125 = arith.subf %123, %124 : vector<16x8xf32>
    %126 = arith.mulf %122, %4 : vector<16x8xf32>
    %127 = arith.mulf %121, %5 : vector<16x8xf32>
    %128 = arith.addf %126, %127 : vector<16x8xf32>
    %129 = tpu.concatenate %125, %128 in 1 : vector<16x8xf32>, vector<16x8xf32> -> vector<16x16xf32>
    %cst_37 = arith.constant 2.500000e-01 : f32
    %130 = vector.broadcast %cst_37 : f32 to vector<16x16xf32>
    %131 = arith.mulf %129, %130 : vector<16x16xf32>
    %132 = vector.shape_cast %131 : vector<16x16xf32> to vector<2x8x16xf32>
    %133 = arith.truncf %132 : vector<2x8x16xf32> to vector<2x8x16xbf16>
    "tpu.trace_start"() <{level = 10 : i32, message = "bqd,bkd->bqk"}> : () -> ()
    %cst_38 = arith.constant dense<0.000000e+00> : vector<2x8x8xf32>
    %134 = tpu.matmul %133, %56, %cst_38 {dimension_numbers = #tpu.dot_dimension_numbers<[2], [2], [1], [1], [0, 0, 0, 1, 1, 1], [0], [0]>} : vector<2x8x16xbf16>, vector<2x8x16xbf16>, vector<2x8x8xf32> -> vector<2x8x8xf32>
    "tpu.trace_stop"() : () -> ()
    %135 = vector.broadcast %3 : vector<1x8x8xf32> to vector<2x8x8xf32>
    %136 = arith.addf %134, %135 : vector<2x8x8xf32>
    %cst_39 = arith.constant dense<0xFF800000> : vector<2x8xf32>
    %137 = vector.multi_reduction <maximumf>, %136, %cst_39 [2] : vector<2x8x8xf32> to vector<2x8xf32>
    %138 = vector.shape_cast %137 : vector<2x8xf32> to vector<2x8x1xf32>
    %139 = vector.broadcast %138 : vector<2x8x1xf32> to vector<2x8x8xf32>
    %140 = arith.subf %136, %139 : vector<2x8x8xf32>
    %141 = math.exp %140 : vector<2x8x8xf32>
    %cst_40 = arith.constant dense<0.000000e+00> : vector<2x8xf32>
    %142 = vector.multi_reduction <add>, %141, %cst_40 [2] : vector<2x8x8xf32> to vector<2x8xf32>
    %143 = vector.shape_cast %142 : vector<2x8xf32> to vector<2x8x1xf32>
    %144 = tpu.reciprocal %143 {approx = true} : vector<2x8x1xf32> -> vector<2x8x1xf32>
    %145 = vector.broadcast %144 : vector<2x8x1xf32> to vector<2x8x8xf32>
    %146 = arith.mulf %141, %145 : vector<2x8x8xf32>
    %147 = arith.truncf %146 : vector<2x8x8xf32> to vector<2x8x8xbf16>
    "tpu.trace_start"() <{level = 10 : i32, message = "bqk,bkd->bqd"}> : () -> ()
    %cst_41 = arith.constant dense<0.000000e+00> : vector<2x8x16xf32>
    %148 = tpu.matmul %147, %59, %cst_41 {dimension_numbers = #tpu.dot_dimension_numbers<[2], [1], [1], [2], [0, 0, 0, 1, 1, 2], [0], [0]>} : vector<2x8x8xbf16>, vector<2x8x16xbf16>, vector<2x8x16xf32> -> vector<2x8x16xf32>
    "tpu.trace_stop"() : () -> ()
    %149 = vector.shape_cast %148 : vector<2x8x16xf32> to vector<16x16xf32>
    %150 = vector.extract_strided_slice %23 {offsets = [0, 48], sizes = [16, 16], strides = [1, 1]} : vector<16x64xf32> to vector<16x16xf32>
    %151 = vector.extract_strided_slice %150 {offsets = [0, 0], sizes = [16, 8], strides = [1, 1]} : vector<16x16xf32> to vector<16x8xf32>
    %152 = vector.extract_strided_slice %150 {offsets = [0, 8], sizes = [16, 8], strides = [1, 1]} : vector<16x16xf32> to vector<16x8xf32>
    %153 = arith.mulf %151, %4 : vector<16x8xf32>
    %154 = arith.mulf %152, %5 : vector<16x8xf32>
    %155 = arith.subf %153, %154 : vector<16x8xf32>
    %156 = arith.mulf %152, %4 : vector<16x8xf32>
    %157 = arith.mulf %151, %5 : vector<16x8xf32>
    %158 = arith.addf %156, %157 : vector<16x8xf32>
    %159 = tpu.concatenate %155, %158 in 1 : vector<16x8xf32>, vector<16x8xf32> -> vector<16x16xf32>
    %cst_42 = arith.constant 2.500000e-01 : f32
    %160 = vector.broadcast %cst_42 : f32 to vector<16x16xf32>
    %161 = arith.mulf %159, %160 : vector<16x16xf32>
    %162 = vector.shape_cast %161 : vector<16x16xf32> to vector<2x8x16xf32>
    %163 = arith.truncf %162 : vector<2x8x16xf32> to vector<2x8x16xbf16>
    "tpu.trace_start"() <{level = 10 : i32, message = "bqd,bkd->bqk"}> : () -> ()
    %cst_43 = arith.constant dense<0.000000e+00> : vector<2x8x8xf32>
    %164 = tpu.matmul %163, %56, %cst_43 {dimension_numbers = #tpu.dot_dimension_numbers<[2], [2], [1], [1], [0, 0, 0, 1, 1, 1], [0], [0]>} : vector<2x8x16xbf16>, vector<2x8x16xbf16>, vector<2x8x8xf32> -> vector<2x8x8xf32>
    "tpu.trace_stop"() : () -> ()
    %165 = vector.broadcast %3 : vector<1x8x8xf32> to vector<2x8x8xf32>
    %166 = arith.addf %164, %165 : vector<2x8x8xf32>
    %cst_44 = arith.constant dense<0xFF800000> : vector<2x8xf32>
    %167 = vector.multi_reduction <maximumf>, %166, %cst_44 [2] : vector<2x8x8xf32> to vector<2x8xf32>
    %168 = vector.shape_cast %167 : vector<2x8xf32> to vector<2x8x1xf32>
    %169 = vector.broadcast %168 : vector<2x8x1xf32> to vector<2x8x8xf32>
    %170 = arith.subf %166, %169 : vector<2x8x8xf32>
    %171 = math.exp %170 : vector<2x8x8xf32>
    %cst_45 = arith.constant dense<0.000000e+00> : vector<2x8xf32>
    %172 = vector.multi_reduction <add>, %171, %cst_45 [2] : vector<2x8x8xf32> to vector<2x8xf32>
    %173 = vector.shape_cast %172 : vector<2x8xf32> to vector<2x8x1xf32>
    %174 = tpu.reciprocal %173 {approx = true} : vector<2x8x1xf32> -> vector<2x8x1xf32>
    %175 = vector.broadcast %174 : vector<2x8x1xf32> to vector<2x8x8xf32>
    %176 = arith.mulf %171, %175 : vector<2x8x8xf32>
    %177 = arith.truncf %176 : vector<2x8x8xf32> to vector<2x8x8xbf16>
    "tpu.trace_start"() <{level = 10 : i32, message = "bqk,bkd->bqd"}> : () -> ()
    %cst_46 = arith.constant dense<0.000000e+00> : vector<2x8x16xf32>
    %178 = tpu.matmul %177, %59, %cst_46 {dimension_numbers = #tpu.dot_dimension_numbers<[2], [1], [1], [2], [0, 0, 0, 1, 1, 2], [0], [0]>} : vector<2x8x8xbf16>, vector<2x8x16xbf16>, vector<2x8x16xf32> -> vector<2x8x16xf32>
    "tpu.trace_stop"() : () -> ()
    %179 = vector.shape_cast %178 : vector<2x8x16xf32> to vector<16x16xf32>
    %180 = tpu.concatenate %89, %119, %149, %179 in 1 : vector<16x16xf32>, vector<16x16xf32>, vector<16x16xf32>, vector<16x16xf32> -> vector<16x64xf32>
    %181 = arith.truncf %180 : vector<16x64xf32> to vector<16x64xbf16>
    %c0_47 = arith.constant 0 : index
    %c0_48 = arith.constant 0 : index
    %c0_49 = arith.constant 0 : index
    %182 = vector.load %arg10[%c0_47, %c0_48, %c0_49] : memref<2x64x64xbf16, #tpu.memory_space<vmem>>, vector<1x64x64xbf16>
    %183 = vector.shape_cast %182 : vector<1x64x64xbf16> to vector<64x64xbf16>
    %cst_50 = arith.constant dense<0.000000e+00> : vector<16x64xf32>
    %184 = tpu.matmul %181, %183, %cst_50 {dimension_numbers = #tpu.dot_dimension_numbers<[1], [0], [0], [1], [0, 0, 1, 1], [], []>} : vector<16x64xbf16>, vector<64x64xbf16>, vector<16x64xf32> -> vector<16x64xf32>
    %c0_51 = arith.constant 0 : index
    %c0_52 = arith.constant 0 : index
    %c0_53 = arith.constant 0 : index
    %185 = vector.load %arg11[%c0_51, %c0_52, %c0_53] : memref<2x64x64xbf16, #tpu.memory_space<vmem>>, vector<1x64x64xbf16>
    %186 = vector.shape_cast %185 : vector<1x64x64xbf16> to vector<64x64xbf16>
    %cst_54 = arith.constant dense<0.000000e+00> : vector<2x64xf32>
    %187 = tpu.matmul %2, %186, %cst_54 {dimension_numbers = #tpu.dot_dimension_numbers<[1], [0], [0], [1], [0, 0, 1, 1], [], []>} : vector<2x64xbf16>, vector<64x64xbf16>, vector<2x64xf32> -> vector<2x64xf32>
    %188 = vector.shape_cast %1 : vector<16x64xf32> to vector<2x8x64xf32>
    %189 = vector.shape_cast %184 : vector<16x64xf32> to vector<2x8x64xf32>
    %190 = arith.addf %188, %189 : vector<2x8x64xf32>
    %191 = vector.shape_cast %187 : vector<2x64xf32> to vector<2x1x64xf32>
    %192 = vector.broadcast %191 : vector<2x1x64xf32> to vector<2x8x64xf32>
    %193 = arith.addf %190, %192 : vector<2x8x64xf32>
    %194 = vector.shape_cast %193 : vector<2x8x64xf32> to vector<16x64xf32>
    %c0_55 = arith.constant 0 : index
    %c0_56 = arith.constant 0 : index
    %c0_57 = arith.constant 0 : index
    %195 = vector.load %arg12[%c0_55, %c0_56, %c0_57] : memref<2x1x64xf32, #tpu.memory_space<vmem>>, vector<1x1x64xf32>
    %196 = vector.shape_cast %195 : vector<1x1x64xf32> to vector<1x64xf32>
    %197 = arith.mulf %194, %194 : vector<16x64xf32>
    %cst_58 = arith.constant dense<0.000000e+00> : vector<16xf32>
    %198 = vector.multi_reduction <add>, %197, %cst_58 [1] : vector<16x64xf32> to vector<16xf32>
    %199 = vector.shape_cast %198 : vector<16xf32> to vector<16x1xf32>
    %cst_59 = arith.constant 6.400000e+01 : f32
    %200 = vector.broadcast %cst_59 : f32 to vector<16x1xf32>
    %201 = arith.divf %199, %200 : vector<16x1xf32>
    %cst_60 = arith.constant 9.99999974E-6 : f32
    %202 = vector.broadcast %cst_60 : f32 to vector<16x1xf32>
    %203 = arith.addf %201, %202 : vector<16x1xf32>
    %204 = math.rsqrt %203 : vector<16x1xf32>
    %205 = vector.broadcast %204 : vector<16x1xf32> to vector<16x64xf32>
    %206 = arith.mulf %194, %205 : vector<16x64xf32>
    %207 = vector.broadcast %196 : vector<1x64xf32> to vector<16x64xf32>
    %208 = arith.mulf %206, %207 : vector<16x64xf32>
    %209 = arith.truncf %208 : vector<16x64xf32> to vector<16x64xbf16>
    %c0_61 = arith.constant 0 : index
    %c0_62 = arith.constant 0 : index
    %c0_63 = arith.constant 0 : index
    %210 = vector.load %arg13[%c0_61, %c0_62, %c0_63] : memref<2x64x256xbf16, #tpu.memory_space<vmem>>, vector<1x64x256xbf16>
    %211 = vector.shape_cast %210 : vector<1x64x256xbf16> to vector<64x256xbf16>
    %cst_64 = arith.constant dense<0.000000e+00> : vector<16x256xf32>
    %212 = tpu.matmul %209, %211, %cst_64 {dimension_numbers = #tpu.dot_dimension_numbers<[1], [0], [0], [1], [0, 0, 1, 1], [], []>} : vector<16x64xbf16>, vector<64x256xbf16>, vector<16x256xf32> -> vector<16x256xf32>
    %c0_65 = arith.constant 0 : index
    %c0_66 = arith.constant 0 : index
    %c0_67 = arith.constant 0 : index
    %213 = vector.load %arg14[%c0_65, %c0_66, %c0_67] : memref<2x64x256xbf16, #tpu.memory_space<vmem>>, vector<1x64x256xbf16>
    %214 = vector.shape_cast %213 : vector<1x64x256xbf16> to vector<64x256xbf16>
    %cst_68 = arith.constant dense<0.000000e+00> : vector<16x256xf32>
    %215 = tpu.matmul %209, %214, %cst_68 {dimension_numbers = #tpu.dot_dimension_numbers<[1], [0], [0], [1], [0, 0, 1, 1], [], []>} : vector<16x64xbf16>, vector<64x256xbf16>, vector<16x256xf32> -> vector<16x256xf32>
    %216 = arith.negf %212 : vector<16x256xf32>
    %217 = math.exp %216 : vector<16x256xf32>
    %cst_69 = arith.constant 1.000000e+00 : f32
    %218 = vector.broadcast %cst_69 : f32 to vector<16x256xf32>
    %219 = arith.addf %218, %217 : vector<16x256xf32>
    %220 = arith.divf %218, %219 : vector<16x256xf32>
    %221 = arith.mulf %212, %220 : vector<16x256xf32>
    %222 = arith.mulf %221, %215 : vector<16x256xf32>
    %223 = arith.truncf %222 : vector<16x256xf32> to vector<16x256xbf16>
    %c0_70 = arith.constant 0 : index
    %c0_71 = arith.constant 0 : index
    %c0_72 = arith.constant 0 : index
    %224 = vector.load %arg15[%c0_70, %c0_71, %c0_72] : memref<2x256x64xbf16, #tpu.memory_space<vmem>>, vector<1x256x64xbf16>
    %225 = vector.shape_cast %224 : vector<1x256x64xbf16> to vector<256x64xbf16>
    %cst_73 = arith.constant dense<0.000000e+00> : vector<16x64xf32>
    %226 = tpu.matmul %223, %225, %cst_73 {dimension_numbers = #tpu.dot_dimension_numbers<[1], [0], [0], [1], [0, 0, 1, 1], [], []>} : vector<16x256xbf16>, vector<256x64xbf16>, vector<16x64xf32> -> vector<16x64xf32>
    %227 = arith.addf %194, %226 : vector<16x64xf32>
    %c1 = arith.constant 1 : index
    %c0_74 = arith.constant 0 : index
    %c0_75 = arith.constant 0 : index
    %228 = vector.load %arg6[%c1, %c0_74, %c0_75] : memref<2x1x64xf32, #tpu.memory_space<vmem>>, vector<1x1x64xf32>
    %229 = vector.shape_cast %228 : vector<1x1x64xf32> to vector<1x64xf32>
    %230 = arith.mulf %227, %227 : vector<16x64xf32>
    %cst_76 = arith.constant dense<0.000000e+00> : vector<16xf32>
    %231 = vector.multi_reduction <add>, %230, %cst_76 [1] : vector<16x64xf32> to vector<16xf32>
    %232 = vector.shape_cast %231 : vector<16xf32> to vector<16x1xf32>
    %cst_77 = arith.constant 6.400000e+01 : f32
    %233 = vector.broadcast %cst_77 : f32 to vector<16x1xf32>
    %234 = arith.divf %232, %233 : vector<16x1xf32>
    %cst_78 = arith.constant 9.99999974E-6 : f32
    %235 = vector.broadcast %cst_78 : f32 to vector<16x1xf32>
    %236 = arith.addf %234, %235 : vector<16x1xf32>
    %237 = math.rsqrt %236 : vector<16x1xf32>
    %238 = vector.broadcast %237 : vector<16x1xf32> to vector<16x64xf32>
    %239 = arith.mulf %227, %238 : vector<16x64xf32>
    %240 = vector.broadcast %229 : vector<1x64xf32> to vector<16x64xf32>
    %241 = arith.mulf %239, %240 : vector<16x64xf32>
    %242 = arith.truncf %241 : vector<16x64xf32> to vector<16x64xbf16>
    %c1_79 = arith.constant 1 : index
    %c0_80 = arith.constant 0 : index
    %c0_81 = arith.constant 0 : index
    %243 = vector.load %arg7[%c1_79, %c0_80, %c0_81] : memref<2x64x64xbf16, #tpu.memory_space<vmem>>, vector<1x64x64xbf16>
    %244 = vector.shape_cast %243 : vector<1x64x64xbf16> to vector<64x64xbf16>
    %cst_82 = arith.constant dense<0.000000e+00> : vector<16x64xf32>
    %245 = tpu.matmul %242, %244, %cst_82 {dimension_numbers = #tpu.dot_dimension_numbers<[1], [0], [0], [1], [0, 0, 1, 1], [], []>} : vector<16x64xbf16>, vector<64x64xbf16>, vector<16x64xf32> -> vector<16x64xf32>
    %c1_83 = arith.constant 1 : index
    %c0_84 = arith.constant 0 : index
    %c0_85 = arith.constant 0 : index
    %246 = vector.load %arg8[%c1_83, %c0_84, %c0_85] : memref<2x64x32xbf16, #tpu.memory_space<vmem>>, vector<1x64x32xbf16>
    %247 = vector.shape_cast %246 : vector<1x64x32xbf16> to vector<64x32xbf16>
    %cst_86 = arith.constant dense<0.000000e+00> : vector<16x32xf32>
    %248 = tpu.matmul %242, %247, %cst_86 {dimension_numbers = #tpu.dot_dimension_numbers<[1], [0], [0], [1], [0, 0, 1, 1], [], []>} : vector<16x64xbf16>, vector<64x32xbf16>, vector<16x32xf32> -> vector<16x32xf32>
    %c1_87 = arith.constant 1 : index
    %c0_88 = arith.constant 0 : index
    %c0_89 = arith.constant 0 : index
    %249 = vector.load %arg9[%c1_87, %c0_88, %c0_89] : memref<2x64x32xbf16, #tpu.memory_space<vmem>>, vector<1x64x32xbf16>
    %250 = vector.shape_cast %249 : vector<1x64x32xbf16> to vector<64x32xbf16>
    %cst_90 = arith.constant dense<0.000000e+00> : vector<16x32xf32>
    %251 = tpu.matmul %242, %250, %cst_90 {dimension_numbers = #tpu.dot_dimension_numbers<[1], [0], [0], [1], [0, 0, 1, 1], [], []>} : vector<16x64xbf16>, vector<64x32xbf16>, vector<16x32xf32> -> vector<16x32xf32>
    %252 = vector.extract_strided_slice %248 {offsets = [0, 0], sizes = [16, 16], strides = [1, 1]} : vector<16x32xf32> to vector<16x16xf32>
    %253 = vector.extract_strided_slice %252 {offsets = [0, 0], sizes = [16, 8], strides = [1, 1]} : vector<16x16xf32> to vector<16x8xf32>
    %254 = vector.extract_strided_slice %252 {offsets = [0, 8], sizes = [16, 8], strides = [1, 1]} : vector<16x16xf32> to vector<16x8xf32>
    %255 = arith.mulf %253, %4 : vector<16x8xf32>
    %256 = arith.mulf %254, %5 : vector<16x8xf32>
    %257 = arith.subf %255, %256 : vector<16x8xf32>
    %258 = arith.mulf %254, %4 : vector<16x8xf32>
    %259 = arith.mulf %253, %5 : vector<16x8xf32>
    %260 = arith.addf %258, %259 : vector<16x8xf32>
    %261 = tpu.concatenate %257, %260 in 1 : vector<16x8xf32>, vector<16x8xf32> -> vector<16x16xf32>
    %262 = vector.shape_cast %261 : vector<16x16xf32> to vector<2x8x16xf32>
    %263 = arith.truncf %262 : vector<2x8x16xf32> to vector<2x8x16xbf16>
    %264 = vector.extract_strided_slice %251 {offsets = [0, 0], sizes = [16, 16], strides = [1, 1]} : vector<16x32xf32> to vector<16x16xf32>
    %265 = vector.shape_cast %264 : vector<16x16xf32> to vector<2x8x16xf32>
    %266 = arith.truncf %265 : vector<2x8x16xf32> to vector<2x8x16xbf16>
    %267 = vector.extract_strided_slice %248 {offsets = [0, 16], sizes = [16, 16], strides = [1, 1]} : vector<16x32xf32> to vector<16x16xf32>
    %268 = vector.extract_strided_slice %267 {offsets = [0, 0], sizes = [16, 8], strides = [1, 1]} : vector<16x16xf32> to vector<16x8xf32>
    %269 = vector.extract_strided_slice %267 {offsets = [0, 8], sizes = [16, 8], strides = [1, 1]} : vector<16x16xf32> to vector<16x8xf32>
    %270 = arith.mulf %268, %4 : vector<16x8xf32>
    %271 = arith.mulf %269, %5 : vector<16x8xf32>
    %272 = arith.subf %270, %271 : vector<16x8xf32>
    %273 = arith.mulf %269, %4 : vector<16x8xf32>
    %274 = arith.mulf %268, %5 : vector<16x8xf32>
    %275 = arith.addf %273, %274 : vector<16x8xf32>
    %276 = tpu.concatenate %272, %275 in 1 : vector<16x8xf32>, vector<16x8xf32> -> vector<16x16xf32>
    %277 = vector.shape_cast %276 : vector<16x16xf32> to vector<2x8x16xf32>
    %278 = arith.truncf %277 : vector<2x8x16xf32> to vector<2x8x16xbf16>
    %279 = vector.extract_strided_slice %251 {offsets = [0, 16], sizes = [16, 16], strides = [1, 1]} : vector<16x32xf32> to vector<16x16xf32>
    %280 = vector.shape_cast %279 : vector<16x16xf32> to vector<2x8x16xf32>
    %281 = arith.truncf %280 : vector<2x8x16xf32> to vector<2x8x16xbf16>
    %282 = vector.extract_strided_slice %245 {offsets = [0, 0], sizes = [16, 16], strides = [1, 1]} : vector<16x64xf32> to vector<16x16xf32>
    %283 = vector.extract_strided_slice %282 {offsets = [0, 0], sizes = [16, 8], strides = [1, 1]} : vector<16x16xf32> to vector<16x8xf32>
    %284 = vector.extract_strided_slice %282 {offsets = [0, 8], sizes = [16, 8], strides = [1, 1]} : vector<16x16xf32> to vector<16x8xf32>
    %285 = arith.mulf %283, %4 : vector<16x8xf32>
    %286 = arith.mulf %284, %5 : vector<16x8xf32>
    %287 = arith.subf %285, %286 : vector<16x8xf32>
    %288 = arith.mulf %284, %4 : vector<16x8xf32>
    %289 = arith.mulf %283, %5 : vector<16x8xf32>
    %290 = arith.addf %288, %289 : vector<16x8xf32>
    %291 = tpu.concatenate %287, %290 in 1 : vector<16x8xf32>, vector<16x8xf32> -> vector<16x16xf32>
    %cst_91 = arith.constant 2.500000e-01 : f32
    %292 = vector.broadcast %cst_91 : f32 to vector<16x16xf32>
    %293 = arith.mulf %291, %292 : vector<16x16xf32>
    %294 = vector.shape_cast %293 : vector<16x16xf32> to vector<2x8x16xf32>
    %295 = arith.truncf %294 : vector<2x8x16xf32> to vector<2x8x16xbf16>
    "tpu.trace_start"() <{level = 10 : i32, message = "bqd,bkd->bqk"}> : () -> ()
    %cst_92 = arith.constant dense<0.000000e+00> : vector<2x8x8xf32>
    %296 = tpu.matmul %295, %263, %cst_92 {dimension_numbers = #tpu.dot_dimension_numbers<[2], [2], [1], [1], [0, 0, 0, 1, 1, 1], [0], [0]>} : vector<2x8x16xbf16>, vector<2x8x16xbf16>, vector<2x8x8xf32> -> vector<2x8x8xf32>
    "tpu.trace_stop"() : () -> ()
    %297 = vector.broadcast %3 : vector<1x8x8xf32> to vector<2x8x8xf32>
    %298 = arith.addf %296, %297 : vector<2x8x8xf32>
    %cst_93 = arith.constant dense<0xFF800000> : vector<2x8xf32>
    %299 = vector.multi_reduction <maximumf>, %298, %cst_93 [2] : vector<2x8x8xf32> to vector<2x8xf32>
    %300 = vector.shape_cast %299 : vector<2x8xf32> to vector<2x8x1xf32>
    %301 = vector.broadcast %300 : vector<2x8x1xf32> to vector<2x8x8xf32>
    %302 = arith.subf %298, %301 : vector<2x8x8xf32>
    %303 = math.exp %302 : vector<2x8x8xf32>
    %cst_94 = arith.constant dense<0.000000e+00> : vector<2x8xf32>
    %304 = vector.multi_reduction <add>, %303, %cst_94 [2] : vector<2x8x8xf32> to vector<2x8xf32>
    %305 = vector.shape_cast %304 : vector<2x8xf32> to vector<2x8x1xf32>
    %306 = tpu.reciprocal %305 {approx = true} : vector<2x8x1xf32> -> vector<2x8x1xf32>
    %307 = vector.broadcast %306 : vector<2x8x1xf32> to vector<2x8x8xf32>
    %308 = arith.mulf %303, %307 : vector<2x8x8xf32>
    %309 = arith.truncf %308 : vector<2x8x8xf32> to vector<2x8x8xbf16>
    "tpu.trace_start"() <{level = 10 : i32, message = "bqk,bkd->bqd"}> : () -> ()
    %cst_95 = arith.constant dense<0.000000e+00> : vector<2x8x16xf32>
    %310 = tpu.matmul %309, %266, %cst_95 {dimension_numbers = #tpu.dot_dimension_numbers<[2], [1], [1], [2], [0, 0, 0, 1, 1, 2], [0], [0]>} : vector<2x8x8xbf16>, vector<2x8x16xbf16>, vector<2x8x16xf32> -> vector<2x8x16xf32>
    "tpu.trace_stop"() : () -> ()
    %311 = vector.shape_cast %310 : vector<2x8x16xf32> to vector<16x16xf32>
    %312 = vector.extract_strided_slice %245 {offsets = [0, 16], sizes = [16, 16], strides = [1, 1]} : vector<16x64xf32> to vector<16x16xf32>
    %313 = vector.extract_strided_slice %312 {offsets = [0, 0], sizes = [16, 8], strides = [1, 1]} : vector<16x16xf32> to vector<16x8xf32>
    %314 = vector.extract_strided_slice %312 {offsets = [0, 8], sizes = [16, 8], strides = [1, 1]} : vector<16x16xf32> to vector<16x8xf32>
    %315 = arith.mulf %313, %4 : vector<16x8xf32>
    %316 = arith.mulf %314, %5 : vector<16x8xf32>
    %317 = arith.subf %315, %316 : vector<16x8xf32>
    %318 = arith.mulf %314, %4 : vector<16x8xf32>
    %319 = arith.mulf %313, %5 : vector<16x8xf32>
    %320 = arith.addf %318, %319 : vector<16x8xf32>
    %321 = tpu.concatenate %317, %320 in 1 : vector<16x8xf32>, vector<16x8xf32> -> vector<16x16xf32>
    %cst_96 = arith.constant 2.500000e-01 : f32
    %322 = vector.broadcast %cst_96 : f32 to vector<16x16xf32>
    %323 = arith.mulf %321, %322 : vector<16x16xf32>
    %324 = vector.shape_cast %323 : vector<16x16xf32> to vector<2x8x16xf32>
    %325 = arith.truncf %324 : vector<2x8x16xf32> to vector<2x8x16xbf16>
    "tpu.trace_start"() <{level = 10 : i32, message = "bqd,bkd->bqk"}> : () -> ()
    %cst_97 = arith.constant dense<0.000000e+00> : vector<2x8x8xf32>
    %326 = tpu.matmul %325, %263, %cst_97 {dimension_numbers = #tpu.dot_dimension_numbers<[2], [2], [1], [1], [0, 0, 0, 1, 1, 1], [0], [0]>} : vector<2x8x16xbf16>, vector<2x8x16xbf16>, vector<2x8x8xf32> -> vector<2x8x8xf32>
    "tpu.trace_stop"() : () -> ()
    %327 = vector.broadcast %3 : vector<1x8x8xf32> to vector<2x8x8xf32>
    %328 = arith.addf %326, %327 : vector<2x8x8xf32>
    %cst_98 = arith.constant dense<0xFF800000> : vector<2x8xf32>
    %329 = vector.multi_reduction <maximumf>, %328, %cst_98 [2] : vector<2x8x8xf32> to vector<2x8xf32>
    %330 = vector.shape_cast %329 : vector<2x8xf32> to vector<2x8x1xf32>
    %331 = vector.broadcast %330 : vector<2x8x1xf32> to vector<2x8x8xf32>
    %332 = arith.subf %328, %331 : vector<2x8x8xf32>
    %333 = math.exp %332 : vector<2x8x8xf32>
    %cst_99 = arith.constant dense<0.000000e+00> : vector<2x8xf32>
    %334 = vector.multi_reduction <add>, %333, %cst_99 [2] : vector<2x8x8xf32> to vector<2x8xf32>
    %335 = vector.shape_cast %334 : vector<2x8xf32> to vector<2x8x1xf32>
    %336 = tpu.reciprocal %335 {approx = true} : vector<2x8x1xf32> -> vector<2x8x1xf32>
    %337 = vector.broadcast %336 : vector<2x8x1xf32> to vector<2x8x8xf32>
    %338 = arith.mulf %333, %337 : vector<2x8x8xf32>
    %339 = arith.truncf %338 : vector<2x8x8xf32> to vector<2x8x8xbf16>
    "tpu.trace_start"() <{level = 10 : i32, message = "bqk,bkd->bqd"}> : () -> ()
    %cst_100 = arith.constant dense<0.000000e+00> : vector<2x8x16xf32>
    %340 = tpu.matmul %339, %266, %cst_100 {dimension_numbers = #tpu.dot_dimension_numbers<[2], [1], [1], [2], [0, 0, 0, 1, 1, 2], [0], [0]>} : vector<2x8x8xbf16>, vector<2x8x16xbf16>, vector<2x8x16xf32> -> vector<2x8x16xf32>
    "tpu.trace_stop"() : () -> ()
    %341 = vector.shape_cast %340 : vector<2x8x16xf32> to vector<16x16xf32>
    %342 = vector.extract_strided_slice %245 {offsets = [0, 32], sizes = [16, 16], strides = [1, 1]} : vector<16x64xf32> to vector<16x16xf32>
    %343 = vector.extract_strided_slice %342 {offsets = [0, 0], sizes = [16, 8], strides = [1, 1]} : vector<16x16xf32> to vector<16x8xf32>
    %344 = vector.extract_strided_slice %342 {offsets = [0, 8], sizes = [16, 8], strides = [1, 1]} : vector<16x16xf32> to vector<16x8xf32>
    %345 = arith.mulf %343, %4 : vector<16x8xf32>
    %346 = arith.mulf %344, %5 : vector<16x8xf32>
    %347 = arith.subf %345, %346 : vector<16x8xf32>
    %348 = arith.mulf %344, %4 : vector<16x8xf32>
    %349 = arith.mulf %343, %5 : vector<16x8xf32>
    %350 = arith.addf %348, %349 : vector<16x8xf32>
    %351 = tpu.concatenate %347, %350 in 1 : vector<16x8xf32>, vector<16x8xf32> -> vector<16x16xf32>
    %cst_101 = arith.constant 2.500000e-01 : f32
    %352 = vector.broadcast %cst_101 : f32 to vector<16x16xf32>
    %353 = arith.mulf %351, %352 : vector<16x16xf32>
    %354 = vector.shape_cast %353 : vector<16x16xf32> to vector<2x8x16xf32>
    %355 = arith.truncf %354 : vector<2x8x16xf32> to vector<2x8x16xbf16>
    "tpu.trace_start"() <{level = 10 : i32, message = "bqd,bkd->bqk"}> : () -> ()
    %cst_102 = arith.constant dense<0.000000e+00> : vector<2x8x8xf32>
    %356 = tpu.matmul %355, %278, %cst_102 {dimension_numbers = #tpu.dot_dimension_numbers<[2], [2], [1], [1], [0, 0, 0, 1, 1, 1], [0], [0]>} : vector<2x8x16xbf16>, vector<2x8x16xbf16>, vector<2x8x8xf32> -> vector<2x8x8xf32>
    "tpu.trace_stop"() : () -> ()
    %357 = vector.broadcast %3 : vector<1x8x8xf32> to vector<2x8x8xf32>
    %358 = arith.addf %356, %357 : vector<2x8x8xf32>
    %cst_103 = arith.constant dense<0xFF800000> : vector<2x8xf32>
    %359 = vector.multi_reduction <maximumf>, %358, %cst_103 [2] : vector<2x8x8xf32> to vector<2x8xf32>
    %360 = vector.shape_cast %359 : vector<2x8xf32> to vector<2x8x1xf32>
    %361 = vector.broadcast %360 : vector<2x8x1xf32> to vector<2x8x8xf32>
    %362 = arith.subf %358, %361 : vector<2x8x8xf32>
    %363 = math.exp %362 : vector<2x8x8xf32>
    %cst_104 = arith.constant dense<0.000000e+00> : vector<2x8xf32>
    %364 = vector.multi_reduction <add>, %363, %cst_104 [2] : vector<2x8x8xf32> to vector<2x8xf32>
    %365 = vector.shape_cast %364 : vector<2x8xf32> to vector<2x8x1xf32>
    %366 = tpu.reciprocal %365 {approx = true} : vector<2x8x1xf32> -> vector<2x8x1xf32>
    %367 = vector.broadcast %366 : vector<2x8x1xf32> to vector<2x8x8xf32>
    %368 = arith.mulf %363, %367 : vector<2x8x8xf32>
    %369 = arith.truncf %368 : vector<2x8x8xf32> to vector<2x8x8xbf16>
    "tpu.trace_start"() <{level = 10 : i32, message = "bqk,bkd->bqd"}> : () -> ()
    %cst_105 = arith.constant dense<0.000000e+00> : vector<2x8x16xf32>
    %370 = tpu.matmul %369, %281, %cst_105 {dimension_numbers = #tpu.dot_dimension_numbers<[2], [1], [1], [2], [0, 0, 0, 1, 1, 2], [0], [0]>} : vector<2x8x8xbf16>, vector<2x8x16xbf16>, vector<2x8x16xf32> -> vector<2x8x16xf32>
    "tpu.trace_stop"() : () -> ()
    %371 = vector.shape_cast %370 : vector<2x8x16xf32> to vector<16x16xf32>
    %372 = vector.extract_strided_slice %245 {offsets = [0, 48], sizes = [16, 16], strides = [1, 1]} : vector<16x64xf32> to vector<16x16xf32>
    %373 = vector.extract_strided_slice %372 {offsets = [0, 0], sizes = [16, 8], strides = [1, 1]} : vector<16x16xf32> to vector<16x8xf32>
    %374 = vector.extract_strided_slice %372 {offsets = [0, 8], sizes = [16, 8], strides = [1, 1]} : vector<16x16xf32> to vector<16x8xf32>
    %375 = arith.mulf %373, %4 : vector<16x8xf32>
    %376 = arith.mulf %374, %5 : vector<16x8xf32>
    %377 = arith.subf %375, %376 : vector<16x8xf32>
    %378 = arith.mulf %374, %4 : vector<16x8xf32>
    %379 = arith.mulf %373, %5 : vector<16x8xf32>
    %380 = arith.addf %378, %379 : vector<16x8xf32>
    %381 = tpu.concatenate %377, %380 in 1 : vector<16x8xf32>, vector<16x8xf32> -> vector<16x16xf32>
    %cst_106 = arith.constant 2.500000e-01 : f32
    %382 = vector.broadcast %cst_106 : f32 to vector<16x16xf32>
    %383 = arith.mulf %381, %382 : vector<16x16xf32>
    %384 = vector.shape_cast %383 : vector<16x16xf32> to vector<2x8x16xf32>
    %385 = arith.truncf %384 : vector<2x8x16xf32> to vector<2x8x16xbf16>
    "tpu.trace_start"() <{level = 10 : i32, message = "bqd,bkd->bqk"}> : () -> ()
    %cst_107 = arith.constant dense<0.000000e+00> : vector<2x8x8xf32>
    %386 = tpu.matmul %385, %278, %cst_107 {dimension_numbers = #tpu.dot_dimension_numbers<[2], [2], [1], [1], [0, 0, 0, 1, 1, 1], [0], [0]>} : vector<2x8x16xbf16>, vector<2x8x16xbf16>, vector<2x8x8xf32> -> vector<2x8x8xf32>
    "tpu.trace_stop"() : () -> ()
    %387 = vector.broadcast %3 : vector<1x8x8xf32> to vector<2x8x8xf32>
    %388 = arith.addf %386, %387 : vector<2x8x8xf32>
    %cst_108 = arith.constant dense<0xFF800000> : vector<2x8xf32>
    %389 = vector.multi_reduction <maximumf>, %388, %cst_108 [2] : vector<2x8x8xf32> to vector<2x8xf32>
    %390 = vector.shape_cast %389 : vector<2x8xf32> to vector<2x8x1xf32>
    %391 = vector.broadcast %390 : vector<2x8x1xf32> to vector<2x8x8xf32>
    %392 = arith.subf %388, %391 : vector<2x8x8xf32>
    %393 = math.exp %392 : vector<2x8x8xf32>
    %cst_109 = arith.constant dense<0.000000e+00> : vector<2x8xf32>
    %394 = vector.multi_reduction <add>, %393, %cst_109 [2] : vector<2x8x8xf32> to vector<2x8xf32>
    %395 = vector.shape_cast %394 : vector<2x8xf32> to vector<2x8x1xf32>
    %396 = tpu.reciprocal %395 {approx = true} : vector<2x8x1xf32> -> vector<2x8x1xf32>
    %397 = vector.broadcast %396 : vector<2x8x1xf32> to vector<2x8x8xf32>
    %398 = arith.mulf %393, %397 : vector<2x8x8xf32>
    %399 = arith.truncf %398 : vector<2x8x8xf32> to vector<2x8x8xbf16>
    "tpu.trace_start"() <{level = 10 : i32, message = "bqk,bkd->bqd"}> : () -> ()
    %cst_110 = arith.constant dense<0.000000e+00> : vector<2x8x16xf32>
    %400 = tpu.matmul %399, %281, %cst_110 {dimension_numbers = #tpu.dot_dimension_numbers<[2], [1], [1], [2], [0, 0, 0, 1, 1, 2], [0], [0]>} : vector<2x8x8xbf16>, vector<2x8x16xbf16>, vector<2x8x16xf32> -> vector<2x8x16xf32>
    "tpu.trace_stop"() : () -> ()
    %401 = vector.shape_cast %400 : vector<2x8x16xf32> to vector<16x16xf32>
    %402 = tpu.concatenate %311, %341, %371, %401 in 1 : vector<16x16xf32>, vector<16x16xf32>, vector<16x16xf32>, vector<16x16xf32> -> vector<16x64xf32>
    %403 = arith.truncf %402 : vector<16x64xf32> to vector<16x64xbf16>
    %c1_111 = arith.constant 1 : index
    %c0_112 = arith.constant 0 : index
    %c0_113 = arith.constant 0 : index
    %404 = vector.load %arg10[%c1_111, %c0_112, %c0_113] : memref<2x64x64xbf16, #tpu.memory_space<vmem>>, vector<1x64x64xbf16>
    %405 = vector.shape_cast %404 : vector<1x64x64xbf16> to vector<64x64xbf16>
    %cst_114 = arith.constant dense<0.000000e+00> : vector<16x64xf32>
    %406 = tpu.matmul %403, %405, %cst_114 {dimension_numbers = #tpu.dot_dimension_numbers<[1], [0], [0], [1], [0, 0, 1, 1], [], []>} : vector<16x64xbf16>, vector<64x64xbf16>, vector<16x64xf32> -> vector<16x64xf32>
    %c1_115 = arith.constant 1 : index
    %c0_116 = arith.constant 0 : index
    %c0_117 = arith.constant 0 : index
    %407 = vector.load %arg11[%c1_115, %c0_116, %c0_117] : memref<2x64x64xbf16, #tpu.memory_space<vmem>>, vector<1x64x64xbf16>
    %408 = vector.shape_cast %407 : vector<1x64x64xbf16> to vector<64x64xbf16>
    %cst_118 = arith.constant dense<0.000000e+00> : vector<2x64xf32>
    %409 = tpu.matmul %2, %408, %cst_118 {dimension_numbers = #tpu.dot_dimension_numbers<[1], [0], [0], [1], [0, 0, 1, 1], [], []>} : vector<2x64xbf16>, vector<64x64xbf16>, vector<2x64xf32> -> vector<2x64xf32>
    %410 = vector.shape_cast %227 : vector<16x64xf32> to vector<2x8x64xf32>
    %411 = vector.shape_cast %406 : vector<16x64xf32> to vector<2x8x64xf32>
    %412 = arith.addf %410, %411 : vector<2x8x64xf32>
    %413 = vector.shape_cast %409 : vector<2x64xf32> to vector<2x1x64xf32>
    %414 = vector.broadcast %413 : vector<2x1x64xf32> to vector<2x8x64xf32>
    %415 = arith.addf %412, %414 : vector<2x8x64xf32>
    %416 = vector.shape_cast %415 : vector<2x8x64xf32> to vector<16x64xf32>
    %c1_119 = arith.constant 1 : index
    %c0_120 = arith.constant 0 : index
    %c0_121 = arith.constant 0 : index
    %417 = vector.load %arg12[%c1_119, %c0_120, %c0_121] : memref<2x1x64xf32, #tpu.memory_space<vmem>>, vector<1x1x64xf32>
    %418 = vector.shape_cast %417 : vector<1x1x64xf32> to vector<1x64xf32>
    %419 = arith.mulf %416, %416 : vector<16x64xf32>
    %cst_122 = arith.constant dense<0.000000e+00> : vector<16xf32>
    %420 = vector.multi_reduction <add>, %419, %cst_122 [1] : vector<16x64xf32> to vector<16xf32>
    %421 = vector.shape_cast %420 : vector<16xf32> to vector<16x1xf32>
    %cst_123 = arith.constant 6.400000e+01 : f32
    %422 = vector.broadcast %cst_123 : f32 to vector<16x1xf32>
    %423 = arith.divf %421, %422 : vector<16x1xf32>
    %cst_124 = arith.constant 9.99999974E-6 : f32
    %424 = vector.broadcast %cst_124 : f32 to vector<16x1xf32>
    %425 = arith.addf %423, %424 : vector<16x1xf32>
    %426 = math.rsqrt %425 : vector<16x1xf32>
    %427 = vector.broadcast %426 : vector<16x1xf32> to vector<16x64xf32>
    %428 = arith.mulf %416, %427 : vector<16x64xf32>
    %429 = vector.broadcast %418 : vector<1x64xf32> to vector<16x64xf32>
    %430 = arith.mulf %428, %429 : vector<16x64xf32>
    %431 = arith.truncf %430 : vector<16x64xf32> to vector<16x64xbf16>
    %c1_125 = arith.constant 1 : index
    %c0_126 = arith.constant 0 : index
    %c0_127 = arith.constant 0 : index
    %432 = vector.load %arg13[%c1_125, %c0_126, %c0_127] : memref<2x64x256xbf16, #tpu.memory_space<vmem>>, vector<1x64x256xbf16>
    %433 = vector.shape_cast %432 : vector<1x64x256xbf16> to vector<64x256xbf16>
    %cst_128 = arith.constant dense<0.000000e+00> : vector<16x256xf32>
    %434 = tpu.matmul %431, %433, %cst_128 {dimension_numbers = #tpu.dot_dimension_numbers<[1], [0], [0], [1], [0, 0, 1, 1], [], []>} : vector<16x64xbf16>, vector<64x256xbf16>, vector<16x256xf32> -> vector<16x256xf32>
    %c1_129 = arith.constant 1 : index
    %c0_130 = arith.constant 0 : index
    %c0_131 = arith.constant 0 : index
    %435 = vector.load %arg14[%c1_129, %c0_130, %c0_131] : memref<2x64x256xbf16, #tpu.memory_space<vmem>>, vector<1x64x256xbf16>
    %436 = vector.shape_cast %435 : vector<1x64x256xbf16> to vector<64x256xbf16>
    %cst_132 = arith.constant dense<0.000000e+00> : vector<16x256xf32>
    %437 = tpu.matmul %431, %436, %cst_132 {dimension_numbers = #tpu.dot_dimension_numbers<[1], [0], [0], [1], [0, 0, 1, 1], [], []>} : vector<16x64xbf16>, vector<64x256xbf16>, vector<16x256xf32> -> vector<16x256xf32>
    %438 = arith.negf %434 : vector<16x256xf32>
    %439 = math.exp %438 : vector<16x256xf32>
    %cst_133 = arith.constant 1.000000e+00 : f32
    %440 = vector.broadcast %cst_133 : f32 to vector<16x256xf32>
    %441 = arith.addf %440, %439 : vector<16x256xf32>
    %442 = arith.divf %440, %441 : vector<16x256xf32>
    %443 = arith.mulf %434, %442 : vector<16x256xf32>
    %444 = arith.mulf %443, %437 : vector<16x256xf32>
    %445 = arith.truncf %444 : vector<16x256xf32> to vector<16x256xbf16>
    %c1_134 = arith.constant 1 : index
    %c0_135 = arith.constant 0 : index
    %c0_136 = arith.constant 0 : index
    %446 = vector.load %arg15[%c1_134, %c0_135, %c0_136] : memref<2x256x64xbf16, #tpu.memory_space<vmem>>, vector<1x256x64xbf16>
    %447 = vector.shape_cast %446 : vector<1x256x64xbf16> to vector<256x64xbf16>
    %cst_137 = arith.constant dense<0.000000e+00> : vector<16x64xf32>
    %448 = tpu.matmul %445, %447, %cst_137 {dimension_numbers = #tpu.dot_dimension_numbers<[1], [0], [0], [1], [0, 0, 1, 1], [], []>} : vector<16x256xbf16>, vector<256x64xbf16>, vector<16x64xf32> -> vector<16x64xf32>
    %449 = arith.addf %416, %448 : vector<16x64xf32>
    %c0_138 = arith.constant 0 : index
    %c0_139 = arith.constant 0 : index
    %450 = vector.load %arg16[%c0_138, %c0_139] : memref<1x64xf32, #tpu.memory_space<vmem>>, vector<1x64xf32>
    %451 = arith.mulf %449, %449 : vector<16x64xf32>
    %cst_140 = arith.constant dense<0.000000e+00> : vector<16xf32>
    %452 = vector.multi_reduction <add>, %451, %cst_140 [1] : vector<16x64xf32> to vector<16xf32>
    %453 = vector.shape_cast %452 : vector<16xf32> to vector<16x1xf32>
    %cst_141 = arith.constant 6.400000e+01 : f32
    %454 = vector.broadcast %cst_141 : f32 to vector<16x1xf32>
    %455 = arith.divf %453, %454 : vector<16x1xf32>
    %cst_142 = arith.constant 9.99999974E-6 : f32
    %456 = vector.broadcast %cst_142 : f32 to vector<16x1xf32>
    %457 = arith.addf %455, %456 : vector<16x1xf32>
    %458 = math.rsqrt %457 : vector<16x1xf32>
    %459 = vector.broadcast %458 : vector<16x1xf32> to vector<16x64xf32>
    %460 = arith.mulf %449, %459 : vector<16x64xf32>
    %461 = vector.broadcast %450 : vector<1x64xf32> to vector<16x64xf32>
    %462 = arith.mulf %460, %461 : vector<16x64xf32>
    %463 = arith.truncf %462 : vector<16x64xf32> to vector<16x64xbf16>
    %c0_143 = arith.constant 0 : index
    %c0_144 = arith.constant 0 : index
    %464 = vector.load %arg17[%c0_143, %c0_144] : memref<64x128xbf16, #tpu.memory_space<vmem>>, vector<64x128xbf16>
    %cst_145 = arith.constant dense<0.000000e+00> : vector<16x128xf32>
    %465 = tpu.matmul %463, %464, %cst_145 {dimension_numbers = #tpu.dot_dimension_numbers<[1], [0], [0], [1], [0, 0, 1, 1], [], []>} : vector<16x64xbf16>, vector<64x128xbf16>, vector<16x128xf32> -> vector<16x128xf32>
    %c0_146 = arith.constant 0 : index
    %c0_147 = arith.constant 0 : index
    %466 = vector.load %arg18[%c0_146, %c0_147] : memref<16x128xf32, #tpu.memory_space<vmem>>, vector<16x128xf32>
    tpu.vector_store %arg18[%c0_146, %c0_147], %465 {strides = array<i32>} : memref<16x128xf32, #tpu.memory_space<vmem>>, vector<16x128xf32>,
    return
  }
  func.func @transform_0(%arg0: i32) -> (i32, i32) {
    %c0_i32 = arith.constant 0 : i32
    %c0_i32_0 = arith.constant 0 : i32
    %c0_i32_1 = arith.constant 0 : i32
    return %c0_i32, %c0_i32_0 : i32, i32
  }
  func.func @transform_1(%arg0: i32) -> (i32, i32) {
    %c0_i32 = arith.constant 0 : i32
    %c0_i32_0 = arith.constant 0 : i32
    %c0_i32_1 = arith.constant 0 : i32
    return %c0_i32, %c0_i32_0 : i32, i32
  }
  func.func @transform_2(%arg0: i32) -> (i32, i32, i32) {
    %c0_i32 = arith.constant 0 : i32
    %c0_i32_0 = arith.constant 0 : i32
    %c0_i32_1 = arith.constant 0 : i32
    %c0_i32_2 = arith.constant 0 : i32
    return %c0_i32, %c0_i32_0, %c0_i32_1 : i32, i32, i32
  }
  func.func @transform_3(%arg0: i32) -> (i32, i32) {
    %c0_i32 = arith.constant 0 : i32
    %c0_i32_0 = arith.constant 0 : i32
    %c0_i32_1 = arith.constant 0 : i32
    return %c0_i32, %c0_i32_0 : i32, i32
  }
  func.func @transform_4(%arg0: i32) -> (i32, i32) {
    %c0_i32 = arith.constant 0 : i32
    %c0_i32_0 = arith.constant 0 : i32
    %c0_i32_1 = arith.constant 0 : i32
    return %c0_i32, %c0_i32_0 : i32, i32
  }
  func.func @transform_5(%arg0: i32) -> (i32, i32, i32) {
    %c0_i32 = arith.constant 0 : i32
    %c0_i32_0 = arith.constant 0 : i32
    %c0_i32_1 = arith.constant 0 : i32
    %c0_i32_2 = arith.constant 0 : i32
    return %c0_i32, %c0_i32_0, %c0_i32_1 : i32, i32, i32
  }
  func.func @transform_6(%arg0: i32) -> (i32, i32, i32) {
    %c0_i32 = arith.constant 0 : i32
    %c0_i32_0 = arith.constant 0 : i32
    %c0_i32_1 = arith.constant 0 : i32
    %c0_i32_2 = arith.constant 0 : i32
    return %c0_i32, %c0_i32_0, %c0_i32_1 : i32, i32, i32
  }
  func.func @transform_7(%arg0: i32) -> (i32, i32, i32) {
    %c0_i32 = arith.constant 0 : i32
    %c0_i32_0 = arith.constant 0 : i32
    %c0_i32_1 = arith.constant 0 : i32
    %c0_i32_2 = arith.constant 0 : i32
    return %c0_i32, %c0_i32_0, %c0_i32_1 : i32, i32, i32
  }
  func.func @transform_8(%arg0: i32) -> (i32, i32, i32) {
    %c0_i32 = arith.constant 0 : i32
    %c0_i32_0 = arith.constant 0 : i32
    %c0_i32_1 = arith.constant 0 : i32
    %c0_i32_2 = arith.constant 0 : i32
    return %c0_i32, %c0_i32_0, %c0_i32_1 : i32, i32, i32
  }
  func.func @transform_9(%arg0: i32) -> (i32, i32, i32) {
    %c0_i32 = arith.constant 0 : i32
    %c0_i32_0 = arith.constant 0 : i32
    %c0_i32_1 = arith.constant 0 : i32
    %c0_i32_2 = arith.constant 0 : i32
    return %c0_i32, %c0_i32_0, %c0_i32_1 : i32, i32, i32
  }
  func.func @transform_10(%arg0: i32) -> (i32, i32, i32) {
    %c0_i32 = arith.constant 0 : i32
    %c0_i32_0 = arith.constant 0 : i32
    %c0_i32_1 = arith.constant 0 : i32
    %c0_i32_2 = arith.constant 0 : i32
    return %c0_i32, %c0_i32_0, %c0_i32_1 : i32, i32, i32
  }
  func.func @transform_11(%arg0: i32) -> (i32, i32, i32) {
    %c0_i32 = arith.constant 0 : i32
    %c0_i32_0 = arith.constant 0 : i32
    %c0_i32_1 = arith.constant 0 : i32
    %c0_i32_2 = arith.constant 0 : i32
    return %c0_i32, %c0_i32_0, %c0_i32_1 : i32, i32, i32
  }
  func.func @transform_12(%arg0: i32) -> (i32, i32, i32) {
    %c0_i32 = arith.constant 0 : i32
    %c0_i32_0 = arith.constant 0 : i32
    %c0_i32_1 = arith.constant 0 : i32
    %c0_i32_2 = arith.constant 0 : i32
    return %c0_i32, %c0_i32_0, %c0_i32_1 : i32, i32, i32
  }
  func.func @transform_13(%arg0: i32) -> (i32, i32, i32) {
    %c0_i32 = arith.constant 0 : i32
    %c0_i32_0 = arith.constant 0 : i32
    %c0_i32_1 = arith.constant 0 : i32
    %c0_i32_2 = arith.constant 0 : i32
    return %c0_i32, %c0_i32_0, %c0_i32_1 : i32, i32, i32
  }
  func.func @transform_14(%arg0: i32) -> (i32, i32, i32) {
    %c0_i32 = arith.constant 0 : i32
    %c0_i32_0 = arith.constant 0 : i32
    %c0_i32_1 = arith.constant 0 : i32
    %c0_i32_2 = arith.constant 0 : i32
    return %c0_i32, %c0_i32_0, %c0_i32_1 : i32, i32, i32
  }
  func.func @transform_15(%arg0: i32) -> (i32, i32) {
    %c0_i32 = arith.constant 0 : i32
    %c0_i32_0 = arith.constant 0 : i32
    %c0_i32_1 = arith.constant 0 : i32
    return %c0_i32, %c0_i32_0 : i32, i32
  }
  func.func @transform_16(%arg0: i32) -> (i32, i32) {
    %c0_i32 = arith.constant 0 : i32
    %c0_i32_0 = arith.constant 0 : i32
    %c0_i32_1 = arith.constant 0 : i32
    return %c0_i32, %c0_i32_0 : i32, i32
  }
  func.func @transform_17(%arg0: i32) -> (i32, i32) {
    %c0_i32 = arith.constant 0 : i32
    %c0_i32_0 = arith.constant 0 : i32
    %c0_i32_1 = arith.constant 0 : i32
    return %c0_i32, %c0_i32_0 : i32, i32
  }
}

</mosaic_0001>

<bundles_post_ra>
// kernel: forward.2
= control target key start
LH: loop header
LB: loop body
LE: loop exit
PB: predicated region body
PF: predicated region fallthrough
CT: control target
= control target key end

     0   :  { %vm129_vm0 = vcmask 392192   ;;  %v1805_v11 = vmov 0.0   ;;  %vm1806_vm1 = vmmov 0   ;;  %vm251_vm2 = vcmask 523264   ;;  %s2228_s1 = inlined_call_operand.vmem [shape: bf16[48,64], index: 1, kind: input, shape index: {}]   ;;  %s2229_s0 = inlined_call_operand.vmem [shape: bf16[128,48], index: 0, kind: input, shape index: {}]   ;;  %s2230_s3 = inlined_call_operand.vmem [shape: bf16[64,64], index: 3, kind: input, shape index: {}]   ;;  %s2231_s2 = inlined_call_operand.vmem [shape: f32[1,64], index: 2, kind: input, shape index: {}]   ;;  %s2232_s4 = inlined_call_operand.vmem [shape: f32[1,64], index: 4, kind: input, shape index: {}]   ;;  %s2233_s6 = inlined_call_operand.vmem [shape: bf16[2,64,64], index: 6, kind: input, shape index: {}]   ;;  %s2234_s5 = inlined_call_operand.vmem [shape: f32[2,1,64], index: 5, kind: input, shape index: {}]   ;;  %s2235_s8 = inlined_call_operand.vmem [shape: bf16[2,64,256], index: 8, kind: input, shape index: {}]   ;;  %s2236_s9 = inlined_call_operand.vmem [shape: bf16[2,64,256], index: 9, kind: input, shape index: {}]   ;;  %s2237_s7 = inlined_call_operand.vmem [shape: f32[2,1,64], index: 7, kind: input, shape index: {}]   ;;  %s2238_s10 = inlined_call_operand.vmem [shape: bf16[2,256,64], index: 10, kind: input, shape index: {}]   ;;  %s2239_s11 = inlined_call_operand.vmem [shape: f32[1,64], index: 11, kind: input, shape index: {}]   ;;  %s2240_s12 = inlined_call_operand.vmem [shape: bf16[2,64], index: 12, kind: output, shape index: {}]  }
   0x1   :  { %v1676_v0 = vld [vmem:[%s2228_s1] sm:$0xff]   ;;  %v1677_v1 = vld [vmem:[%s2228_s1 + $0x8] sm:$0xff]   ;;  %v1678_v3 = vld [vmem:[%s2228_s1 + $0x10] sm:$0xff]   ;;  %1649 = vmatprep.subr.bf16.mxu1 %v1805_v11  ;;  %1657 = vmatprep.mubr.msk.bf16.mxu1 %vm1806_vm1, %v1805_v11  ;;  %vm318_vm3 = vcmask 1041409   ;;  %vm390_vm4 = vcmask 517120   ;;  %vm1368_vm5 = vcmask 516096  }
   0x2   :  { %1615 = vmatprep.subr.bf16.mxu0 %v1676_v0  ;;  %v1679_v2 = vld [vmem:[%s2229_s0] sm:$0xff]   ;;  %v1680_v4 = vld [vmem:[%s2229_s0 + $0x8] sm:$0xff]   ;;  %v1681_v5 = vld [vmem:[%s2229_s0 + $0x10] sm:$0xff]  }
   0x3   :  { %1616 = vmatpush3.bf16.msra.mxu0 %v1676_v0  ;;  %1621 = vmatprep.mubr.msk.bf16.mxu0 %vm129_vm0, %v1679_v2  ;;  %v1682_v6 = vld [vmem:[%s2229_s0 + $0x18] sm:$0xff]   ;;  %v1683_v7 = vld [vmem:[%s2229_s0 + $0x20] sm:$0xff]   ;;  %v1684_v8 = vld [vmem:[%s2229_s0 + $0x28] sm:$0xff]  }
   0x4   :  { %1617 = vmatprep.subr.bf16.mxu0 %v1677_v1  ;;  %v1685_v9 = vld [vmem:[%s2229_s0 + $0x30] sm:$0xff]   ;;  %v1686_v10 = vld [vmem:[%s2229_s0 + $0x38] sm:$0xff]   ;;  %v1687_v12 = vld [vmem:[%s2230_s3] sm:$0xff]  }
   0x5   :  { %v1688_v13 = vld [vmem:[%s2230_s3 + $0x8] sm:$0xff]   ;;  %v1689_v14 = vld [vmem:[%s2230_s3 + $0x10] sm:$0xff]   ;;  %v1690_v15 = vld [vmem:[%s2230_s3 + $0x18] sm:$0xff]  }
   0x6   :  { %v1374_v16 = vld [vmem:[%s2231_s2] ss:$0 sm:$0xff] }
   0x7   :  { %1618 = vmatpush3.bf16.msra.mxu0 %v1677_v1 }
   0x8   :  { %1619 = vmatprep.subr.bf16.mxu0 %v1678_v3 }
   0xb   :  { %1620 = vmatpush3.bf16.msra.mxu0 %v1678_v3 }
   0xc   :  { %1637 = vmatprep.subr.bf16.mxu0 %v1805_v11 }
   0xe   :  { %1622 = vmatmul.mubr.msk.bf16.vlgmr.msra.gmra.mrb[0].mxu0 %vm129_vm0, %v1680_v4 }
   0xf   :  { %1625 = vmatprep.mubr.msk.bf16.mxu0 %vm129_vm0, %v1681_v5  ;;  %1638 = vmatpush3.bf16.msra.mxu0 %v1687_v12 }
  0x10   :  { %1639 = vmatprep.subr.bf16.mxu0 %v1805_v11 }
  0x13   :  { %1640 = vmatpush3.bf16.msra.mxu0 %v1688_v13 }
  0x14   :  { %1641 = vmatprep.subr.bf16.mxu0 %v1805_v11 }
  0x16   :  { %1626 = vmatmul.mubr.msk.bf16.gmra.mrb[4].mxu0 %vm129_vm0, %v1682_v6 }
  0x17   :  { %1629 = vmatprep.mubr.msk.bf16.mxu0 %vm129_vm0, %v1683_v7  ;;  %1642 = vmatpush3.bf16.msra.mxu0 %v1689_v14 }
  0x18   :  { %1643 = vmatprep.subr.bf16.mxu0 %v1805_v11 }
  0x1b   :  { %1644 = vmatpush3.bf16.msra.mxu0 %v1690_v15 }
  0x1e   :  { %1630 = vmatmul.mubr.msk.bf16.gmra.mrb[8].mxu0 %vm129_vm0, %v1684_v8 }
  0x1f   :  { %1633 = vmatprep.mubr.msk.bf16.mxu0 %vm129_vm0, %v1685_v9 }
  0x26   :  { %1634 = vmatmul.mubr.msk.bf16.gmra.mrb[12].mxu0 %vm129_vm0, %v1686_v10 }
  0x27   :  { %1645 = vmatprep.mubr.msk.bf16.mxu0 %vm1806_vm1, %v1805_v11 }
  0xe1   :  { %v1623_v17 = vpop.f32.mrb[0].mxu0 }
  0xe2   :  { %v188_v18 = vpop.f32.mrb[1].mxu0  ;;  %v197_v22 = vadd.f32 %v1623_v17, %v1374_v16 }
  0xe3   :  { %v189_v19 = vadd.f32 %v1374_v16, %v188_v18  ;;  %v1624_v20 = vpop.f32.mrb[2].mxu0 }
  0xe4   :  { %v191_v21 = vpop.f32.mrb[3].mxu0  ;;  %v200_v25 = vadd.f32 %v1624_v20, %v1374_v16  ;;  %v255_v28 = vsel %vm251_vm2, %v197_v22, 0.0 }
  0xe5   :  { %v192_v23 = vadd.f32 %v1374_v16, %v191_v21  ;;  %v252_v24 = vsel %vm251_vm2, %v189_v19, 0.0 }
  0xe6   :  { %v257_v32 = vsel %vm251_vm2, %v200_v25, 0.0 }
  0xe7   :  { %v253_v26 = vsel %vm251_vm2, %v192_v23, 0.0 }
  0xe8   :  { %v254_v27 = vadd.f32 %v253_v26, %v252_v24 }
  0xe9   :  { %v1627_v29 = vpop.f32.mrb[4].mxu0 }
  0xea   :  { %v256_v30 = vadd.f32 %v255_v28, %v254_v27  ;;  %v204_v31 = vpop.f32.mrb[5].mxu0  ;;  %v213_v37 = vadd.f32 %v1627_v29, %v1374_v16 }
  0xeb   :  { %v205_v33 = vadd.f32 %v1374_v16, %v204_v31  ;;  %v1628_v34 = vpop.f32.mrb[6].mxu0 }
  0xec   :  { %v258_v35 = vadd.f32 %v257_v32, %v256_v30  ;;  %v207_v36 = vpop.f32.mrb[7].mxu0  ;;  %v216_v41 = vadd.f32 %v1628_v34, %v1374_v16  ;;  %v263_v44 = vsel %vm251_vm2, %v213_v37, 0.0 }
  0xed   :  { %v259_v38 = vsel %vm251_vm2, %v205_v33, 0.0  ;;  %v208_v39 = vadd.f32 %v1374_v16, %v207_v36  ;;  %v1394_v36 = vld [vmem:[%s2232_s4] ss:$0 sm:$0xff] }
  0xee   :  { %v260_v40 = vadd.f32 %v259_v38, %v258_v35  ;;  %v265_v48 = vsel %vm251_vm2, %v216_v41, 0.0 }
  0xef   :  { %v261_v42 = vsel %vm251_vm2, %v208_v39, 0.0 }
  0xf0   :  { %v262_v43 = vadd.f32 %v261_v42, %v260_v40 }
  0xf1   :  { %v1631_v45 = vpop.f32.mrb[8].mxu0 }
  0xf2   :  { %v264_v46 = vadd.f32 %v263_v44, %v262_v43  ;;  %v220_v47 = vpop.f32.mrb[9].mxu0  ;;  %v229_v53 = vadd.f32 %v1631_v45, %v1374_v16  ;;  %v1691_v44 = vld [vmem:[%s2233_s6] sm:$0xff]   ;;  %v1692_v45 = vld [vmem:[%s2233_s6 + $0x8] sm:$0xff]  }
  0xf3   :  { %v221_v49 = vadd.f32 %v1374_v16, %v220_v47  ;;  %v1632_v50 = vpop.f32.mrb[10].mxu0  ;;  %1650 = vmatpush3.bf16.msra.mxu1 %v1691_v44  ;;  %v1694_v47 = vld [vmem:[%s2233_s6 + $0x18] sm:$0xff]  }
  0xf4   :  { %v266_v51 = vadd.f32 %v265_v48, %v264_v46  ;;  %v223_v52 = vpop.f32.mrb[11].mxu0  ;;  %v232_v57 = vadd.f32 %v1632_v50, %v1374_v16  ;;  %v276_v60 = vsel %vm251_vm2, %v229_v53, 0.0  ;;  %1651 = vmatprep.subr.bf16.mxu1 %v1805_v11  ;;  %v1693_v46 = vld [vmem:[%s2233_s6 + $0x10] sm:$0xff]  }
  0xf5   :  { %v224_v54 = vadd.f32 %v1374_v16, %v223_v52  ;;  %v273_v56 = vsel %vm251_vm2, %v221_v49, 0.0  ;;  %v1400_v52 = vld [vmem:[%s2234_s5] ss:$0 sm:$0xff] }
  0xf6   :  { %v267_v55 = vrot.slane %v266_v51, 4  ;;  %v278_v1 = vsel %vm251_vm2, %v232_v57, 0.0 }
  0xf7   :  { %v274_v58 = vsel %vm251_vm2, %v224_v54, 0.0  ;;  %1652 = vmatpush3.bf16.msra.mxu1 %v1692_v45 }
  0xf8   :  { %v275_v59 = vadd.f32 %v274_v58, %v273_v56  ;;  %v268_v62 = vadd.f32 %v267_v55, %v266_v51  ;;  %1653 = vmatprep.subr.bf16.mxu1 %v1805_v11 }
  0xf9   :  { %v1635_v61 = vpop.f32.mrb[12].mxu0 }
  0xfa   :  { %v277_v63 = vadd.f32 %v276_v60, %v275_v59  ;;  %v236_v0 = vpop.f32.mrb[13].mxu0  ;;  %v245_v6 = vadd.f32 %v1635_v61, %v1374_v16  ;;  %v269_v9 = vrot.slane %v268_v62, 2 }
  0xfb   :  { %v237_v2 = vadd.f32 %v1374_v16, %v236_v0  ;;  %v1636_v3 = vpop.f32.mrb[14].mxu0  ;;  %1654 = vmatpush3.bf16.msra.mxu1 %v1693_v46  ;;  %v1695_v0 = vld [vmem:[%s2235_s8] ss:$8 sps:$4 sm:$0xff]  }
  0xfc   :  { %v279_v4 = vadd.f32 %v278_v1, %v277_v63  ;;  %v239_v5 = vpop.f32.mrb[15].mxu0  ;;  %v248_v12 = vadd.f32 %v1636_v3, %v1374_v16  ;;  %v284_v15 = vsel %vm251_vm2, %v245_v6, 0.0  ;;  %v270_v17 = vadd.f32 %v269_v9, %v268_v62  ;;  %1655 = vmatprep.subr.bf16.mxu1 %v1805_v11  ;;  %v1697_v63 = vld [vmem:[%s2235_s8 + $0x4] ss:$8 sps:$4 sm:$0xff]   ;;  %v1698_v1 = vld [vmem:[%s2236_s9] ss:$8 sps:$4 sm:$0xff]  }
  0xfd   :  { %v280_v7 = vsel %vm251_vm2, %v237_v2, 0.0  ;;  %v240_v8 = vadd.f32 %v1374_v16, %v239_v5  ;;  %550 = vmatprep.subr.bf16.mxu0 %v1697_v63  ;;  %v1700_v2 = vld [vmem:[%s2236_s9 + $0x4] ss:$8 sps:$4 sm:$0xff]   ;;  %v1703_v3 = vld [vmem:[%s2235_s8 + $0x14] ss:$8 sps:$4 sm:$0xff]  }
  0xfe   :  { %v281_v10 = vadd.f32 %v280_v7, %v279_v4  ;;  %v286_v19 = vsel %vm251_vm2, %v248_v12, 0.0  ;;  %v271_v21 = vrot.slane %v270_v17, 1  ;;  %v1706_v4 = vld [vmem:[%s2236_s9 + $0x14] ss:$8 sps:$4 sm:$0xff]   ;;  %v1701_v5 = vld [vmem:[%s2235_s8 + $0x10] ss:$8 sps:$4 sm:$0xff]  }
  0xff   :  { %v282_v13 = vsel %vm251_vm2, %v240_v8, 0.0  ;;  %1656 = vmatpush3.bf16.msra.mxu1 %v1694_v47  ;;  %v1704_v6 = vld [vmem:[%s2236_s9 + $0x10] ss:$8 sps:$4 sm:$0xff]   ;;  %v1709_v7 = vld [vmem:[%s2235_s8 + $0x24] ss:$8 sps:$4 sm:$0xff]  }
 0x100   :  { %v283_v14 = vadd.f32 %v282_v13, %v281_v10  ;;  %v272_v24 = vadd.f32 %v271_v21, %v270_v17  ;;  %639 = vmatprep.subr.bf16.mxu1 %v1700_v2  ;;  %v1712_v8 = vld [vmem:[%s2236_s9 + $0x24] ss:$8 sps:$4 sm:$0xff]   ;;  %v1707_v9 = vld [vmem:[%s2235_s8 + $0x20] ss:$8 sps:$4 sm:$0xff]   ;;  %v1713_v12 = vld [vmem:[%s2235_s8 + $0x30] ss:$8 sps:$4 sm:$0xff]  }
 0x101   :  { %v1710_v10 = vld [vmem:[%s2236_s9 + $0x20] ss:$8 sps:$4 sm:$0xff]   ;;  %v1715_v13 = vld [vmem:[%s2235_s8 + $0x34] ss:$8 sps:$4 sm:$0xff]   ;;  %v1807_v17 = vmov 0  }
 0x102   :  { %v285_v18 = vadd.f32 %v284_v15, %v283_v14  ;;  %v295_v27 = vmul.f32 0.015625, %v272_v24  ;;  %v1716_v14 = vld [vmem:[%s2236_s9 + $0x30] ss:$8 sps:$4 sm:$0xff]   ;;  %v1718_v15 = vld [vmem:[%s2236_s9 + $0x34] ss:$8 sps:$4 sm:$0xff]  }
 0x104   :  { %v287_v20 = vadd.f32 %v286_v19, %v285_v18  ;;  %v297_v16 = vpack.c.bf16 %v295_v27, %v295_v27  ;;  %v1720_v27 = vld [vmem:[%s2238_s10] sm:$0xff]  }
 0x106   :  { %v288_v22 = vrot.slane %v287_v20, 4  ;;  %v316_v32 = vunpack.c.l.b16 %v297_v16  ;;  %v1723_v16 = vld [vmem:[%s2238_s10 + $0x50] sm:$0xff]  }
 0x108   :  { %v289_v23 = vadd.f32 %v288_v22, %v287_v20  ;;  %v1406_v22 = vld [vmem:[%s2237_s7] ss:$0 sm:$0xff] }
 0x10a   :  { %v290_v25 = vrot.slane %v289_v23, 2 }
 0x10c   :  { %v291_v26 = vadd.f32 %v290_v25, %v289_v23 }
 0x10e   :  { %v292_v28 = vrot.slane %v291_v26, 1 }
 0x110   :  { %v293_v29 = vadd.f32 %v292_v28, %v291_v26  ;;  %v1719_v26 = vld [vmem:[%s2238_s10 + $0x40] sm:$0xff]   ;;  %v1721_v28 = vld [vmem:[%s2238_s10 + $0x48] sm:$0xff]  }
 0x112   :  { %v296_v30 = vmul.f32 0.015625, %v293_v29  ;;  %v1722_v29 = vld [vmem:[%s2238_s10 + $0x8] sm:$0xff]  }
 0x114   :  { %v298_v31 = vpack.c.bf16 %v296_v30, %v296_v30  ;;  %v1724_v30 = vld [vmem:[%s2238_s10 + $0x10] sm:$0xff]  }
 0x116   :  { %v317_v33 = vunpack.c.l.b16 %v298_v31  ;;  %v1725_v31 = vld [vmem:[%s2238_s10 + $0x58] sm:$0xff]  }
 0x118   :  { %v319_v34 = vsel %vm318_vm3, %v317_v33, %v316_v32  ;;  %v1726_v32 = vld [vmem:[%s2238_s10 + $0x18] sm:$0xff]   ;;  %v1727_v33 = vld [vmem:[%s2238_s10 + $0x60] sm:$0xff]  }
 0x119   :  { %v320_v35 = vpack.c.b16 %v319_v34, %v319_v34  ;;  %v1728_v34 = vld [vmem:[%s2238_s10 + $0x20] sm:$0xff]  }
 0x11b   :  { %1646 = vmatmul.mubr.msk.bf16.vlgmr.msra.gmra.mrb[16].mxu0 %vm251_vm2, %v320_v35  ;;  %v1729_v35 = vld [vmem:[%s2238_s10 + $0x68] sm:$0xff]  }
 0x11c   :  { %551 = vmatpush1.bf16.msra.mxu0 %v1695_v0  ;;  %582 = vmatprep.mubr.bf16.mxu0 %v1807_v17 }
 0x11d   :  { %552 = vmatprep.subr.bf16.mxu0 %v1703_v3 }
 0x120   :  { %553 = vmatpush1.bf16.msra.mxu0 %v1701_v5 }
 0x121   :  { %554 = vmatprep.subr.bf16.mxu0 %v1709_v7 }
 0x124   :  { %555 = vmatpush1.bf16.msra.mxu0 %v1707_v9  ;;  %v1736_v9 = vld [vmem:[%s2233_s6 + $0x28] sm:$0xff]  }
 0x125   :  { %556 = vmatprep.subr.bf16.mxu0 %v1715_v13 }
 0x128   :  { %557 = vmatpush1.bf16.msra.mxu0 %v1713_v12 }
 0x129   :  { %1566 = vmatprep.subr.bf16.mxu0 %v1719_v26 }
 0x1ee   :  { %v382_v37 = vpop.f32.mrb[16].mxu0 }
 0x1ef   :  { %v383_v38 = vadd.f32 %v1394_v36, %v382_v37  ;;  %v1647_v39 = vpop.f32.mrb[17].mxu0  ;;  %v1730_v36 = vld [vmem:[%s2238_s10 + $0x28] sm:$0xff]   ;;  %v1731_v37 = vld [vmem:[%s2238_s10 + $0x70] sm:$0xff]  }
 0x1f0   :  { %v385_v40 = vpop.f32.mrb[18].mxu0  ;;  %v1733_v39 = vld [vmem:[%s2238_s10 + $0x78] sm:$0xff]  }
 0x1f1   :  { %v1648_v41 = vpop.f32.mrb[19].mxu0  ;;  %v389_v42 = vmul.f32 %v383_v38, %v383_v38  ;;  %v1734_v40 = vld [vmem:[%s2238_s10 + $0x38] sm:$0xff]  }
 0x1f3   :  { %v391_v43 = vsel %vm390_vm4, %v389_v42, 0.0 }
 0x1f4   :  { %392 = vadd.xlane.f32.xlu0 %v391_v43 }
 0x281   :  { %v393_v48 = vpop.xlane.xlu0 %392 }
 0x282   :  { %v394_v49 = vmul.f32 0.015625, %v393_v48 }
 0x284   :  { %v395_v50 = vadd.f32 1e-05, %v394_v49 }
 0x286   :  { %1779 = vrsqrt.f32 %v395_v50 }
 0x290   :  { %v1780_v51 = vpop.eup %1779 }
 0x291   :  { %v397_v53 = vmul.f32 %v1780_v51, %v383_v38 }
 0x293   :  { %v404_v54 = vmul.f32 %v1400_v52, %v397_v53 }
 0x295   :  { %v405_v55 = vpack.c.bf16 %v404_v54, %v404_v54 }
 0x297   :  { %1658 = vmatmul.mubr.msk.bf16.vlgmr.msra.gmra.mrb[0].mxu1 %vm251_vm2, %v405_v55 }
 0x298   :  { %640 = vmatpush1.bf16.msra.mxu1 %v1698_v1  ;;  %671 = vmatprep.mubr.bf16.mxu1 %v1807_v17 }
 0x299   :  { %641 = vmatprep.subr.bf16.mxu1 %v1706_v4 }
 0x29c   :  { %642 = vmatpush1.bf16.msra.mxu1 %v1704_v6 }
 0x29d   :  { %643 = vmatprep.subr.bf16.mxu1 %v1712_v8  ;;  %v1735_v8 = vld [vmem:[%s2233_s6 + $0x20] sm:$0xff]  }
 0x2a0   :  { %644 = vmatpush1.bf16.msra.mxu1 %v1710_v10  ;;  %v1738_v10 = vld [vmem:[%s2233_s6 + $0x38] sm:$0xff]  }
 0x2a1   :  { %645 = vmatprep.subr.bf16.mxu1 %v1718_v15 }
 0x2a4   :  { %646 = vmatpush1.bf16.msra.mxu1 %v1716_v14 }
 0x2a5   :  { %1661 = vmatprep.subr.bf16.mxu1 %v1805_v11 }
 0x36a   :  { %v475_v56 = vpop.f32.mrb[0].mxu1 }
 0x36b   :  { %v1978_v57 = vadd.f32 %v475_v56, %v383_v38  ;;  %v1659_v58 = vpop.f32.mrb[1].mxu1  ;;  %v1732_v38 = vld [vmem:[%s2238_s10 + $0x30] sm:$0xff]  }
 0x36c   :  { %v478_v59 = vpop.f32.mrb[2].mxu1 }
 0x36d   :  { %v1660_v60 = vpop.f32.mrb[3].mxu1  ;;  %v483_v61 = vmul.f32 %v1978_v57, %v1978_v57 }
 0x36f   :  { %v484_v62 = vsel %vm390_vm4, %v483_v61, 0.0 }
 0x370   :  { %485 = vadd.xlane.f32.xlu0 %v484_v62 }
 0x3fd   :  { %v486_v18 = vpop.xlane.xlu0 %485 }
 0x3fe   :  { %v487_v19 = vmul.f32 0.015625, %v486_v18  ;;  %v1444_v18 = vld [vmem:[%s2234_s5 + $0x1] ss:$0 sm:$0xff] }
 0x400   :  { %v488_v20 = vadd.f32 1e-05, %v487_v19 }
 0x402   :  { %1781 = vrsqrt.f32 %v488_v20 }
 0x40c   :  { %v1782_v21 = vpop.eup %1781 }
 0x40d   :  { %v490_v23 = vmul.f32 %v1782_v21, %v1978_v57 }
 0x40f   :  { %v497_v24 = vmul.f32 %v1406_v22, %v490_v23 }
 0x411   :  { %v498_v25 = vpack.c.bf16 %v497_v24, %v497_v24 }
 0x413   :  { %1415 = vmatmul.mubr.msk.bf16.vlgmr.msra.gmra.mrb[20].mxu0 %vm251_vm2, %v498_v25  ;;  %1424 = vmatmul.mubr.msk.bf16.vlgmr.msra.gmra.mrb[4].mxu1 %vm251_vm2, %v498_v25 }
 0x414   :  { %1669 = vmatprep.mubr.msk.bf16.mxu1 %vm1806_vm1, %v1805_v11  ;;  %1567 = vmatpush3.bf16.msra.mxu0 %v1720_v27 }
 0x415   :  { %1568 = vmatprep.subr.bf16.mxu0 %v1721_v28  ;;  %1662 = vmatpush3.bf16.msra.mxu1 %v1735_v8  ;;  %v1741_v28 = vld [vmem:[%s2235_s8 + $0x44] ss:$8 sps:$4 sm:$0xff]  }
 0x416   :  { %1663 = vmatprep.subr.bf16.mxu1 %v1805_v11 }
 0x418   :  { %1569 = vmatpush3.bf16.msra.mxu0 %v1722_v29  ;;  %v1739_v29 = vld [vmem:[%s2235_s8 + $0x40] ss:$8 sps:$4 sm:$0xff]  }
 0x419   :  { %1570 = vmatprep.subr.bf16.mxu0 %v1723_v16  ;;  %1664 = vmatpush3.bf16.msra.mxu1 %v1736_v9  ;;  %v1742_v16 = vld [vmem:[%s2236_s9 + $0x40] ss:$8 sps:$4 sm:$0xff]  }
 0x41a   :  { %1665 = vmatprep.subr.bf16.mxu1 %v1805_v11 }
 0x41c   :  { %1571 = vmatpush3.bf16.msra.mxu0 %v1724_v30  ;;  %v1747_v30 = vld [vmem:[%s2235_s8 + $0x54] ss:$8 sps:$4 sm:$0xff]  }
 0x41d   :  { %1572 = vmatprep.subr.bf16.mxu0 %v1725_v31  ;;  %v1750_v31 = vld [vmem:[%s2236_s9 + $0x54] ss:$8 sps:$4 sm:$0xff]  }
 0x420   :  { %1573 = vmatpush3.bf16.msra.mxu0 %v1726_v32  ;;  %v1745_v32 = vld [vmem:[%s2235_s8 + $0x50] ss:$8 sps:$4 sm:$0xff]  }
 0x421   :  { %1574 = vmatprep.subr.bf16.mxu0 %v1727_v33  ;;  %v1748_v33 = vld [vmem:[%s2236_s9 + $0x50] ss:$8 sps:$4 sm:$0xff]  }
 0x424   :  { %1575 = vmatpush3.bf16.msra.mxu0 %v1728_v34  ;;  %v1753_v34 = vld [vmem:[%s2235_s8 + $0x64] ss:$8 sps:$4 sm:$0xff]  }
 0x425   :  { %1576 = vmatprep.subr.bf16.mxu0 %v1729_v35  ;;  %v1756_v35 = vld [vmem:[%s2236_s9 + $0x64] ss:$8 sps:$4 sm:$0xff]  }
 0x428   :  { %1577 = vmatpush3.bf16.msra.mxu0 %v1730_v36  ;;  %v1751_v36 = vld [vmem:[%s2235_s8 + $0x60] ss:$8 sps:$4 sm:$0xff]  }
 0x429   :  { %1578 = vmatprep.subr.bf16.mxu0 %v1731_v37  ;;  %v1754_v37 = vld [vmem:[%s2236_s9 + $0x60] ss:$8 sps:$4 sm:$0xff]  }
 0x42c   :  { %1579 = vmatpush3.bf16.msra.mxu0 %v1732_v38  ;;  %v1757_v38 = vld [vmem:[%s2235_s8 + $0x70] ss:$8 sps:$4 sm:$0xff]  }
 0x42d   :  { %1580 = vmatprep.subr.bf16.mxu0 %v1733_v39  ;;  %v1759_v39 = vld [vmem:[%s2235_s8 + $0x74] ss:$8 sps:$4 sm:$0xff]  }
 0x430   :  { %1581 = vmatpush3.bf16.msra.mxu0 %v1734_v40  ;;  %v1760_v40 = vld [vmem:[%s2236_s9 + $0x70] ss:$8 sps:$4 sm:$0xff]  }
 0x4e6   :  { %v584_v41 = vpop.f32.mrb[20].mxu0  ;;  %v673_v42 = vpop.f32.mrb[4].mxu1 }
 0x4e7   :  { %v1425_v43 = vmul.f32 -1.442695, %v584_v41  ;;  %v586_v44 = vpop.f32.mrb[21].mxu0  ;;  %v675_v45 = vpop.f32.mrb[5].mxu1 }
 0x4e8   :  { %v1426_v46 = vmul.f32 -1.442695, %v586_v44  ;;  %v588_v47 = vpop.f32.mrb[22].mxu0  ;;  %v677_v48 = vpop.f32.mrb[6].mxu1 }
 0x4e9   :  { %1783 = vpow2.f32 %v1425_v43  ;;  %v589_v49 = vpop.f32.mrb[23].mxu0  ;;  %v678_v50 = vpop.f32.mrb[7].mxu1 }
 0x4ea   :  { %1785 = vpow2.f32 %v1426_v46  ;;  %v1459_v46 = vld [vmem:[%s2237_s7 + $0x1] ss:$0 sm:$0xff] }
 0x4eb   :  { %v1763_v50 = vld [vmem:[%s2238_s10 + $0xc0] sm:$0xff]  }
 0x4f3   :  { %v1784_v51 = vpop.eup %1783 }
 0x4f4   :  { %v1786_v52 = vpop.eup %1785  ;;  %v686_v53 = vadd.f32 1.0, %v1784_v51  ;;  %v1764_v51 = vld [vmem:[%s2238_s10 + $0x80] sm:$0xff]  }
 0x4f5   :  { %v687_v54 = vadd.f32 1.0, %v1786_v52  ;;  %v1765_v52 = vld [vmem:[%s2238_s10 + $0xc8] sm:$0xff]  }
 0x4f6   :  { %1787 = vrcp.f32 %v686_v53  ;;  %v1766_v53 = vld [vmem:[%s2238_s10 + $0x88] sm:$0xff]  }
 0x4f7   :  { %1789 = vrcp.f32 %v687_v54  ;;  %v1767_v54 = vld [vmem:[%s2238_s10 + $0xd0] sm:$0xff]  }
 0x500   :  { %v1788_v55 = vpop.eup %1787 }
 0x501   :  { %v1790_v56 = vpop.eup %1789  ;;  %v692_v58 = vmul.f32 %v1788_v55, %v584_v41  ;;  %v1762_v41 = vld [vmem:[%s2236_s9 + $0x74] ss:$8 sps:$4 sm:$0xff]  }
 0x502   :  { %v693_v59 = vmul.f32 %v1790_v56, %v586_v44  ;;  %v1768_v55 = vld [vmem:[%s2238_s10 + $0x90] sm:$0xff]   ;;  %v1769_v56 = vld [vmem:[%s2238_s10 + $0xd8] sm:$0xff]  }
 0x503   :  { %v694_v60 = vmul.f32 %v692_v58, %v673_v42  ;;  %v1770_v58 = vld [vmem:[%s2238_s10 + $0x98] sm:$0xff]  }
 0x504   :  { %v695_v61 = vmul.f32 %v693_v59, %v675_v45  ;;  %v1771_v59 = vld [vmem:[%s2238_s10 + $0xe0] sm:$0xff]  }
 0x505   :  { %v696_v63 = vpack.c.bf16 %v694_v60, %v694_v60  ;;  %v1772_v60 = vld [vmem:[%s2238_s10 + $0xa0] sm:$0xff]  }
 0x506   :  { %v697_v62 = vpack.c.bf16 %v695_v61, %v695_v61  ;;  %v1773_v61 = vld [vmem:[%s2238_s10 + $0xe8] sm:$0xff]  }
 0x508   :  { %858 = vmatprep.mubr.bf16.mxu0 %v697_v62  ;;  %v1774_v62 = vld [vmem:[%s2238_s10 + $0xa8] sm:$0xff]  }
 0x509   :  { %859 = vmatmul.mubr.bf16.vlgmr.msra.gmra.mrb[24].mxu0 %v696_v63  ;;  %v1775_v63 = vld [vmem:[%s2238_s10 + $0xf0] sm:$0xff]  }
 0x50a   :  { %1154 = vmatprep.mubr.bf16.mxu0 %v1807_v17 }
 0x5dc   :  { %v1582_v0 = vpop.f32.mrb[24].mxu0 }
 0x5dd   :  { %v1583_v1 = vpop.f32.mrb[25].mxu0 }
 0x5de   :  { %v1584_v2 = vadd.f32 %v1583_v1, %v1582_v0  ;;  %v1585_v3 = vpop.f32.mrb[26].mxu0  ;;  %v1776_v0 = vld [vmem:[%s2238_s10 + $0xb0] sm:$0xff]   ;;  %v1777_v1 = vld [vmem:[%s2238_s10 + $0xf8] sm:$0xff]  }
 0x5df   :  { %v1586_v4 = vpop.f32.mrb[27].mxu0 }
 0x5e0   :  { %v866_v5 = vadd.f32 %v1584_v2, %v1978_v57  ;;  %v1737_v57 = vld [vmem:[%s2233_s6 + $0x30] sm:$0xff]   ;;  %v1778_v2 = vld [vmem:[%s2238_s10 + $0xb8] sm:$0xff]  }
 0x5e1   :  { %1666 = vmatpush3.bf16.msra.mxu1 %v1737_v57 }
 0x5e2   :  { %v869_v6 = vmul.f32 %v866_v5, %v866_v5  ;;  %1667 = vmatprep.subr.bf16.mxu1 %v1805_v11 }
 0x5e4   :  { %v870_v7 = vsel %vm390_vm4, %v869_v6, 0.0 }
 0x5e5   :  { %871 = vadd.xlane.f32.xlu1 %v870_v7  ;;  %1668 = vmatpush3.bf16.msra.mxu1 %v1738_v10 }
 0x5e6   :  { %1032 = vmatprep.subr.bf16.mxu1 %v1741_v28 }
 0x672   :  { %v872_v12 = vpop.xlane.xlu1 %871 }
 0x673   :  { %v873_v13 = vmul.f32 0.015625, %v872_v12 }
 0x675   :  { %v874_v14 = vadd.f32 1e-05, %v873_v13 }
 0x677   :  { %1791 = vrsqrt.f32 %v874_v14 }
 0x681   :  { %v1792_v15 = vpop.eup %1791 }
 0x682   :  { %v876_v19 = vmul.f32 %v1792_v15, %v866_v5 }
 0x684   :  { %v883_v20 = vmul.f32 %v1444_v18, %v876_v19 }
 0x686   :  { %v884_v21 = vpack.c.bf16 %v883_v20, %v883_v20 }
 0x688   :  { %1670 = vmatmul.mubr.msk.bf16.vlgmr.msra.gmra.mrb[8].mxu1 %vm251_vm2, %v884_v21 }
 0x689   :  { %1064 = vmatprep.mubr.bf16.mxu1 %v1807_v17  ;;  %v1744_v17 = vld [vmem:[%s2236_s9 + $0x44] ss:$8 sps:$4 sm:$0xff]   ;;  %1033 = vmatpush1.bf16.msra.mxu1 %v1739_v29 }
 0x68a   :  { %1122 = vmatprep.subr.bf16.mxu0 %v1744_v17  ;;  %1034 = vmatprep.subr.bf16.mxu1 %v1747_v30 }
 0x68b   :  { %1123 = vmatpush1.bf16.msra.mxu0 %v1742_v16 }
 0x68c   :  { %1124 = vmatprep.subr.bf16.mxu0 %v1750_v31 }
 0x68d   :  { %1035 = vmatpush1.bf16.msra.mxu1 %v1745_v32 }
 0x68e   :  { %1036 = vmatprep.subr.bf16.mxu1 %v1753_v34 }
 0x68f   :  { %1125 = vmatpush1.bf16.msra.mxu0 %v1748_v33 }
 0x690   :  { %1126 = vmatprep.subr.bf16.mxu0 %v1756_v35 }
 0x691   :  { %1037 = vmatpush1.bf16.msra.mxu1 %v1751_v36 }
 0x692   :  { %1038 = vmatprep.subr.bf16.mxu1 %v1759_v39 }
 0x693   :  { %1127 = vmatpush1.bf16.msra.mxu0 %v1754_v37  ;;  %v1544_v37 = vld [vmem:[%s2239_s11] ss:$0 sm:$0xff] }
 0x694   :  { %1128 = vmatprep.subr.bf16.mxu0 %v1762_v41 }
 0x695   :  { %1039 = vmatpush1.bf16.msra.mxu1 %v1757_v38 }
 0x696   :  { %1593 = vmatprep.subr.bf16.mxu1 %v1763_v50 }
 0x697   :  { %1129 = vmatpush1.bf16.msra.mxu0 %v1760_v40 }
 0x75b   :  { %v955_v11 = vpop.f32.mrb[8].mxu1 }
 0x75c   :  { %v2113_v22 = vadd.f32 %v955_v11, %v866_v5  ;;  %v1671_v23 = vpop.f32.mrb[9].mxu1 }
 0x75d   :  { %v958_v24 = vpop.f32.mrb[10].mxu1 }
 0x75e   :  { %v1672_v25 = vpop.f32.mrb[11].mxu1  ;;  %v964_v26 = vmul.f32 %v2113_v22, %v2113_v22 }
 0x760   :  { %v965_v27 = vsel %vm390_vm4, %v964_v26, 0.0 }
 0x761   :  { %966 = vadd.xlane.f32.xlu1 %v965_v27 }
 0x7ee   :  { %v967_v42 = vpop.xlane.xlu1 %966 }
 0x7ef   :  { %v968_v43 = vmul.f32 0.015625, %v967_v42 }
 0x7f1   :  { %v969_v44 = vadd.f32 1e-05, %v968_v43 }
 0x7f3   :  { %1793 = vrsqrt.f32 %v969_v44 }
 0x7fd   :  { %v1794_v45 = vpop.eup %1793 }
 0x7fe   :  { %v971_v47 = vmul.f32 %v1794_v45, %v2113_v22 }
 0x800   :  { %v978_v48 = vmul.f32 %v1459_v46, %v971_v47 }
 0x802   :  { %v979_v49 = vpack.c.bf16 %v978_v48, %v978_v48 }
 0x804   :  { %1476 = vmatmul.mubr.msk.bf16.vlgmr.msra.gmra.mrb[12].mxu1 %vm251_vm2, %v979_v49  ;;  %1493 = vmatmul.mubr.msk.bf16.vlgmr.msra.gmra.mrb[28].mxu0 %vm251_vm2, %v979_v49 }
 0x805   :  { %1594 = vmatpush3.bf16.msra.mxu1 %v1764_v51 }
 0x806   :  { %1595 = vmatprep.subr.bf16.mxu1 %v1765_v52 }
 0x809   :  { %1596 = vmatpush3.bf16.msra.mxu1 %v1766_v53 }
 0x80a   :  { %1597 = vmatprep.subr.bf16.mxu1 %v1767_v54 }
 0x80d   :  { %1598 = vmatpush3.bf16.msra.mxu1 %v1768_v55 }
 0x80e   :  { %1599 = vmatprep.subr.bf16.mxu1 %v1769_v56 }
 0x811   :  { %1600 = vmatpush3.bf16.msra.mxu1 %v1770_v58 }
 0x812   :  { %1601 = vmatprep.subr.bf16.mxu1 %v1771_v59 }
 0x815   :  { %1602 = vmatpush3.bf16.msra.mxu1 %v1772_v60 }
 0x816   :  { %1603 = vmatprep.subr.bf16.mxu1 %v1773_v61 }
 0x819   :  { %1604 = vmatpush3.bf16.msra.mxu1 %v1774_v62 }
 0x81a   :  { %1605 = vmatprep.subr.bf16.mxu1 %v1775_v63 }
 0x81d   :  { %1606 = vmatpush3.bf16.msra.mxu1 %v1776_v0 }
 0x81e   :  { %1607 = vmatprep.subr.bf16.mxu1 %v1777_v1 }
 0x821   :  { %1608 = vmatpush3.bf16.msra.mxu1 %v1778_v2 }
 0x8d7   :  { %v1066_v3 = vpop.f32.mrb[12].mxu1  ;;  %v1156_v4 = vpop.f32.mrb[28].mxu0 }
 0x8d8   :  { %v1494_v5 = vmul.f32 -1.442695, %v1066_v3  ;;  %v1068_v6 = vpop.f32.mrb[13].mxu1  ;;  %v1158_v7 = vpop.f32.mrb[29].mxu0 }
 0x8d9   :  { %v1495_v8 = vmul.f32 -1.442695, %v1068_v6  ;;  %v1070_v9 = vpop.f32.mrb[14].mxu1  ;;  %v1160_v57 = vpop.f32.mrb[30].mxu0 }
 0x8da   :  { %1795 = vpow2.f32 %v1494_v5  ;;  %v1071_v10 = vpop.f32.mrb[15].mxu1  ;;  %v1161_v12 = vpop.f32.mrb[31].mxu0 }
 0x8db   :  { %1797 = vpow2.f32 %v1495_v8 }
 0x8e4   :  { %v1796_v13 = vpop.eup %1795 }
 0x8e5   :  { %v1798_v14 = vpop.eup %1797  ;;  %v1169_v15 = vadd.f32 1.0, %v1796_v13 }
 0x8e6   :  { %v1170_v18 = vadd.f32 1.0, %v1798_v14 }
 0x8e7   :  { %1799 = vrcp.f32 %v1169_v15 }
 0x8e8   :  { %1801 = vrcp.f32 %v1170_v18 }
 0x8f1   :  { %v1800_v19 = vpop.eup %1799 }
 0x8f2   :  { %v1802_v20 = vpop.eup %1801  ;;  %v1175_v21 = vmul.f32 %v1800_v19, %v1066_v3 }
 0x8f3   :  { %v1176_v11 = vmul.f32 %v1802_v20, %v1068_v6 }
 0x8f4   :  { %v1177_v23 = vmul.f32 %v1175_v21, %v1156_v4 }
 0x8f5   :  { %v1178_v24 = vmul.f32 %v1176_v11, %v1158_v7 }
 0x8f6   :  { %v1179_v26 = vpack.c.bf16 %v1177_v23, %v1177_v23 }
 0x8f7   :  { %v1180_v25 = vpack.c.bf16 %v1178_v24, %v1178_v24 }
 0x8f9   :  { %1342 = vmatprep.mubr.bf16.mxu1 %v1180_v25 }
 0x8fa   :  { %1343 = vmatmul.mubr.bf16.vlgmr.msra.gmra.mrb[16].mxu1 %v1179_v26 }
 0x9cd   :  { %v1609_v27 = vpop.f32.mrb[16].mxu1 }
 0x9ce   :  { %v1610_v28 = vpop.f32.mrb[17].mxu1 }
 0x9cf   :  { %v1611_v17 = vadd.f32 %v1610_v28, %v1609_v27  ;;  %v1612_v29 = vpop.f32.mrb[18].mxu1 }
 0x9d0   :  { %v1613_v16 = vpop.f32.mrb[19].mxu1 }
 0x9d1   :  { %v1350_v30 = vadd.f32 %v1611_v17, %v2113_v22 }
 0x9d3   :  { %v1352_v31 = vmul.f32 %v1350_v30, %v1350_v30 }
 0x9d5   :  { %v1353_v32 = vsel %vm390_vm4, %v1352_v31, 0.0 }
 0x9d6   :  { %1354 = vadd.xlane.f32.xlu0 %v1353_v32 }
 0xa63   :  { %v1355_v33 = vpop.xlane.xlu0 %1354 }
 0xa64   :  { %v1356_v34 = vmul.f32 0.015625, %v1355_v33 }
 0xa66   :  { %v1357_v35 = vadd.f32 1e-05, %v1356_v34 }
 0xa68   :  { %1803 = vrsqrt.f32 %v1357_v35 }
 0xa72   :  { %v1804_v36 = vpop.eup %1803 }
 0xa73   :  { %v1359_v38 = vmul.f32 %v1804_v36, %v1350_v30 }
 0xa75   :  { %v1366_v39 = vmul.f32 %v1544_v37, %v1359_v38 }
 0xa77   :  { %v1367_v40 = vpack.c.bf16 %v1366_v39, %v1366_v39 }
 0xa79   :  { %1369 = vst.msk [vmem:[%s2240_s12] sm:$0x1] %vm1368_vm5, %v1367_v40 }

// kernel: forward.3
= control target key start
LH: loop header
LB: loop body
LE: loop exit
PB: predicated region body
PF: predicated region fallthrough
CT: control target
= control target key end

     0   :  { %vm70_vm0 = vcmask 523264   ;;  %v5263_v8 = vmov 0.0   ;;  %vm5264_vm1 = vmmov 0   ;;  %s5266_s21 = smov 120   ;;  %s5267_s22 = smov 24   ;;  %vm361_vm2 = vcmask 64512   ;;  %s6641_s0 = inlined_call_operand.vmem [shape: bf16[16,64], index: 0, kind: input, shape index: {}]   ;;  %s6642_s6 = inlined_call_operand.vmem [shape: bf16[2,64,64], index: 6, kind: input, shape index: {}]   ;;  %s6643_s7 = inlined_call_operand.vmem [shape: bf16[2,64,32], index: 7, kind: input, shape index: {}]   ;;  %s6644_s8 = inlined_call_operand.vmem [shape: bf16[2,64,32], index: 8, kind: input, shape index: {}]   ;;  %s6645_s4 = inlined_call_operand.vmem [shape: f32[16,8], index: 4, kind: input, shape index: {}]   ;;  %s6646_s3 = inlined_call_operand.vmem [shape: f32[16,8], index: 3, kind: input, shape index: {}]   ;;  %s6647_s5 = inlined_call_operand.vmem [shape: f32[2,1,64], index: 5, kind: input, shape index: {}]   ;;  %s6648_s2 = inlined_call_operand.vmem [shape: f32[1,8,8], index: 2, kind: input, shape index: {}]   ;;  %s6649_s10 = inlined_call_operand.vmem [shape: bf16[2,64,64], index: 10, kind: input, shape index: {}]   ;;  %s6650_s9 = inlined_call_operand.vmem [shape: bf16[2,64,64], index: 9, kind: input, shape index: {}]   ;;  %s6651_s1 = inlined_call_operand.vmem [shape: bf16[2,64], index: 1, kind: input, shape index: {}]   ;;  %s6652_s12 = inlined_call_operand.vmem [shape: bf16[2,64,256], index: 12, kind: input, shape index: {}]   ;;  %s6653_s13 = inlined_call_operand.vmem [shape: bf16[2,64,256], index: 13, kind: input, shape index: {}]   ;;  %s6654_s11 = inlined_call_operand.vmem [shape: f32[2,1,64], index: 11, kind: input, shape index: {}]   ;;  %s6655_s14 = inlined_call_operand.vmem [shape: bf16[2,256,64], index: 14, kind: input, shape index: {}]   ;;  %s6656_s16 = inlined_call_operand.vmem [shape: bf16[64,128], index: 16, kind: input, shape index: {}]   ;;  %s6657_s15 = inlined_call_operand.vmem [shape: f32[1,64], index: 15, kind: input, shape index: {}]   ;;  %s6658_s17 = inlined_call_operand.vmem [shape: f32[16,128], index: 17, kind: output, shape index: {}]  }
   0x1   :  { %6665 = sst [smem:[#allocation2_spill]] %s6641_s0  ;;  %4628 = vmatprep.subr.bf16.mxu0 %v5263_v8  ;;  %4640 = vmatprep.subr.bf16.mxu1 %v5263_v8  ;;  %v5018_v9 = vld [vmem:[%s6643_s7] sm:$0xff]   ;;  %v5020_v11 = vld [vmem:[%s6643_s7 + $0x8] sm:$0xff]   ;;  %v5022_v13 = vld [vmem:[%s6643_s7 + $0x10] sm:$0xff]   ;;  %s6661_s23 = smov 16   ;;  %vm474_vm3 = vcmask 130048  }
   0x2   :  { %6666 = sst [smem:[#allocation3_spill]] %s6642_s6  ;;  %s6667_s26 = sld [smem:[#allocation2_spill]]  ;;  %4636 = vmatprep.mubr.msk.bf16.mxu0 %vm5264_vm1, %v5263_v8  ;;  %4641 = vmatpush3.bf16.msra.mxu1 %v5018_v9  ;;  %v5024_v15 = vld [vmem:[%s6643_s7 + $0x18] sm:$0xff]   ;;  %v5422_v16 = vld [vmem:[%s6645_s4] sm:$0xff]  ;;  %v5436_v18 = vld [vmem:[%s6645_s4 + $0x8] sm:$0xff]  ;;  %vm594_vm4 = vcmask 1043456  }
   0x3   :  { %s6668_s29 = sld [smem:[#allocation3_spill]]  ;;  %4642 = vmatprep.subr.bf16.mxu1 %v5263_v8  ;;  %4648 = vmatprep.mubr.msk.bf16.mxu1 %vm5264_vm1, %v5263_v8  ;;  %v5427_v17 = vld [vmem:[%s6646_s3] sm:$0xff]  ;;  %s5265_s6 = smov 8   ;;  %v5443_v19 = vld [vmem:[%s6646_s3 + $0x8] sm:$0xff]  ;;  %v5027_v36 = vld [vmem:[%s6644_s8 + $0x10] sm:$0xff]   ;;  %vm1514_vm5 = vcmask 261120  }
   0x4   :  { %321 = vrot.lane.b32.xlu1 %v5422_v16, %s5265_s6  ;;  %v4203_v29 = vld [vmem:[%s6647_s5] ss:$0 sm:$0xff]  ;;  %v5026_v35 = vld [vmem:[%s6644_s8 + $0x8] sm:$0xff]   ;;  %v5028_v37 = vld [vmem:[%s6644_s8 + $0x18] sm:$0xff]   ;;  %s5270_s27 = smov 40   ;;  %s6660_s28 = smov 32  }
   0x5   :  { %v5025_v33 = vld [vmem:[%s6644_s8] sm:$0xff]   ;;  %s5272_s0 = smov 96   ;;  %s5273_s30 = smov 56   ;;  %vm1517_vm6 = vcmask 392192  }
   0x6   :  { %4643 = vmatpush3.bf16.msra.mxu1 %v5020_v11  ;;  %s6662_s18 = smov 48   ;;  %s6663_s19 = smov 80  }
   0x7   :  { %4644 = vmatprep.subr.bf16.mxu1 %v5263_v8 }
   0x8   :  { %v4462_v0 = vld [vmem:[%s6667_s26] sm:$0xff]   ;;  %323 = vrot.lane.b32.xlu1 %v5436_v18, %s5265_s6  ;;  %s5269_s26 = smov 112  }
   0x9   :  { %v5371_v1 = vunpack.c.l.bf16 %v4462_v0  ;;  %v5373_v2 = vunpack.c.h.bf16 %v4462_v0  ;;  %v5017_v7 = vld [vmem:[%s6668_s29] sm:$0xff]   ;;  %v5019_v10 = vld [vmem:[%s6668_s29 + $0x8] sm:$0xff]   ;;  %v5021_v12 = vld [vmem:[%s6668_s29 + $0x10] sm:$0xff]  }
   0xa   :  { %4629 = vmatpush3.bf16.msra.mxu0 %v5017_v7  ;;  %v5023_v14 = vld [vmem:[%s6668_s29 + $0x18] sm:$0xff]   ;;  %4645 = vmatpush3.bf16.msra.mxu1 %v5022_v13 }
   0xb   :  { %v68_v3 = vmul.f32 %v5371_v1, %v5371_v1  ;;  %v69_v4 = vmul.f32 %v5373_v2, %v5373_v2  ;;  %4630 = vmatprep.subr.bf16.mxu0 %v5263_v8  ;;  %4646 = vmatprep.subr.bf16.mxu1 %v5263_v8 }
   0xc   :  { %343 = vrot.lane.b32.xlu1 %v5443_v19, %s5265_s6 }
   0xd   :  { %v71_v5 = vsel %vm70_vm0, %v68_v3, 0.0  ;;  %v74_v6 = vsel %vm70_vm0, %v69_v4, 0.0 }
   0xe   :  { %72 = vadd.xlane.f32.xlu0 %v71_v5  ;;  %4631 = vmatpush3.bf16.msra.mxu0 %v5019_v10 }
   0xf   :  { %4632 = vmatprep.subr.bf16.mxu0 %v5263_v8  ;;  %4647 = vmatpush3.bf16.msra.mxu1 %v5024_v15 }
  0x10   :  { %4664 = vmatprep.subr.bf16.mxu1 %v5263_v8 }
  0x12   :  { %75 = vadd.xlane.f32.xlu0 %v74_v6  ;;  %4633 = vmatpush3.bf16.msra.mxu0 %v5021_v12 }
  0x13   :  { %4634 = vmatprep.subr.bf16.mxu0 %v5263_v8 }
  0x16   :  { %4635 = vmatpush3.bf16.msra.mxu0 %v5023_v14 }
  0x17   :  { %4652 = vmatprep.subr.bf16.mxu0 %v5263_v8 }
  0x28   :  { %341 = vrot.lane.b32.xlu0 %v5427_v17, %s5265_s6 }
  0x76   :  { %v5477_v38 = vpop.permute.xlu1 %321 }
  0x7a   :  { %v5507_v53 = vpop.permute.xlu1 %323 }
  0x7e   :  { %v5523_v60 = vpop.permute.xlu1 %343 }
  0x9b   :  { %v73_v20 = vpop.xlane.xlu0 %72 }
  0x9c   :  { %v78_v21 = vmul.f32 0.015625, %v73_v20 }
  0x9e   :  { %v80_v22 = vadd.f32 1e-05, %v78_v21 }
  0x9f   :  { %v76_v23 = vpop.xlane.xlu0 %75 }
  0xa0   :  { %5141 = vrsqrt.f32 %v80_v22  ;;  %v79_v24 = vmul.f32 0.015625, %v76_v23 }
  0xa2   :  { %v81_v25 = vadd.f32 1e-05, %v79_v24 }
  0xa3   :  { %v5525_v61 = vpop.permute.xlu0 %341 }
  0xa4   :  { %5143 = vrsqrt.f32 %v81_v25 }
  0xaa   :  { %v5142_v26 = vpop.eup %5141 }
  0xab   :  { %v84_v27 = vmul.f32 %v5142_v26, %v5371_v1 }
  0xad   :  { %v92_v31 = vmul.f32 %v4203_v29, %v84_v27 }
  0xae   :  { %v5144_v28 = vpop.eup %5143 }
  0xaf   :  { %v85_v30 = vmul.f32 %v5144_v28, %v5373_v2 }
  0xb1   :  { %v93_v32 = vmul.f32 %v4203_v29, %v85_v30 }
  0xb3   :  { %v94_v34 = vpack.c.bf16 %v93_v32, %v92_v31 }
  0xb5   :  { %4637 = vmatmul.mubr.msk.bf16.vlgmr.msra.gmra.mrb[0].mxu0 %vm70_vm0, %v94_v34  ;;  %4649 = vmatmul.mubr.msk.bf16.vlgmr.msra.gmra.mrb[0].mxu1 %vm70_vm0, %v94_v34 }
  0xb6   :  { %4653 = vmatpush3.bf16.msra.mxu0 %v5025_v33  ;;  %4660 = vmatprep.mubr.msk.bf16.mxu0 %vm5264_vm1, %v5263_v8 }
  0xb7   :  { %4654 = vmatprep.subr.bf16.mxu0 %v5263_v8  ;;  %4666 = vmatprep.mubr.msk.bf16.mxu1 %vm5264_vm1, %v5263_v8 }
  0xba   :  { %4655 = vmatpush3.bf16.msra.mxu0 %v5026_v35 }
  0xbb   :  { %4656 = vmatprep.subr.bf16.mxu0 %v5263_v8 }
  0xbe   :  { %4657 = vmatpush3.bf16.msra.mxu0 %v5027_v36 }
  0xbf   :  { %4658 = vmatprep.subr.bf16.mxu0 %v5263_v8 }
  0xc2   :  { %4659 = vmatpush3.bf16.msra.mxu0 %v5028_v37 }
  0xc3   :  { %4688 = vmatprep.subr.bf16.mxu0 %v5263_v8 }
  0xc5   :  { %4661 = vmatmul.mubr.msk.bf16.vlgmr.msra.gmra.mrb[4].mxu0 %vm70_vm0, %v94_v34 }
  0xc6   :  { %4690 = vmatprep.mubr.msk.bf16.mxu0 %vm5264_vm1, %v5263_v8 }
 0x188   :  { %v5479_v39 = vpop.f32.mrb[0].mxu0  ;;  %v5481_v40 = vpop.f32.mrb[0].mxu1 }
 0x189   :  { %v4638_v41 = vpop.f32.mrb[1].mxu0  ;;  %v4650_v42 = vpop.f32.mrb[1].mxu1  ;;  %v327_v43 = vmul.f32 %v5477_v38, %v5481_v40  ;;  %v349_v49 = vmul.f32 %v5481_v40, %v5422_v16  ;;  %v442_v51 = vmul.f32 %v5477_v38, %v5479_v39  ;;  %v456_v52 = vmul.f32 %v5479_v39, %v5422_v16 }
 0x18a   :  { %v5485_v44 = vpop.f32.mrb[2].mxu0  ;;  %v5487_v45 = vpop.f32.mrb[2].mxu1  ;;  %v317_v63 = vmul.f32 %v5481_v40, %v5427_v17  ;;  %v347_v0 = vmul.f32 %v5525_v61, %v5481_v40  ;;  %v440_v11 = vmul.f32 %v5479_v39, %v5427_v17  ;;  %v454_v12 = vmul.f32 %v5525_v61, %v5479_v39 }
 0x18b   :  { %331 = vrot.lane.b32.xlu1 %v327_v43, %s5266_s21  ;;  %v4639_v46 = vpop.f32.mrb[3].mxu0  ;;  %v4651_v47 = vpop.f32.mrb[3].mxu1  ;;  %v350_v48 = vmul.f32 %v5487_v45, %v5436_v18  ;;  %v457_v50 = vmul.f32 %v5485_v44, %v5436_v18  ;;  %v328_v56 = vmul.f32 %v5507_v53, %v5487_v45  ;;  %v443_v59 = vmul.f32 %v5507_v53, %v5485_v44 }
 0x18c   :  { %v348_v21 = vmul.f32 %v5523_v60, %v5487_v45  ;;  %v318_v23 = vmul.f32 %v5487_v45, %v5443_v19  ;;  %v455_v30 = vmul.f32 %v5523_v60, %v5485_v44  ;;  %v441_v31 = vmul.f32 %v5485_v44, %v5443_v19 }
 0x18d   :  { %355 = vrot.lane.b32.xlu0 %v350_v48, %s5265_s6  ;;  %v5572_v48 = vld [vmem:[%s6648_s2] sm:$0xff] }
 0x18f   :  { %353 = vrot.lane.b32.xlu1 %v349_v49, %s5265_s6 }
 0x191   :  { %462 = vrot.lane.b32.xlu0 %v457_v50, %s5265_s6 }
 0x193   :  { %446 = vrot.lane.b32.xlu1 %v442_v51, %s5266_s21 }
 0x195   :  { %376 = vrot.lane.b32.xlu0 %v5422_v16, %s5267_s22 }
 0x197   :  { %460 = vrot.lane.b32.xlu1 %v456_v52, %s5265_s6 }
 0x198   :  { %v310_v54 = vpop.f32.mrb[4].mxu0 }
 0x199   :  { %v4662_v55 = vpop.f32.mrb[5].mxu0  ;;  %378 = vrot.lane.b32.xlu0 %v5436_v18, %s5267_s22  ;;  %v5558_v43 = vpack.c.bf16 %v310_v54, %v310_v54 }
 0x19a   :  { %v5513_v57 = vpop.f32.mrb[6].mxu0 }
 0x19b   :  { %v4663_v58 = vpop.f32.mrb[7].mxu0  ;;  %333 = vrot.lane.b32.xlu1 %v328_v56, %s5266_s21  ;;  %v5562_v47 = vsel %vm594_vm4, %v5558_v43, 0 }
 0x19d   :  { %402 = vrot.lane.b32.xlu0 %v5422_v16, %s6661_s23 }
 0x19f   :  { %448 = vrot.lane.b32.xlu1 %v443_v59, %s5266_s21 }
 0x1a1   :  { %404 = vrot.lane.b32.xlu0 %v5436_v18, %s6661_s23 }
 0x1fd   :  { %v332_v62 = vpop.permute.xlu1 %331 }
 0x1fe   :  { %v337_v4 = vsub.f32 %v317_v63, %v332_v62 }
 0x1ff   :  { %v356_v13 = vpop.permute.xlu0 %355 }
 0x200   :  { %v360_v26 = vadd.f32 %v356_v13, %v348_v21 }
 0x201   :  { %v354_v3 = vpop.permute.xlu1 %353 }
 0x202   :  { %v359_v5 = vadd.f32 %v354_v3, %v347_v0 }
 0x203   :  { %v463_v28 = vpop.permute.xlu0 %462 }
 0x204   :  { %v362_v6 = vsel %vm361_vm2, %v337_v4, %v359_v5  ;;  %v467_v35 = vadd.f32 %v463_v28, %v455_v30 }
 0x205   :  { %v447_v7 = vpop.permute.xlu1 %446  ;;  %v364_v9 = vpack.c.bf16 %v362_v6, %v362_v6 }
 0x206   :  { %v452_v15 = vsub.f32 %v440_v11, %v447_v7 }
 0x207   :  { %v479_v10 = vsel %vm474_vm3, %v364_v9, 0  ;;  %v5578_v3 = vpop.permute.xlu0 %376 }
 0x208   :  { %4665 = vmatpush3.bf16.xpose.msra.mxu1 %v479_v10  ;;  %4689 = vmatpush3.bf16.xpose.msra.mxu0 %v479_v10  ;;  %v686_v6 = vmul.f32 %v5578_v3, %v5479_v39 }
 0x209   :  { %v461_v14 = vpop.permute.xlu1 %460  ;;  %4670 = vmatprep.subr.bf16.mxu1 %v5263_v8  ;;  %4700 = vmatprep.subr.bf16.mxu0 %v5263_v8 }
 0x20a   :  { %v466_v20 = vadd.f32 %v461_v14, %v454_v12 }
 0x20b   :  { %v5582_v4 = vpop.permute.xlu0 %378 }
 0x20c   :  { %v468_v22 = vsel %vm361_vm2, %v452_v15, %v466_v20  ;;  %v687_v9 = vmul.f32 %v5582_v4, %v5485_v44 }
 0x20d   :  { %v470_v24 = vmul.f32 0.25, %v468_v22  ;;  %v334_v25 = vpop.permute.xlu1 %333 }
 0x20e   :  { %v338_v27 = vsub.f32 %v318_v23, %v334_v25 }
 0x20f   :  { %v472_v29 = vpack.c.bf16 %v470_v24, %v470_v24  ;;  %v5586_v5 = vpop.permute.xlu0 %402 }
 0x210   :  { %v363_v32 = vsel %vm361_vm2, %v338_v27, %v360_v26  ;;  %v700_v11 = vmul.f32 %v5586_v5, %v5479_v39 }
 0x211   :  { %v449_v33 = vpop.permute.xlu1 %448  ;;  %4667 = vmatmul.mubr.msk.bf16.vlgmr.msra.gmra.mrb[4].mxu1 %vm474_vm3, %v472_v29  ;;  %v365_v34 = vpack.c.bf16 %v363_v32, %v363_v32 }
 0x212   :  { %v453_v36 = vsub.f32 %v441_v31, %v449_v33  ;;  %4672 = vmatprep.mubr.msk.bf16.mxu1 %vm5264_vm1, %v5263_v8 }
 0x213   :  { %v5553_v37 = vsel %vm474_vm3, %v365_v34, 0  ;;  %v5593_v7 = vpop.permute.xlu0 %404 }
 0x214   :  { %v469_v41 = vsel %vm361_vm2, %v453_v36, %v467_v35  ;;  %4671 = vmatpush3.bf16.xpose.msra.mxu1 %v5553_v37  ;;  %v701_v10 = vmul.f32 %v5593_v7, %v5485_v44 }
 0x215   :  { %v471_v42 = vmul.f32 0.25, %v469_v41  ;;  %4676 = vmatprep.subr.bf16.mxu1 %v5263_v8 }
 0x217   :  { %v473_v46 = vpack.c.bf16 %v471_v42, %v471_v42 }
 0x21b   :  { %4673 = vmatmul.mubr.msk.bf16.vlgmr.msra.gmra.mrb[8].mxu1 %vm474_vm3, %v473_v46 }
 0x21c   :  { %4677 = vmatpush3.bf16.msra.mxu1 %v5562_v47  ;;  %4678 = vmatprep.mubr.msk.bf16.mxu1 %vm5264_vm1, %v5263_v8 }
 0x21d   :  { %4682 = vmatprep.subr.bf16.mxu1 %v5263_v8 }
 0x2e4   :  { %v515_v49 = vpop.f32.mrb[4].mxu1 }
 0x2e5   :  { %v516_v50 = vadd.f32 %v515_v49, %v5572_v48  ;;  %v4668_v51 = vpop.f32.mrb[5].mxu1 }
 0x2e6   :  { %v518_v52 = vpop.f32.mrb[6].mxu1 }
 0x2e7   :  { %v4669_v54 = vpop.f32.mrb[7].mxu1  ;;  %v567_v55 = vsel %vm361_vm2, %v516_v50, -inf }
 0x2e8   :  { %568 = vmax.xlane.f32.xlu1 %v567_v55 }
 0x2ee   :  { %v561_v56 = vpop.f32.mrb[8].mxu1 }
 0x2ef   :  { %v562_v58 = vadd.f32 %v561_v56, %v5572_v48  ;;  %v4674_v59 = vpop.f32.mrb[9].mxu1  ;;  %v5632_v56 = vpack.c.bf16 %v5513_v57, %v5513_v57 }
 0x2f0   :  { %v564_v62 = vpop.f32.mrb[10].mxu1 }
 0x2f1   :  { %v4675_v63 = vpop.f32.mrb[11].mxu1  ;;  %v570_v0 = vsel %vm361_vm2, %v562_v58, -inf }
 0x2f2   :  { %571 = vmax.xlane.f32.xlu0 %v570_v0 }
 0x2f9   :  { %368 = vrot.lane.b32.xlu1 %v5427_v17, %s6661_s23 }
 0x2fd   :  { %394 = vrot.lane.b32.xlu1 %v5427_v17, %s5267_s22 }
 0x301   :  { %396 = vrot.lane.b32.xlu1 %v5443_v19, %s5267_s22 }
 0x305   :  { %690 = vrot.lane.b32.xlu1 %v686_v6, %s5266_s21  ;;  %v642_v6 = vsel %vm594_vm4, %v5632_v56, 0 }
 0x308   :  { %370 = vrot.lane.b32.xlu0 %v5443_v19, %s6661_s23 }
 0x309   :  { %692 = vrot.lane.b32.xlu1 %v687_v9, %s5266_s21 }
 0x30c   :  { %706 = vrot.lane.b32.xlu0 %v701_v10, %s5265_s6 }
 0x30d   :  { %704 = vrot.lane.b32.xlu1 %v700_v11, %s5265_s6 }
 0x375   :  { %v569_v12 = vpop.xlane.xlu1 %568 }
 0x376   :  { %v573_v13 = vsub.f32 %v516_v50, %v569_v12 }
 0x378   :  { %v575_v14 = vmul.f32 1.442695, %v573_v13 }
 0x379   :  { %v5606_v15 = vpop.permute.xlu1 %368 }
 0x37a   :  { %5145 = vpow2.f32 %v575_v14  ;;  %v684_v41 = vmul.f32 %v5606_v15, %v5479_v39 }
 0x37d   :  { %v5608_v20 = vpop.permute.xlu1 %394 }
 0x37e   :  { %v698_v35 = vmul.f32 %v5608_v20, %v5479_v39 }
 0x37f   :  { %v572_v21 = vpop.xlane.xlu0 %571 }
 0x380   :  { %v574_v22 = vsub.f32 %v562_v58, %v572_v21 }
 0x381   :  { %v5610_v25 = vpop.permute.xlu1 %396 }
 0x382   :  { %v577_v23 = vmul.f32 1.442695, %v574_v22  ;;  %v699_v49 = vmul.f32 %v5610_v25, %v5485_v44 }
 0x383   :  { %v5614_v30 = vpop.permute.xlu0 %370 }
 0x384   :  { %v5146_v24 = vpop.eup %5145  ;;  %5147 = vpow2.f32 %v577_v23  ;;  %v685_v32 = vmul.f32 %v5614_v30, %v5485_v44 }
 0x385   :  { %v579_v26 = vsel %vm361_vm2, %v5146_v24, 0.0  ;;  %v691_v27 = vpop.permute.xlu1 %690 }
 0x386   :  { %580 = vadd.xlane.f32.xlu1 %v579_v26  ;;  %v696_v42 = vsub.f32 %v684_v41, %v691_v27 }
 0x387   :  { %v707_v46 = vpop.permute.xlu0 %706 }
 0x388   :  { %v711_v50 = vadd.f32 %v707_v46, %v699_v49 }
 0x389   :  { %v693_v31 = vpop.permute.xlu1 %692 }
 0x38a   :  { %v697_v33 = vsub.f32 %v685_v32, %v693_v31 }
 0x38d   :  { %v705_v34 = vpop.permute.xlu1 %704 }
 0x38e   :  { %v5148_v28 = vpop.eup %5147  ;;  %v710_v36 = vadd.f32 %v705_v34, %v698_v35 }
 0x38f   :  { %v582_v29 = vsel %vm361_vm2, %v5148_v28, 0.0 }
 0x390   :  { %583 = vadd.xlane.f32.xlu0 %v582_v29 }
 0x397   :  { %716 = vrot.lane.b32.xlu1 %v697_v33, %s5269_s26 }
 0x39b   :  { %722 = vrot.lane.b32.xlu1 %v710_v36, %s5269_s26 }
 0x3a6   :  { %714 = vrot.lane.b32.xlu0 %v696_v42, %s5269_s26 }
 0x3aa   :  { %724 = vrot.lane.b32.xlu0 %v711_v50, %s5269_s26 }
 0x3ae   :  { %938 = vrot.lane.b32.xlu0 %v5422_v16, %s5270_s27 }
 0x413   :  { %v581_v51 = vpop.xlane.xlu1 %580 }
 0x414   :  { %5149 = vrcp.f32 %v581_v51 }
 0x417   :  { %v717_v52 = vpop.permute.xlu1 %716 }
 0x41b   :  { %v723_v59 = vpop.permute.xlu1 %722 }
 0x41d   :  { %v584_v54 = vpop.xlane.xlu0 %583 }
 0x41e   :  { %v5150_v55 = vpop.eup %5149  ;;  %5151 = vrcp.f32 %v584_v54  ;;  %v408_v54 = vmul.f32 %v5586_v5, %v5481_v40 }
 0x41f   :  { %v587_v58 = vmul.f32 %v5150_v55, %v5146_v24 }
 0x421   :  { %v715_v62 = vpop.permute.xlu0 %714  ;;  %v589_v63 = vpack.c.bf16 %v587_v58, %v587_v58  ;;  %v383_v58 = vmul.f32 %v5582_v4, %v5487_v45 }
 0x422   :  { %v728_v0 = vsel %vm361_vm2, %v715_v62, %v723_v59  ;;  %v409_v62 = vmul.f32 %v5593_v7, %v5487_v45 }
 0x423   :  { %v730_v9 = vmul.f32 0.25, %v728_v0  ;;  %4679 = vmatmul.mubr.msk.bf16.vlgmr.msra.gmra.mrb[12].mxu1 %vm361_vm2, %v589_v63 }
 0x424   :  { %4683 = vmatpush3.bf16.msra.mxu1 %v642_v6  ;;  %4684 = vmatprep.mubr.msk.bf16.mxu1 %vm5264_vm1, %v5263_v8 }
 0x425   :  { %v732_v10 = vpack.c.bf16 %v730_v9, %v730_v9  ;;  %4694 = vmatprep.subr.bf16.mxu1 %v5263_v8  ;;  %v725_v11 = vpop.permute.xlu0 %724 }
 0x426   :  { %v729_v14 = vsel %vm361_vm2, %v717_v52, %v725_v11  ;;  %v382_v52 = vmul.f32 %v5578_v3, %v5481_v40 }
 0x427   :  { %4691 = vmatmul.mubr.msk.bf16.vlgmr.msra.gmra.mrb[8].mxu0 %vm474_vm3, %v732_v10  ;;  %v731_v21 = vmul.f32 0.25, %v729_v14  ;;  %v374_v14 = vmul.f32 %v5606_v15, %v5481_v40 }
 0x428   :  { %v5152_v57 = vpop.eup %5151  ;;  %4701 = vmatpush3.bf16.msra.mxu0 %v5562_v47  ;;  %4702 = vmatprep.mubr.msk.bf16.mxu0 %vm5264_vm1, %v5263_v8 }
 0x429   :  { %v588_v12 = vmul.f32 %v5152_v57, %v5148_v28  ;;  %4712 = vmatprep.subr.bf16.mxu0 %v5263_v8  ;;  %v733_v47 = vpack.c.bf16 %v731_v21, %v731_v21  ;;  %v5676_v55 = vpop.permute.xlu0 %938  ;;  %v375_v21 = vmul.f32 %v5614_v30, %v5487_v45 }
 0x42a   :  { %v944_v59 = vmul.f32 %v5676_v55, %v5479_v39 }
 0x42b   :  { %v590_v13 = vpack.c.bf16 %v588_v12, %v588_v12 }
 0x42d   :  { %4685 = vmatmul.mubr.msk.bf16.vlgmr.msra.gmra.mrb[16].mxu1 %vm361_vm2, %v590_v13 }
 0x42e   :  { %4695 = vmatpush3.bf16.xpose.msra.mxu1 %v5553_v37  ;;  %4696 = vmatprep.mubr.msk.bf16.mxu1 %vm5264_vm1, %v5263_v8 }
 0x42f   :  { %4706 = vmatprep.subr.bf16.mxu1 %v5263_v8 }
 0x435   :  { %4697 = vmatmul.mubr.msk.bf16.vlgmr.msra.gmra.mrb[20].mxu1 %vm474_vm3, %v733_v47 }
 0x436   :  { %4707 = vmatpush3.bf16.msra.mxu1 %v642_v6  ;;  %4708 = vmatprep.mubr.msk.bf16.mxu1 %vm5264_vm1, %v5263_v8 }
 0x437   :  { %4718 = vmatprep.subr.bf16.mxu1 %v5263_v8 }
 0x4f6   :  { %v5656_v22 = vpop.f32.mrb[12].mxu1 }
 0x4f7   :  { %v4680_v23 = vpop.f32.mrb[13].mxu1 }
 0x4f8   :  { %v635_v24 = vpop.f32.mrb[14].mxu1 }
 0x4f9   :  { %v4681_v37 = vpop.f32.mrb[15].mxu1 }
 0x4fa   :  { %v771_v26 = vpop.f32.mrb[8].mxu0 }
 0x4fb   :  { %v772_v27 = vadd.f32 %v771_v26, %v5572_v48  ;;  %v4692_v28 = vpop.f32.mrb[9].mxu0 }
 0x4fc   :  { %v774_v29 = vpop.f32.mrb[10].mxu0  ;;  %v400_v28 = vmul.f32 %v5608_v20, %v5481_v40 }
 0x4fd   :  { %v4693_v31 = vpop.f32.mrb[11].mxu0  ;;  %v820_v32 = vsel %vm361_vm2, %v772_v27, -inf }
 0x4fe   :  { %821 = vmax.xlane.f32.xlu1 %v820_v32  ;;  %v401_v31 = vmul.f32 %v5610_v25, %v5487_v45 }
 0x500   :  { %v5660_v33 = vpop.f32.mrb[16].mxu1 }
 0x501   :  { %v4686_v34 = vpop.f32.mrb[17].mxu1 }
 0x502   :  { %v681_v35 = vpop.f32.mrb[18].mxu1 }
 0x503   :  { %v4687_v36 = vpop.f32.mrb[19].mxu1 }
 0x508   :  { %v814_v41 = vpop.f32.mrb[20].mxu1 }
 0x509   :  { %v815_v42 = vadd.f32 %v814_v41, %v5572_v48  ;;  %v4698_v46 = vpop.f32.mrb[21].mxu1 }
 0x50a   :  { %v817_v49 = vpop.f32.mrb[22].mxu1 }
 0x50b   :  { %v4699_v50 = vpop.f32.mrb[23].mxu1  ;;  %v823_v51 = vsel %vm361_vm2, %v815_v42, -inf }
 0x50c   :  { %824 = vmax.xlane.f32.xlu0 %v823_v51 }
 0x50f   :  { %940 = vrot.lane.b32.xlu1 %v5436_v18, %s5270_s27 }
 0x513   :  { %964 = vrot.lane.b32.xlu1 %v5422_v16, %s6660_s28 }
 0x517   :  { %386 = vrot.lane.b32.xlu1 %v382_v52, %s5266_s21 }
 0x51b   :  { %412 = vrot.lane.b32.xlu1 %v408_v54, %s5265_s6 }
 0x51f   :  { %930 = vrot.lane.b32.xlu1 %v5427_v17, %s6660_s28 }
 0x522   :  { %966 = vrot.lane.b32.xlu0 %v5436_v18, %s6660_s28 }
 0x523   :  { %956 = vrot.lane.b32.xlu1 %v5427_v17, %s5270_s27 }
 0x526   :  { %388 = vrot.lane.b32.xlu0 %v383_v58, %s5266_s21 }
 0x527   :  { %948 = vrot.lane.b32.xlu1 %v944_v59, %s5266_s21 }
 0x52a   :  { %414 = vrot.lane.b32.xlu0 %v409_v62, %s5265_s6 }
 0x52e   :  { %932 = vrot.lane.b32.xlu0 %v5443_v19, %s6660_s28 }
 0x532   :  { %958 = vrot.lane.b32.xlu0 %v5443_v19, %s5270_s27 }
 0x58b   :  { %v822_v63 = vpop.xlane.xlu1 %821 }
 0x58c   :  { %v826_v26 = vsub.f32 %v772_v27, %v822_v63 }
 0x58e   :  { %v828_v36 = vmul.f32 1.442695, %v826_v26 }
 0x58f   :  { %v5695_v0 = vpop.permute.xlu1 %940 }
 0x590   :  { %v945_v6 = vmul.f32 %v5695_v0, %v5485_v44  ;;  %5153 = vpow2.f32 %v828_v36 }
 0x592   :  { %950 = vrot.lane.b32.xlu0 %v945_v6, %s5266_s21 }
 0x593   :  { %v5700_v9 = vpop.permute.xlu1 %964 }
 0x594   :  { %v970_v10 = vmul.f32 %v5700_v9, %v5479_v39 }
 0x596   :  { %974 = vrot.lane.b32.xlu1 %v970_v10, %s5265_s6 }
 0x597   :  { %v387_v11 = vpop.permute.xlu1 %386 }
 0x598   :  { %v392_v23 = vsub.f32 %v374_v14, %v387_v11 }
 0x599   :  { %v825_v57 = vpop.xlane.xlu0 %824 }
 0x59a   :  { %v827_v46 = vsub.f32 %v815_v42, %v825_v57  ;;  %v5154_v50 = vpop.eup %5153 }
 0x59b   :  { %v413_v37 = vpop.permute.xlu1 %412  ;;  %v832_v27 = vsel %vm361_vm2, %v5154_v50, 0.0 }
 0x59c   :  { %v418_v34 = vadd.f32 %v413_v37, %v400_v28  ;;  %v830_v49 = vmul.f32 1.442695, %v827_v46 }
 0x59d   :  { %v5705_v12 = vpop.permute.xlu0 %966 }
 0x59e   :  { %v971_v13 = vmul.f32 %v5705_v12, %v5485_v44  ;;  %5155 = vpow2.f32 %v830_v49 }
 0x59f   :  { %v5720_v40 = vpop.permute.xlu1 %930 }
 0x5a0   :  { %976 = vrot.lane.b32.xlu0 %v971_v13, %s5265_s6  ;;  %v936_v58 = vmul.f32 %v5720_v40, %v5479_v39 }
 0x5a1   :  { %v389_v47 = vpop.permute.xlu0 %388 }
 0x5a2   :  { %v393_v24 = vsub.f32 %v375_v21, %v389_v47 }
 0x5a3   :  { %v5722_v52 = vpop.permute.xlu1 %956 }
 0x5a4   :  { %v4967_v29 = vpack.i.bf16 %v393_v24, %v392_v23  ;;  %v962_v57 = vmul.f32 %v5722_v52, %v5479_v39 }
 0x5a5   :  { %v415_v32 = vpop.permute.xlu0 %414 }
 0x5a6   :  { %v419_v35 = vadd.f32 %v415_v32, %v401_v31  ;;  %4968 = vrot.lane.b32.xlu0 %v4967_v29, %s5269_s26 }
 0x5a7   :  { %v949_v54 = vpop.permute.xlu1 %948 }
 0x5a8   :  { %v4972_v41 = vpack.i.bf16 %v419_v35, %v418_v34  ;;  %v5156_v51 = vpop.eup %5155  ;;  %v954_v42 = vsub.f32 %v936_v58, %v949_v54 }
 0x5a9   :  { %v835_v45 = vsel %vm361_vm2, %v5156_v51, 0.0  ;;  %v5729_v59 = vpop.permute.xlu0 %932 }
 0x5aa   :  { %v937_v63 = vmul.f32 %v5729_v59, %v5485_v44 }
 0x5ad   :  { %v5731_v62 = vpop.permute.xlu0 %958 }
 0x5ae   :  { %v963_v14 = vmul.f32 %v5731_v62, %v5485_v44 }
 0x5ba   :  { %833 = vadd.xlane.f32.xlu1 %v832_v27 }
 0x5c5   :  { %836 = vadd.xlane.f32.xlu0 %v835_v45 }
 0x5cb   :  { %4973 = vrot.lane.b32.xlu1 %v4972_v41, %s5269_s26 }
 0x5cf   :  { %984 = vrot.lane.b32.xlu1 %v954_v42, %s5272_s0 }
 0x604   :  { %v951_v6 = vpop.permute.xlu0 %950 }
 0x605   :  { %v955_v10 = vsub.f32 %v937_v63, %v951_v6 }
 0x607   :  { %986 = vrot.lane.b32.xlu0 %v955_v10, %s5272_s0 }
 0x608   :  { %v975_v11 = vpop.permute.xlu1 %974 }
 0x609   :  { %v980_v13 = vadd.f32 %v975_v11, %v962_v57 }
 0x60b   :  { %992 = vrot.lane.b32.xlu1 %v980_v13, %s5272_s0 }
 0x612   :  { %v977_v21 = vpop.permute.xlu0 %976 }
 0x613   :  { %v981_v47 = vadd.f32 %v977_v21, %v963_v14 }
 0x615   :  { %994 = vrot.lane.b32.xlu0 %v981_v47, %s5272_s0 }
 0x618   :  { %v4969_v24 = vpop.permute.xlu0 %4968 }
 0x619   :  { %1226 = vrot.lane.b32.xlu0 %v5422_v16, %s5273_s30  ;;  %v4970_v28 = vunpack.i.l.bf16 %v4969_v24  ;;  %v4971_v49 = vunpack.i.h.bf16 %v4969_v24 }
 0x647   :  { %v834_v23 = vpop.xlane.xlu1 %833 }
 0x648   :  { %5157 = vrcp.f32 %v834_v23 }
 0x64b   :  { %v4974_v37 = vpop.permute.xlu1 %4973 }
 0x64c   :  { %v4975_v26 = vunpack.i.l.bf16 %v4974_v37  ;;  %v4976_v41 = vunpack.i.h.bf16 %v4974_v37 }
 0x64e   :  { %v436_v29 = vsel %vm361_vm2, %v4970_v28, %v4975_v26  ;;  %v437_v27 = vsel %vm361_vm2, %v4971_v49, %v4976_v41 }
 0x64f   :  { %v438_v35 = vpack.c.bf16 %v436_v29, %v436_v29  ;;  %v439_v54 = vpack.c.bf16 %v437_v27, %v437_v27  ;;  %v985_v63 = vpop.permute.xlu1 %984 }
 0x651   :  { %v5747_v46 = vsel %vm474_vm3, %v438_v35, 0  ;;  %v5756_v42 = vsel %vm474_vm3, %v439_v54, 0 }
 0x652   :  { %v5158_v31 = vpop.eup %5157  ;;  %v837_v32 = vpop.xlane.xlu0 %836 }
 0x653   :  { %5159 = vrcp.f32 %v837_v32  ;;  %v840_v34 = vmul.f32 %v5158_v31, %v5154_v50 }
 0x655   :  { %v842_v36 = vpack.c.bf16 %v840_v34, %v840_v34 }
 0x657   :  { %4703 = vmatmul.mubr.msk.bf16.vlgmr.msra.gmra.mrb[12].mxu0 %vm361_vm2, %v842_v36 }
 0x658   :  { %4713 = vmatpush3.bf16.xpose.msra.mxu0 %v5747_v46  ;;  %4714 = vmatprep.mubr.msk.bf16.mxu0 %vm5264_vm1, %v5263_v8 }
 0x659   :  { %4724 = vmatprep.subr.bf16.mxu0 %v5263_v8 }
 0x65d   :  { %v5160_v45 = vpop.eup %5159 }
 0x65e   :  { %v841_v50 = vmul.f32 %v5160_v45, %v5156_v51 }
 0x660   :  { %v843_v58 = vpack.c.bf16 %v841_v50, %v841_v50 }
 0x662   :  { %4709 = vmatmul.mubr.msk.bf16.vlgmr.msra.gmra.mrb[24].mxu1 %vm361_vm2, %v843_v58 }
 0x663   :  { %4719 = vmatpush3.bf16.xpose.msra.mxu1 %v5756_v42  ;;  %4720 = vmatprep.mubr.msk.bf16.mxu1 %vm5264_vm1, %v5263_v8 }
 0x664   :  { %4730 = vmatprep.subr.bf16.mxu1 %v5263_v8 }
 0x679   :  { %v987_v11 = vpop.permute.xlu0 %986 }
 0x67d   :  { %v993_v6 = vpop.permute.xlu1 %992 }
 0x67e   :  { %v998_v10 = vsel %vm361_vm2, %v985_v63, %v993_v6 }
 0x67f   :  { %v1000_v57 = vmul.f32 0.25, %v998_v10 }
 0x681   :  { %v1002_v51 = vpack.c.bf16 %v1000_v57, %v1000_v57 }
 0x683   :  { %4715 = vmatmul.mubr.msk.bf16.vlgmr.msra.gmra.mrb[16].mxu0 %vm474_vm3, %v1002_v51 }
 0x684   :  { %4726 = vmatprep.mubr.msk.bf16.mxu0 %vm5264_vm1, %v5263_v8 }
 0x687   :  { %v995_v13 = vpop.permute.xlu0 %994 }
 0x688   :  { %v999_v14 = vsel %vm361_vm2, %v987_v11, %v995_v13 }
 0x689   :  { %v1001_v21 = vmul.f32 0.25, %v999_v14 }
 0x68b   :  { %v1003_v47 = vpack.c.bf16 %v1001_v21, %v1001_v21  ;;  %v5786_v57 = vpop.permute.xlu0 %1226 }
 0x68c   :  { %v1232_v51 = vmul.f32 %v5786_v57, %v5479_v39 }
 0x68d   :  { %4721 = vmatmul.mubr.msk.bf16.vlgmr.msra.gmra.mrb[28].mxu1 %vm474_vm3, %v1003_v47 }
 0x68e   :  { %4732 = vmatprep.mubr.msk.bf16.mxu1 %vm5264_vm1, %v5263_v8 }
 0x72a   :  { %v5770_v23 = vpop.f32.mrb[12].mxu0 }
 0x72b   :  { %v4704_v24 = vpop.f32.mrb[13].mxu0 }
 0x72c   :  { %v884_v37 = vpop.f32.mrb[14].mxu0 }
 0x72d   :  { %v4705_v26 = vpop.f32.mrb[15].mxu0 }
 0x735   :  { %v5772_v28 = vpop.f32.mrb[24].mxu1 }
 0x736   :  { %v4977_v29 = vpack.i.bf16 %v5772_v28, %v5770_v23  ;;  %v4710_v31 = vpop.f32.mrb[25].mxu1  ;;  %v5029_v23 = vld [vmem:[%s6649_s10] sm:$0xff]   ;;  %v5030_v28 = vld [vmem:[%s6649_s10 + $0x8] sm:$0xff]  }
 0x737   :  { %v927_v32 = vpop.f32.mrb[26].mxu1 }
 0x738   :  { %v4711_v34 = vpop.f32.mrb[27].mxu1 }
 0x756   :  { %v1044_v35 = vpop.f32.mrb[16].mxu0 }
 0x757   :  { %v1045_v36 = vadd.f32 %v1044_v35, %v5572_v48  ;;  %v4716_v41 = vpop.f32.mrb[17].mxu0 }
 0x758   :  { %v1047_v49 = vpop.f32.mrb[18].mxu0 }
 0x759   :  { %v4717_v27 = vpop.f32.mrb[19].mxu0  ;;  %v1096_v45 = vsel %vm361_vm2, %v1045_v36, -inf }
 0x75a   :  { %1097 = vmax.xlane.f32.xlu1 %v1096_v45 }
 0x760   :  { %v1090_v50 = vpop.f32.mrb[28].mxu1 }
 0x761   :  { %v1091_v54 = vadd.f32 %v1090_v50, %v5572_v48  ;;  %v4722_v58 = vpop.f32.mrb[29].mxu1 }
 0x762   :  { %v1093_v63 = vpop.f32.mrb[30].mxu1 }
 0x763   :  { %v4723_v6 = vpop.f32.mrb[31].mxu1  ;;  %v1099_v10 = vsel %vm361_vm2, %v1091_v54, -inf }
 0x764   :  { %1100 = vmax.xlane.f32.xlu0 %v1099_v10 }
 0x76b   :  { %1228 = vrot.lane.b32.xlu1 %v5436_v18, %s5273_s30 }
 0x76f   :  { %1252 = vrot.lane.b32.xlu1 %v5422_v16, %s6662_s18 }
 0x773   :  { %1218 = vrot.lane.b32.xlu1 %v5427_v17, %s6662_s18 }
 0x777   :  { %1244 = vrot.lane.b32.xlu1 %v5427_v17, %s5273_s30 }
 0x77a   :  { %1254 = vrot.lane.b32.xlu0 %v5436_v18, %s6662_s18 }
 0x77b   :  { %1236 = vrot.lane.b32.xlu1 %v1232_v51, %s5266_s21 }
 0x77e   :  { %1220 = vrot.lane.b32.xlu0 %v5443_v19, %s6662_s18 }
 0x782   :  { %1246 = vrot.lane.b32.xlu0 %v5443_v19, %s5273_s30  ;;  %s6672_s30 = smov 48  }
 0x7e7   :  { %v1098_v16 = vpop.xlane.xlu1 %1097 }
 0x7e8   :  { %v1102_v47 = vsub.f32 %v1045_v36, %v1098_v16 }
 0x7ea   :  { %v1104_v24 = vmul.f32 1.442695, %v1102_v47 }
 0x7eb   :  { %v5799_v11 = vpop.permute.xlu1 %1228 }
 0x7ec   :  { %v1233_v17 = vmul.f32 %v5799_v11, %v5485_v44  ;;  %5161 = vpow2.f32 %v1104_v24 }
 0x7ee   :  { %1238 = vrot.lane.b32.xlu0 %v1233_v17, %s5266_s21 }
 0x7ef   :  { %v5804_v13 = vpop.permute.xlu1 %1252 }
 0x7f0   :  { %v1258_v18 = vmul.f32 %v5804_v13, %v5479_v39 }
 0x7f1   :  { %v1101_v14 = vpop.xlane.xlu0 %1100 }
 0x7f2   :  { %1262 = vrot.lane.b32.xlu1 %v1258_v18, %s5265_s6  ;;  %v1103_v37 = vsub.f32 %v1091_v54, %v1101_v14 }
 0x7f3   :  { %v5817_v35 = vpop.permute.xlu1 %1218 }
 0x7f4   :  { %v1106_v26 = vmul.f32 1.442695, %v1103_v37 }
 0x7f5   :  { %v5809_v21 = vpop.permute.xlu0 %1254 }
 0x7f6   :  { %v1259_v19 = vmul.f32 %v5809_v21, %v5485_v44  ;;  %5163 = vpow2.f32 %v1106_v26  ;;  %v5162_v31 = vpop.eup %5161 }
 0x7f7   :  { %v1108_v32 = vsel %vm361_vm2, %v5162_v31, 0.0  ;;  %v5820_v49 = vpop.permute.xlu1 %1244 }
 0x7f8   :  { %1264 = vrot.lane.b32.xlu0 %v1259_v19, %s5265_s6  ;;  %v1250_v6 = vmul.f32 %v5820_v49, %v5479_v39 }
 0x7f9   :  { %v5827_v45 = vpop.permute.xlu0 %1220 }
 0x7fa   :  { %v1225_v54 = vmul.f32 %v5827_v45, %v5485_v44 }
 0x7fb   :  { %v1237_v27 = vpop.permute.xlu1 %1236 }
 0x7fc   :  { %1121 = vrot.lane.b32.xlu0 %v5558_v43, %s5269_s26  ;;  %v1224_v43 = vmul.f32 %v5817_v35, %v5479_v39 }
 0x7fd   :  { %v5829_v50 = vpop.permute.xlu0 %1246 }
 0x7fe   :  { %v1242_v36 = vsub.f32 %v1224_v43, %v1237_v27  ;;  %v1251_v51 = vmul.f32 %v5829_v50, %v5485_v44 }
 0x800   :  { %v5164_v34 = vpop.eup %5163 }
 0x801   :  { %v1111_v41 = vsel %vm361_vm2, %v5164_v34, 0.0 }
 0x816   :  { %1109 = vadd.xlane.f32.xlu1 %v1108_v32 }
 0x81b   :  { %1112 = vadd.xlane.f32.xlu0 %v1111_v41 }
 0x827   :  { %1170 = vrot.lane.b32.xlu1 %v5632_v56, %s5269_s26 }
 0x82b   :  { %1272 = vrot.lane.b32.xlu1 %v1242_v36, %s6663_s19 }
 0x860   :  { %v1239_v58 = vpop.permute.xlu0 %1238 }
 0x861   :  { %v1243_v63 = vsub.f32 %v1225_v54, %v1239_v58 }
 0x863   :  { %1274 = vrot.lane.b32.xlu0 %v1243_v63, %s6663_s19 }
 0x864   :  { %v1263_v10 = vpop.permute.xlu1 %1262 }
 0x865   :  { %v1268_v56 = vadd.f32 %v1263_v10, %v1250_v6 }
 0x867   :  { %1280 = vrot.lane.b32.xlu1 %v1268_v56, %s6663_s19 }
 0x86a   :  { %v1265_v16 = vpop.permute.xlu0 %1264 }
 0x86b   :  { %v1269_v17 = vadd.f32 %v1265_v16, %v1251_v51 }
 0x86d   :  { %1282 = vrot.lane.b32.xlu0 %v1269_v17, %s6663_s19 }
 0x86e   :  { %v1122_v18 = vpop.permute.xlu0 %1121 }
 0x86f   :  { %v1127_v14 = vsel %vm594_vm4, %v1122_v18, 0 }
 0x870   :  { %4725 = vmatpush3.bf16.msra.mxu0 %v1127_v14 }
 0x871   :  { %4736 = vmatprep.subr.bf16.mxu0 %v5263_v8 }
 0x8a3   :  { %v1110_v39 = vpop.xlane.xlu1 %1109 }
 0x8a4   :  { %5165 = vrcp.f32 %v1110_v39 }
 0x8a7   :  { %v1171_v19 = vpop.permute.xlu1 %1170 }
 0x8a8   :  { %v1176_v47 = vsel %vm594_vm4, %v1171_v19, 0  ;;  %v1113_v24 = vpop.xlane.xlu0 %1112 }
 0x8a9   :  { %5167 = vrcp.f32 %v1113_v24  ;;  %4731 = vmatpush3.bf16.msra.mxu1 %v1176_v47 }
 0x8aa   :  { %4742 = vmatprep.subr.bf16.mxu1 %v5263_v8 }
 0x8ae   :  { %v5166_v44 = vpop.eup %5165 }
 0x8af   :  { %v1116_v37 = vmul.f32 %v5166_v44, %v5162_v31  ;;  %v1273_v31 = vpop.permute.xlu1 %1272 }
 0x8b1   :  { %v1118_v26 = vpack.c.bf16 %v1116_v37, %v1116_v37 }
 0x8b3   :  { %v5168_v32 = vpop.eup %5167  ;;  %4727 = vmatmul.mubr.msk.bf16.vlgmr.msra.gmra.mrb[20].mxu0 %vm361_vm2, %v1118_v26 }
 0x8b4   :  { %v1117_v41 = vmul.f32 %v5168_v32, %v5164_v34  ;;  %4737 = vmatpush3.bf16.xpose.msra.mxu0 %v5747_v46  ;;  %4738 = vmatprep.mubr.msk.bf16.mxu0 %vm5264_vm1, %v5263_v8 }
 0x8b5   :  { %4748 = vmatprep.subr.bf16.mxu0 %v5263_v8 }
 0x8b6   :  { %v1119_v27 = vpack.c.bf16 %v1117_v41, %v1117_v41 }
 0x8b8   :  { %4733 = vmatmul.mubr.msk.bf16.vlgmr.msra.gmra.mrb[32].mxu1 %vm361_vm2, %v1119_v27 }
 0x8b9   :  { %4743 = vmatpush3.bf16.xpose.msra.mxu1 %v5756_v42  ;;  %4744 = vmatprep.mubr.msk.bf16.mxu1 %vm5264_vm1, %v5263_v8 }
 0x8ba   :  { %4754 = vmatprep.subr.bf16.mxu1 %v5263_v8 }
 0x8d5   :  { %v1275_v46 = vpop.permute.xlu0 %1274 }
 0x8d9   :  { %v1281_v43 = vpop.permute.xlu1 %1280 }
 0x8da   :  { %v1286_v34 = vsel %vm361_vm2, %v1273_v31, %v1281_v43 }
 0x8db   :  { %v1288_v36 = vmul.f32 0.25, %v1286_v34 }
 0x8dd   :  { %v1290_v54 = vpack.c.bf16 %v1288_v36, %v1288_v36 }
 0x8df   :  { %v1283_v58 = vpop.permute.xlu0 %1282  ;;  %4739 = vmatmul.mubr.msk.bf16.vlgmr.msra.gmra.mrb[24].mxu0 %vm474_vm3, %v1290_v54 }
 0x8e0   :  { %v1287_v63 = vsel %vm361_vm2, %v1275_v46, %v1283_v58  ;;  %4749 = vmatpush3.bf16.msra.mxu0 %v1127_v14  ;;  %4750 = vmatprep.mubr.msk.bf16.mxu0 %vm5264_vm1, %v5263_v8 }
 0x8e1   :  { %v1289_v42 = vmul.f32 0.25, %v1287_v63  ;;  %4760 = vmatprep.subr.bf16.mxu0 %v5263_v8 }
 0x8e3   :  { %v1291_v6 = vpack.c.bf16 %v1289_v42, %v1289_v42 }
 0x8e5   :  { %4745 = vmatmul.mubr.msk.bf16.vlgmr.msra.gmra.mrb[36].mxu1 %vm474_vm3, %v1291_v6 }
 0x8e6   :  { %4755 = vmatpush3.bf16.msra.mxu1 %v1176_v47  ;;  %4756 = vmatprep.mubr.msk.bf16.mxu1 %vm5264_vm1, %v5263_v8 }
 0x8e7   :  { %4772 = vmatprep.subr.bf16.mxu1 %v5263_v8 }
 0x986   :  { %v1163_v10 = vpop.f32.mrb[20].mxu0 }
 0x987   :  { %v4728_v56 = vpop.f32.mrb[21].mxu0 }
 0x988   :  { %v1166_v51 = vpop.f32.mrb[22].mxu0 }
 0x989   :  { %v4729_v16 = vpop.f32.mrb[23].mxu0 }
 0x98b   :  { %v1212_v17 = vpop.f32.mrb[32].mxu1 }
 0x98c   :  { %v4982_v18 = vpack.i.bf16 %v1212_v17, %v1163_v10  ;;  %v4734_v14 = vpop.f32.mrb[33].mxu1 }
 0x98d   :  { %v1215_v39 = vpop.f32.mrb[34].mxu1 }
 0x98e   :  { %v4735_v19 = vpop.f32.mrb[35].mxu1 }
 0x9b2   :  { %v1329_v24 = vpop.f32.mrb[24].mxu0 }
 0x9b3   :  { %v1330_v44 = vadd.f32 %v1329_v24, %v5572_v48  ;;  %v4740_v37 = vpop.f32.mrb[25].mxu0 }
 0x9b4   :  { %v1332_v26 = vpop.f32.mrb[26].mxu0 }
 0x9b5   :  { %v4741_v47 = vpop.f32.mrb[27].mxu0  ;;  %v1378_v32 = vsel %vm361_vm2, %v1330_v44, -inf  ;;  %v5032_v26 = vld [vmem:[%s6649_s10 + $0x10] sm:$0xff]  }
 0x9b6   :  { %1379 = vmax.xlane.f32.xlu1 %v1378_v32  ;;  %v5035_v47 = vld [vmem:[%s6650_s9 + $0x10] sm:$0xff]   ;;  %v5034_v32 = vld [vmem:[%s6649_s10 + $0x18] sm:$0xff]  }
 0x9b8   :  { %v1372_v41 = vpop.f32.mrb[36].mxu1 }
 0x9b9   :  { %v1373_v27 = vadd.f32 %v1372_v41, %v5572_v48  ;;  %v4746_v31 = vpop.f32.mrb[37].mxu1  ;;  %v61_v41 = vld [vmem:[%s6651_s1] sm:$0x1] }
 0x9ba   :  { %v1375_v43 = vpop.f32.mrb[38].mxu1 }
 0x9bb   :  { %v4747_v34 = vpop.f32.mrb[39].mxu1  ;;  %v1381_v46 = vsel %vm361_vm2, %v1373_v27, -inf }
 0x9bc   :  { %1382 = vmax.xlane.f32.xlu0 %v1381_v46 }
 0xa43   :  { %v1380_v36 = vpop.xlane.xlu1 %1379 }
 0xa44   :  { %v1384_v54 = vsub.f32 %v1330_v44, %v1380_v36 }
 0xa46   :  { %v1386_v58 = vmul.f32 1.442695, %v1384_v54 }
 0xa48   :  { %5169 = vpow2.f32 %v1386_v58 }
 0xa49   :  { %v1383_v63 = vpop.xlane.xlu0 %1382 }
 0xa4a   :  { %v1385_v42 = vsub.f32 %v1373_v27, %v1383_v63  ;;  %v5036_v27 = vld [vmem:[%s6650_s9 + $0x18] sm:$0xff]  }
 0xa4c   :  { %v1388_v6 = vmul.f32 1.442695, %v1385_v42 }
 0xa4e   :  { %5171 = vpow2.f32 %v1388_v6 }
 0xa52   :  { %v5170_v10 = vpop.eup %5169 }
 0xa53   :  { %v1390_v56 = vsel %vm361_vm2, %v5170_v10, 0.0 }
 0xa54   :  { %1391 = vadd.xlane.f32.xlu0 %v1390_v56 }
 0xa58   :  { %v5172_v51 = vpop.eup %5171 }
 0xa59   :  { %v1393_v48 = vsel %vm361_vm2, %v5172_v51, 0.0 }
 0xa5a   :  { %1394 = vadd.xlane.f32.xlu1 %v1393_v48 }
 0xa6a   :  { %4978 = vrot.lane.b32.xlu0 %v4977_v29, %s6661_s23  ;;  %v5031_v29 = vld [vmem:[%s6650_s9] sm:$0xff]  }
 0xa6b   :  { %4983 = vrot.lane.b32.xlu1 %v4982_v18, %s6660_s28  ;;  %v5033_v18 = vld [vmem:[%s6650_s9 + $0x8] sm:$0xff]  }
 0xae1   :  { %v1392_v16 = vpop.xlane.xlu0 %1391 }
 0xae2   :  { %5173 = vrcp.f32 %v1392_v16 }
 0xae5   :  { %v4979_v48 = vpop.permute.xlu0 %4978 }
 0xae7   :  { %v1395_v17 = vpop.xlane.xlu1 %1394 }
 0xae8   :  { %5175 = vrcp.f32 %v1395_v17  ;;  %v4981_v17 = vunpack.i.h.bf16 %v4979_v48 }
 0xaeb   :  { %v4984_v16 = vpop.permute.xlu1 %4983 }
 0xaec   :  { %v5174_v14 = vpop.eup %5173 }
 0xaed   :  { %v1398_v39 = vmul.f32 %v5174_v14, %v5170_v10  ;;  %v4980_v14 = vunpack.i.l.bf16 %v4979_v48 }
 0xaef   :  { %v1400_v19 = vpack.c.bf16 %v1398_v39, %v1398_v39  ;;  %v4986_v39 = vunpack.i.h.bf16 %v4984_v16 }
 0xaf1   :  { %4751 = vmatmul.mubr.msk.bf16.vlgmr.msra.gmra.mrb[28].mxu0 %vm361_vm2, %v1400_v19  ;;  %v4985_v19 = vunpack.i.l.bf16 %v4984_v16 }
 0xaf2   :  { %v5176_v24 = vpop.eup %5175  ;;  %4768 = vmatprep.mubr.msk.bf16.mxu0 %vm5264_vm1, %v5263_v8  ;;  %4761 = vmatpush3.bf16.msra.mxu0 %v5031_v29 }
 0xaf3   :  { %v1399_v44 = vmul.f32 %v5176_v24, %v5172_v51  ;;  %4762 = vmatprep.subr.bf16.mxu0 %v5263_v8 }
 0xaf5   :  { %v1401_v37 = vpack.c.bf16 %v1399_v44, %v1399_v44  ;;  %v1513_v44 = vsel %vm474_vm3, %v5660_v33, %v4981_v17 }
 0xaf6   :  { %4763 = vmatpush3.bf16.msra.mxu0 %v5033_v18  ;;  %v1516_v29 = vsel %vm1514_vm5, %v1513_v44, %v4986_v39  ;;  %v5039_v44 = vld [vmem:[%s6652_s12 + $0x4] ss:$8 sps:$4 sm:$0xff]  }
 0xaf7   :  { %4757 = vmatmul.mubr.msk.bf16.vlgmr.msra.gmra.mrb[40].mxu1 %vm361_vm2, %v1401_v37  ;;  %4764 = vmatprep.subr.bf16.mxu0 %v5263_v8  ;;  %v1512_v37 = vsel %vm474_vm3, %v5656_v22, %v4980_v14 }
 0xaf8   :  { %4780 = vmatprep.mubr.msk.bf16.mxu1 %vm5264_vm1, %v5263_v8  ;;  %4773 = vmatpush3.bf16.msra.mxu1 %v5029_v23  ;;  %v1515_v18 = vsel %vm1514_vm5, %v1512_v37, %v4985_v19  ;;  %v5040_v37 = vld [vmem:[%s6653_s13] ss:$8 sps:$4 sm:$0xff]  }
 0xaf9   :  { %4774 = vmatprep.subr.bf16.mxu1 %v5263_v8 }
 0xafa   :  { %4765 = vmatpush3.bf16.msra.mxu0 %v5035_v47 }
 0xafb   :  { %4766 = vmatprep.subr.bf16.mxu0 %v5263_v8 }
 0xafc   :  { %4775 = vmatpush3.bf16.msra.mxu1 %v5030_v28 }
 0xafd   :  { %4776 = vmatprep.subr.bf16.mxu1 %v5263_v8 }
 0xafe   :  { %4767 = vmatpush3.bf16.msra.mxu0 %v5036_v27 }
 0xaff   :  { %1786 = vmatprep.subr.bf16.mxu0 %v5039_v44  ;;  %v5061_v44 = vld [vmem:[%s6655_s14 + $0x40] sm:$0xff]  }
 0xb00   :  { %4777 = vmatpush3.bf16.msra.mxu1 %v5032_v26 }
 0xb01   :  { %4778 = vmatprep.subr.bf16.mxu1 %v5263_v8 }
 0xb04   :  { %4779 = vmatpush3.bf16.msra.mxu1 %v5034_v32 }
 0xb07   :  { %4781 = vmatmul.mubr.msk.bf16.vlgmr.msra.gmra.mrb[44].mxu1 %vm70_vm0, %v61_v41  ;;  %v5276_v41 = vmov 1966171168  }
 0xb08   :  { %v1676_v27 = vunpack.c.l.s4 %v5276_v41  ;;  %v5049_v41 = vld [vmem:[%s6652_s12 + $0x20] ss:$8 sps:$4 sm:$0xff]  }
 0xb0a   :  { %v1677_v33 = vunpack.c.0.s8 %v1676_v27  ;;  %v5052_v27 = vld [vmem:[%s6653_s13 + $0x20] ss:$8 sps:$4 sm:$0xff]  }
 0xbc4   :  { %v1439_v31 = vpop.f32.mrb[28].mxu0 }
 0xbc5   :  { %v4752_v43 = vpop.f32.mrb[29].mxu0 }
 0xbc6   :  { %v1442_v34 = vpop.f32.mrb[30].mxu0 }
 0xbc7   :  { %v4753_v46 = vpop.f32.mrb[31].mxu0 }
 0xbca   :  { %v1482_v36 = vpop.f32.mrb[40].mxu1 }
 0xbcb   :  { %v4987_v54 = vpack.i.bf16 %v1482_v36, %v1439_v31  ;;  %v4758_v58 = vpop.f32.mrb[41].mxu1  ;;  %v1678_v31 = vlaneseq }
 0xbcc   :  { %v1485_v63 = vpop.f32.mrb[42].mxu1 }
 0xbcd   :  { %v4759_v42 = vpop.f32.mrb[43].mxu1  ;;  %4988 = vrot.lane.b32.xlu1 %v4987_v54, %s6662_s18  ;;  %v1679_v43 = vshrl.u32 %v1678_v31, 7  ;;  %v5055_v31 = vld [vmem:[%s6652_s12 + $0x30] ss:$8 sps:$4 sm:$0xff]  }
 0xbcf   :  { %v5925_v34 = vsub.s32 %v1677_v33, %v1679_v43  ;;  %v5929_v54 = vsub.s32 0, %v1679_v43  ;;  %v5057_v33 = vld [vmem:[%s6652_s12 + $0x34] ss:$8 sps:$4 sm:$0xff]   ;;  %v5058_v43 = vld [vmem:[%s6653_s13 + $0x30] ss:$8 sps:$4 sm:$0xff]  }
 0xbda   :  { %v1666_v6 = vpop.f32.mrb[44].mxu1 }
 0xbdb   :  { %v4782_v10 = vpop.f32.mrb[45].mxu1  ;;  %v1681_v22 = vrot.slane %v1666_v6, %v5925_v34 }
 0xbdc   :  { %v1669_v56 = vpop.f32.mrb[46].mxu1 }
 0xbdd   :  { %v4783_v51 = vpop.f32.mrb[47].mxu1  ;;  %v1682_v46 = vcombine.high %v1681_v22, %v1681_v22  ;;  %v1689_v36 = vrot.slane %v1681_v22, %v5925_v34  ;;  %v5060_v22 = vld [vmem:[%s6653_s13 + $0x34] ss:$8 sps:$4 sm:$0xff]  }
 0xbdf   :  { %v1696_v58 = vrot.slane %v1682_v46, %v5925_v34  ;;  %v1700_v63 = vrot.slane %v1689_v36, %v5929_v54  ;;  %v5277_v46 = vmov 0  }
 0xbe0   :  { %1909 = vmatprep.mubr.bf16.mxu1 %v5277_v46 }
 0xbe1   :  { %v1704_v51 = vrot.slane %v1696_v58, %v5929_v54 }
 0xc3f   :  { %v4989_v24 = vpop.permute.xlu1 %4988 }
 0xc40   :  { %v4991_v23 = vunpack.i.h.bf16 %v4989_v24  ;;  %v4990_v28 = vunpack.i.l.bf16 %v4989_v24 }
 0xc42   :  { %v1519_v26 = vsel %vm1517_vm6, %v1516_v29, %v4991_v23  ;;  %v1518_v47 = vsel %vm1517_vm6, %v1515_v18, %v4990_v28  ;;  %v5042_v23 = vld [vmem:[%s6653_s13 + $0x4] ss:$8 sps:$4 sm:$0xff]   ;;  %v5045_v28 = vld [vmem:[%s6652_s12 + $0x14] ss:$8 sps:$4 sm:$0xff]   ;;  %v5043_v18 = vld [vmem:[%s6652_s12 + $0x10] ss:$8 sps:$4 sm:$0xff]  }
 0xc43   :  { %v1520_v32 = vpack.c.bf16 %v1519_v26, %v1518_v47  ;;  %1877 = vmatprep.subr.bf16.mxu1 %v5042_v23  ;;  %v5048_v29 = vld [vmem:[%s6653_s13 + $0x14] ss:$8 sps:$4 sm:$0xff]   ;;  %v5046_v26 = vld [vmem:[%s6653_s13 + $0x10] ss:$8 sps:$4 sm:$0xff]   ;;  %v5051_v47 = vld [vmem:[%s6652_s12 + $0x24] ss:$8 sps:$4 sm:$0xff]  }
 0xc44   :  { %1878 = vmatpush1.bf16.msra.mxu1 %v5040_v37  ;;  %v5063_v37 = vld [vmem:[%s6655_s14 + $0x48] sm:$0xff]  }
 0xc45   :  { %4769 = vmatmul.mubr.msk.bf16.vlgmr.msra.gmra.mrb[32].mxu0 %vm70_vm0, %v1520_v32  ;;  %1879 = vmatprep.subr.bf16.mxu1 %v5048_v29  ;;  %v5054_v32 = vld [vmem:[%s6653_s13 + $0x24] ss:$8 sps:$4 sm:$0xff]   ;;  %v5066_v29 = vld [vmem:[%s6655_s14 + $0x10] sm:$0xff]  }
 0xc46   :  { %1818 = vmatprep.mubr.bf16.mxu0 %v5277_v46  ;;  %v5064_v23 = vld [vmem:[%s6655_s14 + $0x8] sm:$0xff]  }
 0xc48   :  { %1880 = vmatpush1.bf16.msra.mxu1 %v5046_v26  ;;  %v5068_v26 = vld [vmem:[%s6655_s14 + $0x18] sm:$0xff]  }
 0xc49   :  { %1881 = vmatprep.subr.bf16.mxu1 %v5054_v32  ;;  %v5070_v32 = vld [vmem:[%s6655_s14 + $0x20] sm:$0xff]  }
 0xc4c   :  { %1882 = vmatpush1.bf16.msra.mxu1 %v5052_v27  ;;  %v5072_v27 = vld [vmem:[%s6655_s14 + $0x28] sm:$0xff]  }
 0xc4d   :  { %1883 = vmatprep.subr.bf16.mxu1 %v5060_v22  ;;  %v5076_v22 = vld [vmem:[%s6655_s14 + $0x38] sm:$0xff]  }
 0xc50   :  { %1884 = vmatpush1.bf16.msra.mxu1 %v5058_v43  ;;  %v5075_v43 = vld [vmem:[%s6655_s14 + $0x78] sm:$0xff]  }
 0xc51   :  { %4784 = vmatprep.subr.bf16.mxu1 %v5263_v8 }
 0xd18   :  { %v1590_v42 = vpop.f32.mrb[32].mxu0 }
 0xd19   :  { %v1672_v10 = vadd.f32 %v5371_v1, %v1590_v42  ;;  %v4770_v56 = vpop.f32.mrb[33].mxu0 }
 0xd1a   :  { %v1593_v48 = vpop.f32.mrb[34].mxu0 }
 0xd1b   :  { %v5935_v16 = vadd.f32 %v1700_v63, %v1672_v10  ;;  %v1673_v6 = vadd.f32 %v5373_v2, %v1593_v48  ;;  %v4771_v17 = vpop.f32.mrb[35].mxu0  ;;  %v5037_v2 = vld [vmem:[%s6652_s12] ss:$8 sps:$4 sm:$0xff]  }
 0xd1c   :  { %1787 = vmatpush1.bf16.msra.mxu0 %v5037_v2  ;;  %v4245_v17 = vld [vmem:[%s6654_s11] ss:$0 sm:$0xff] }
 0xd1d   :  { %v5938_v14 = vadd.f32 %v1704_v51, %v1673_v6  ;;  %v1710_v39 = vmul.f32 %v5935_v16, %v5935_v16  ;;  %1788 = vmatprep.subr.bf16.mxu0 %v5045_v28  ;;  %v5062_v2 = vld [vmem:[%s6655_s14] sm:$0xff]   ;;  %v5065_v28 = vld [vmem:[%s6655_s14 + $0x50] sm:$0xff]  }
 0xd1f   :  { %v1712_v19 = vsel %vm70_vm0, %v1710_v39, 0.0  ;;  %v1711_v24 = vmul.f32 %v5938_v14, %v5938_v14 }
 0xd20   :  { %1713 = vadd.xlane.f32.xlu0 %v1712_v19  ;;  %1789 = vmatpush1.bf16.msra.mxu0 %v5043_v18  ;;  %v5067_v18 = vld [vmem:[%s6655_s14 + $0x58] sm:$0xff]  }
 0xd21   :  { %v1715_v1 = vsel %vm70_vm0, %v1711_v24, 0.0  ;;  %1790 = vmatprep.subr.bf16.mxu0 %v5051_v47  ;;  %v5069_v47 = vld [vmem:[%s6655_s14 + $0x60] sm:$0xff]  }
 0xd22   :  { %1716 = vadd.xlane.f32.xlu1 %v1715_v1 }
 0xd24   :  { %1791 = vmatpush1.bf16.msra.mxu0 %v5049_v41  ;;  %v5071_v41 = vld [vmem:[%s6655_s14 + $0x68] sm:$0xff]  }
 0xd25   :  { %1792 = vmatprep.subr.bf16.mxu0 %v5057_v33  ;;  %v5074_v33 = vld [vmem:[%s6655_s14 + $0x30] sm:$0xff]  }
 0xd28   :  { %1793 = vmatpush1.bf16.msra.mxu0 %v5055_v31  ;;  %v5073_v31 = vld [vmem:[%s6655_s14 + $0x70] sm:$0xff]  }
 0xd29   :  { %4522 = vmatprep.subr.bf16.mxu0 %v5061_v44 }
 0xdad   :  { %v1714_v36 = vpop.xlane.xlu0 %1713 }
 0xdae   :  { %v1718_v58 = vmul.f32 0.015625, %v1714_v36 }
 0xdaf   :  { %v1717_v63 = vpop.xlane.xlu1 %1716 }
 0xdb0   :  { %v1720_v42 = vadd.f32 1e-05, %v1718_v58  ;;  %v1719_v10 = vmul.f32 0.015625, %v1717_v63 }
 0xdb2   :  { %5177 = vrsqrt.f32 %v1720_v42  ;;  %v1721_v56 = vadd.f32 1e-05, %v1719_v10 }
 0xdb4   :  { %5179 = vrsqrt.f32 %v1721_v56 }
 0xdbc   :  { %v5178_v51 = vpop.eup %5177 }
 0xdbd   :  { %v1724_v48 = vmul.f32 %v5178_v51, %v5935_v16 }
 0xdbe   :  { %v5180_v6 = vpop.eup %5179 }
 0xdbf   :  { %v1725_v39 = vmul.f32 %v5180_v6, %v5938_v14  ;;  %v1732_v19 = vmul.f32 %v4245_v17, %v1724_v48 }
 0xdc1   :  { %v1733_v24 = vmul.f32 %v4245_v17, %v1725_v39 }
 0xdc3   :  { %v1734_v1 = vpack.c.bf16 %v1733_v24, %v1732_v19 }
 0xdc5   :  { %4254 = vmatmul.mubr.msk.bf16.vlgmr.msra.gmra.mrb[36].mxu0 %vm70_vm0, %v1734_v1  ;;  %4263 = vmatmul.mubr.msk.bf16.vlgmr.msra.gmra.mrb[48].mxu1 %vm70_vm0, %v1734_v1 }
 0xdc6   :  { %4792 = vmatprep.mubr.msk.bf16.mxu1 %vm5264_vm1, %v5263_v8  ;;  %4523 = vmatpush3.bf16.msra.mxu0 %v5062_v2 }
 0xdc7   :  { %4524 = vmatprep.subr.bf16.mxu0 %v5063_v37 }
 0xdca   :  { %4525 = vmatpush3.bf16.msra.mxu0 %v5064_v23 }
 0xdcb   :  { %4526 = vmatprep.subr.bf16.mxu0 %v5065_v28 }
 0xdce   :  { %4527 = vmatpush3.bf16.msra.mxu0 %v5066_v29 }
 0xdcf   :  { %4528 = vmatprep.subr.bf16.mxu0 %v5067_v18 }
 0xdd2   :  { %4529 = vmatpush3.bf16.msra.mxu0 %v5068_v26 }
 0xdd3   :  { %4530 = vmatprep.subr.bf16.mxu0 %v5069_v47 }
 0xdd6   :  { %4531 = vmatpush3.bf16.msra.mxu0 %v5070_v32 }
 0xdd7   :  { %4532 = vmatprep.subr.bf16.mxu0 %v5071_v41 }
 0xdda   :  { %4533 = vmatpush3.bf16.msra.mxu0 %v5072_v27 }
 0xddb   :  { %4534 = vmatprep.subr.bf16.mxu0 %v5073_v31 }
 0xdde   :  { %4535 = vmatpush3.bf16.msra.mxu0 %v5074_v33 }
 0xddf   :  { %4536 = vmatprep.subr.bf16.mxu0 %v5075_v43 }
 0xde2   :  { %4537 = vmatpush3.bf16.msra.mxu0 %v5076_v22 }
 0xde3   :  { %4808 = vmatprep.subr.bf16.mxu0 %v5263_v8 }
 0xe98   :  { %v1820_v36 = vpop.f32.mrb[36].mxu0  ;;  %v1911_v58 = vpop.f32.mrb[48].mxu1 }
 0xe99   :  { %v4264_v63 = vmul.f32 -1.442695, %v1820_v36  ;;  %v1822_v42 = vpop.f32.mrb[37].mxu0  ;;  %v1913_v10 = vpop.f32.mrb[49].mxu1 }
 0xe9a   :  { %v4265_v56 = vmul.f32 -1.442695, %v1822_v42  ;;  %v1824_v51 = vpop.f32.mrb[38].mxu0  ;;  %v1915_v48 = vpop.f32.mrb[50].mxu1 }
 0xe9b   :  { %5181 = vpow2.f32 %v4264_v63  ;;  %v4266_v6 = vmul.f32 -1.442695, %v1824_v51  ;;  %v1826_v17 = vpop.f32.mrb[39].mxu0  ;;  %v1917_v39 = vpop.f32.mrb[51].mxu1 }
 0xe9c   :  { %5183 = vpow2.f32 %v4265_v56  ;;  %v4267_v19 = vmul.f32 -1.442695, %v1826_v17 }
 0xe9d   :  { %5185 = vpow2.f32 %v4266_v6 }
 0xe9e   :  { %5187 = vpow2.f32 %v4267_v19 }
 0xea5   :  { %v5182_v24 = vpop.eup %5181 }
 0xea6   :  { %v5184_v1 = vpop.eup %5183  ;;  %v1932_v44 = vadd.f32 1.0, %v5182_v24 }
 0xea7   :  { %v5186_v2 = vpop.eup %5185  ;;  %v1933_v37 = vadd.f32 1.0, %v5184_v1 }
 0xea8   :  { %v5188_v23 = vpop.eup %5187  ;;  %5189 = vrcp.f32 %v1932_v44  ;;  %v1934_v28 = vadd.f32 1.0, %v5186_v2 }
 0xea9   :  { %5191 = vrcp.f32 %v1933_v37  ;;  %v1935_v29 = vadd.f32 1.0, %v5188_v23  ;;  %v5079_v37 = vld [vmem:[%s6668_s29 + $0x28] sm:$0xff]  }
 0xeaa   :  { %5193 = vrcp.f32 %v1934_v28  ;;  %v5080_v23 = vld [vmem:[%s6644_s8 + $0x28] sm:$0xff]   ;;  %v5081_v28 = vld [vmem:[%s6668_s29 + $0x30] sm:$0xff]  }
 0xeab   :  { %5195 = vrcp.f32 %v1935_v29  ;;  %v5082_v29 = vld [vmem:[%s6644_s8 + $0x30] sm:$0xff]  }
 0xeb2   :  { %v5190_v18 = vpop.eup %5189 }
 0xeb3   :  { %v5192_v26 = vpop.eup %5191  ;;  %v1944_v47 = vmul.f32 %v5190_v18, %v1820_v36  ;;  %v5083_v18 = vld [vmem:[%s6668_s29 + $0x38] sm:$0xff]  }
 0xeb4   :  { %v5194_v32 = vpop.eup %5193  ;;  %v1945_v41 = vmul.f32 %v5192_v26, %v1822_v42  ;;  %v5084_v26 = vld [vmem:[%s6644_s8 + $0x38] sm:$0xff]  }
 0xeb5   :  { %v5196_v27 = vpop.eup %5195  ;;  %v1948_v31 = vmul.f32 %v1944_v47, %v1911_v58  ;;  %v1946_v33 = vmul.f32 %v5194_v32, %v1824_v51 }
 0xeb6   :  { %v1949_v43 = vmul.f32 %v1945_v41, %v1913_v10  ;;  %v1947_v22 = vmul.f32 %v5196_v27, %v1826_v17 }
 0xeb7   :  { %v1950_v63 = vmul.f32 %v1946_v33, %v1915_v48 }
 0xeb8   :  { %v1951_v56 = vmul.f32 %v1947_v22, %v1917_v39 }
 0xeb9   :  { %v1952_v6 = vpack.c.bf16 %v1950_v63, %v1948_v31 }
 0xeba   :  { %v1953_v19 = vpack.c.bf16 %v1951_v56, %v1949_v43  ;;  %v4285_v56 = vld [vmem:[%s6647_s5 + $0x1] ss:$0 sm:$0xff] }
 0xebc   :  { %2114 = vmatprep.mubr.bf16.mxu0 %v1953_v19 }
 0xebd   :  { %2115 = vmatmul.mubr.bf16.vlgmr.msra.gmra.mrb[40].mxu0 %v1952_v6 }
 0xebe   :  { %4816 = vmatprep.mubr.msk.bf16.mxu0 %vm5264_vm1, %v5263_v8 }
 0xf90   :  { %v4538_v24 = vpop.f32.mrb[40].mxu0 }
 0xf91   :  { %v4539_v1 = vpop.f32.mrb[41].mxu0 }
 0xf92   :  { %v4540_v44 = vadd.f32 %v4539_v1, %v4538_v24  ;;  %v4541_v36 = vpop.f32.mrb[42].mxu0  ;;  %v5085_v1 = vld [vmem:[%s6643_s7 + $0x20] sm:$0xff]  }
 0xf93   :  { %v4542_v2 = vpop.f32.mrb[43].mxu0 }
 0xf94   :  { %v6058_v42 = vadd.f32 %v4540_v44, %v5935_v16  ;;  %v4543_v58 = vadd.f32 %v4542_v2, %v4541_v36  ;;  %v5077_v16 = vld [vmem:[%s6668_s29 + $0x20] sm:$0xff]   ;;  %v5086_v36 = vld [vmem:[%s6643_s7 + $0x28] sm:$0xff]   ;;  %v5087_v2 = vld [vmem:[%s6643_s7 + $0x30] sm:$0xff]  }
 0xf95   :  { %4785 = vmatpush3.bf16.msra.mxu1 %v5077_v16 }
 0xf96   :  { %v6061_v10 = vadd.f32 %v4543_v58, %v5938_v14  ;;  %v2127_v51 = vmul.f32 %v6058_v42, %v6058_v42  ;;  %v5078_v14 = vld [vmem:[%s6644_s8 + $0x20] sm:$0xff]   ;;  %4786 = vmatprep.subr.bf16.mxu1 %v5263_v8  ;;  %v5088_v58 = vld [vmem:[%s6643_s7 + $0x38] sm:$0xff]  }
 0xf97   :  { %4809 = vmatpush3.bf16.msra.mxu0 %v5078_v14 }
 0xf98   :  { %v2129_v48 = vsel %vm70_vm0, %v2127_v51, 0.0  ;;  %v2128_v17 = vmul.f32 %v6061_v10, %v6061_v10  ;;  %4810 = vmatprep.subr.bf16.mxu0 %v5263_v8 }
 0xf99   :  { %2130 = vadd.xlane.f32.xlu0 %v2129_v48  ;;  %4787 = vmatpush3.bf16.msra.mxu1 %v5079_v37 }
 0xf9a   :  { %v2132_v39 = vsel %vm70_vm0, %v2128_v17, 0.0  ;;  %4788 = vmatprep.subr.bf16.mxu1 %v5263_v8 }
 0xf9b   :  { %4811 = vmatpush3.bf16.msra.mxu0 %v5080_v23 }
 0xf9c   :  { %4812 = vmatprep.subr.bf16.mxu0 %v5263_v8 }
 0xf9d   :  { %2133 = vadd.xlane.f32.xlu0 %v2132_v39  ;;  %4789 = vmatpush3.bf16.msra.mxu1 %v5081_v28 }
 0xf9e   :  { %4790 = vmatprep.subr.bf16.mxu1 %v5263_v8 }
 0xf9f   :  { %4813 = vmatpush3.bf16.msra.mxu0 %v5082_v29 }
 0xfa0   :  { %4814 = vmatprep.subr.bf16.mxu0 %v5263_v8 }
 0xfa1   :  { %4791 = vmatpush3.bf16.msra.mxu1 %v5083_v18 }
 0xfa2   :  { %4796 = vmatprep.subr.bf16.mxu1 %v5263_v8 }
 0xfa3   :  { %4815 = vmatpush3.bf16.msra.mxu0 %v5084_v26 }
 0xfa4   :  { %4832 = vmatprep.subr.bf16.mxu0 %v5263_v8 }
0x1026   :  { %v2131_v47 = vpop.xlane.xlu0 %2130 }
0x1027   :  { %v2135_v32 = vmul.f32 0.015625, %v2131_v47  ;;  %v5257_v47 = vld [vmem:[%s6645_s4] sm:$0xff] }
0x1029   :  { %v2137_v41 = vadd.f32 1e-05, %v2135_v32 }
0x102a   :  { %v2134_v27 = vpop.xlane.xlu0 %2133 }
0x102b   :  { %5197 = vrsqrt.f32 %v2137_v41  ;;  %v2136_v31 = vmul.f32 0.015625, %v2134_v27 }
0x102d   :  { %v2138_v33 = vadd.f32 1e-05, %v2136_v31 }
0x102f   :  { %5199 = vrsqrt.f32 %v2138_v33 }
0x1035   :  { %v5198_v43 = vpop.eup %5197 }
0x1036   :  { %v2141_v22 = vmul.f32 %v5198_v43, %v6058_v42 }
0x1038   :  { %v2149_v19 = vmul.f32 %v4285_v56, %v2141_v22 }
0x1039   :  { %v5200_v63 = vpop.eup %5199 }
0x103a   :  { %v2142_v6 = vmul.f32 %v5200_v63, %v6061_v10 }
0x103c   :  { %v2150_v24 = vmul.f32 %v4285_v56, %v2142_v6 }
0x103e   :  { %v2151_v44 = vpack.c.bf16 %v2150_v24, %v2149_v19 }
0x1040   :  { %4793 = vmatmul.mubr.msk.bf16.vlgmr.msra.gmra.mrb[52].mxu1 %vm70_vm0, %v2151_v44  ;;  %4817 = vmatmul.mubr.msk.bf16.vlgmr.msra.gmra.mrb[44].mxu0 %vm70_vm0, %v2151_v44 }
0x1041   :  { %4797 = vmatpush3.bf16.msra.mxu1 %v5085_v1  ;;  %4804 = vmatprep.mubr.msk.bf16.mxu1 %vm5264_vm1, %v5263_v8 }
0x1042   :  { %4798 = vmatprep.subr.bf16.mxu1 %v5263_v8  ;;  %4834 = vmatprep.mubr.msk.bf16.mxu0 %vm5264_vm1, %v5263_v8 }
0x1045   :  { %4799 = vmatpush3.bf16.msra.mxu1 %v5086_v36 }
0x1046   :  { %4800 = vmatprep.subr.bf16.mxu1 %v5263_v8 }
0x1049   :  { %4801 = vmatpush3.bf16.msra.mxu1 %v5087_v2 }
0x104a   :  { %4802 = vmatprep.subr.bf16.mxu1 %v5263_v8 }
0x104d   :  { %4803 = vmatpush3.bf16.msra.mxu1 %v5088_v58 }
0x104e   :  { %4820 = vmatprep.subr.bf16.mxu1 %v5263_v8 }
0x1050   :  { %4805 = vmatmul.mubr.msk.bf16.vlgmr.msra.gmra.mrb[56].mxu1 %vm70_vm0, %v2151_v44 }
0x1051   :  { %4822 = vmatprep.mubr.msk.bf16.mxu1 %vm5264_vm1, %v5263_v8 }
0x1113   :  { %v6131_v51 = vpop.f32.mrb[52].mxu1  ;;  %v2370_v48 = vpop.f32.mrb[44].mxu0 }
0x1114   :  { %v6133_v17 = vpack.c.bf16 %v2370_v48, %v2370_v48  ;;  %v4794_v39 = vpop.f32.mrb[53].mxu1  ;;  %v4818_v16 = vpop.f32.mrb[45].mxu0  ;;  %v2461_v33 = vmul.f32 %v6131_v51, %v5477_v38  ;;  %v2475_v22 = vmul.f32 %v5257_v47, %v6131_v51 }
0x1115   :  { %v6135_v14 = vpop.f32.mrb[54].mxu1  ;;  %v6137_v37 = vpop.f32.mrb[46].mxu0 }
0x1116   :  { %v6141_v23 = vsel %vm594_vm4, %v6133_v17, 0  ;;  %v4795_v28 = vpop.f32.mrb[55].mxu1  ;;  %v4819_v29 = vpop.f32.mrb[47].mxu0  ;;  %v2462_v63 = vmul.f32 %v6135_v14, %v5507_v53 }
0x1117   :  { %4833 = vmatpush3.bf16.msra.mxu0 %v6141_v23  ;;  %v2473_v29 = vmul.f32 %v6131_v51, %v5525_v61 }
0x1118   :  { %4844 = vmatprep.subr.bf16.mxu0 %v5263_v8 }
0x1123   :  { %v6145_v18 = vpop.f32.mrb[56].mxu1 }
0x1124   :  { %v4806_v26 = vpop.f32.mrb[57].mxu1  ;;  %v2393_v32 = vmul.f32 %v5257_v47, %v6145_v18  ;;  %v2379_v41 = vmul.f32 %v6145_v18, %v5477_v38  ;;  %v5258_v38 = vld [vmem:[%s6645_s4 + $0x8] sm:$0xff]  ;;  %v2391_v19 = vmul.f32 %v6145_v18, %v5525_v61 }
0x1125   :  { %v6153_v27 = vpop.f32.mrb[58].mxu1  ;;  %v2476_v6 = vmul.f32 %v5258_v38, %v6135_v14 }
0x1126   :  { %2397 = vrot.lane.b32.xlu0 %v2393_v32, %s5265_s6  ;;  %2383 = vrot.lane.b32.xlu1 %v2379_v41, %s5266_s21  ;;  %v4807_v31 = vpop.f32.mrb[59].mxu1  ;;  %v2380_v43 = vmul.f32 %v6153_v27, %v5507_v53  ;;  %v2394_v56 = vmul.f32 %v5258_v38, %v6153_v27  ;;  %v5259_v53 = vld [vmem:[%s6646_s3] sm:$0xff] }
0x1127   :  { %v2377_v24 = vmul.f32 %v5259_v53, %v6145_v18  ;;  %v2459_v28 = vmul.f32 %v5259_v53, %v6131_v51  ;;  %v5260_v31 = vld [vmem:[%s6646_s3 + $0x8] sm:$0xff] }
0x1128   :  { %v2460_v53 = vmul.f32 %v5260_v31, %v6135_v14 }
0x112a   :  { %2465 = vrot.lane.b32.xlu1 %v2461_v33, %s5266_s21  ;;  %2385 = vrot.lane.b32.xlu0 %v2380_v43, %s5266_s21  ;;  %v2378_v33 = vmul.f32 %v5260_v31, %v6153_v27 }
0x112e   :  { %2479 = vrot.lane.b32.xlu1 %v2475_v22, %s5265_s6  ;;  %2467 = vrot.lane.b32.xlu0 %v2462_v63, %s5266_s21  ;;  %v2392_v22 = vmul.f32 %v6153_v27, %v5523_v60 }
0x1132   :  { %2399 = vrot.lane.b32.xlu1 %v2394_v56, %s5265_s6 }
0x1136   :  { %2481 = vrot.lane.b32.xlu1 %v2476_v6, %s5265_s6 }
0x1198   :  { %v2398_v1 = vpop.permute.xlu0 %2397  ;;  %v2384_v44 = vpop.permute.xlu1 %2383 }
0x1199   :  { %v2403_v36 = vadd.f32 %v2398_v1, %v2391_v19  ;;  %v2389_v2 = vsub.f32 %v2377_v24, %v2384_v44  ;;  %v2474_v1 = vmul.f32 %v6135_v14, %v5523_v60  ;;  %v6212_v60 = vpack.c.bf16 %v6137_v37, %v6137_v37  ;;  %v6226_v37 = vld [vmem:[%s6648_s2] sm:$0xff]  ;;  %s6669_s2 = smov 80  }
0x119b   :  { %v2405_v58 = vsel %vm361_vm2, %v2389_v2, %v2403_v36 }
0x119c   :  { %v2407_v48 = vpack.c.bf16 %v2405_v58, %v2405_v58  ;;  %v2466_v39 = vpop.permute.xlu1 %2465  ;;  %v2386_v26 = vpop.permute.xlu0 %2385 }
0x119d   :  { %v2471_v32 = vsub.f32 %v2459_v28, %v2466_v39  ;;  %v2390_v61 = vsub.f32 %v2378_v33, %v2386_v26  ;;  %v6216_v26 = vsel %vm594_vm4, %v6212_v60, 0 }
0x119e   :  { %v6183_v16 = vsel %vm474_vm3, %v2407_v48, 0 }
0x119f   :  { %4821 = vmatpush3.bf16.xpose.msra.mxu1 %v6183_v16 }
0x11a0   :  { %v2480_v47 = vpop.permute.xlu1 %2479  ;;  %4826 = vmatprep.subr.bf16.mxu1 %v5263_v8  ;;  %v2468_v19 = vpop.permute.xlu0 %2467 }
0x11a1   :  { %v2485_v41 = vadd.f32 %v2480_v47, %v2473_v29  ;;  %v2472_v2 = vsub.f32 %v2460_v53, %v2468_v19  ;;  %v2703_v19 = vmul.f32 %v6131_v51, %v5578_v3  ;;  %v2717_v53 = vmul.f32 %v6131_v51, %v5586_v5 }
0x11a3   :  { %v2487_v43 = vsel %vm361_vm2, %v2471_v32, %v2485_v41 }
0x11a4   :  { %v2489_v63 = vmul.f32 0.25, %v2487_v43  ;;  %v2400_v38 = vpop.permute.xlu1 %2399 }
0x11a5   :  { %v2404_v56 = vadd.f32 %v2400_v38, %v2392_v22 }
0x11a6   :  { %v2491_v6 = vpack.c.bf16 %v2489_v63, %v2489_v63 }
0x11a7   :  { %v2406_v24 = vsel %vm361_vm2, %v2390_v61, %v2404_v56 }
0x11a8   :  { %v2408_v44 = vpack.c.bf16 %v2406_v24, %v2406_v24  ;;  %4823 = vmatmul.mubr.msk.bf16.vlgmr.msra.gmra.mrb[60].mxu1 %vm474_vm3, %v2491_v6  ;;  %v2482_v36 = vpop.permute.xlu1 %2481  ;;  %v2704_v24 = vmul.f32 %v6135_v14, %v5582_v4 }
0x11a9   :  { %v2486_v58 = vadd.f32 %v2482_v36, %v2474_v1  ;;  %4828 = vmatprep.mubr.msk.bf16.mxu1 %vm5264_vm1, %v5263_v8  ;;  %v2718_v1 = vmul.f32 %v6135_v14, %v5593_v7 }
0x11aa   :  { %v6205_v48 = vsel %vm474_vm3, %v2408_v44, 0 }
0x11ab   :  { %v2488_v39 = vsel %vm361_vm2, %v2472_v2, %v2486_v58  ;;  %4827 = vmatpush3.bf16.xpose.msra.mxu1 %v6205_v48 }
0x11ac   :  { %v2490_v28 = vmul.f32 0.25, %v2488_v39  ;;  %4838 = vmatprep.subr.bf16.mxu1 %v5263_v8  ;;  %v2702_v39 = vmul.f32 %v6135_v14, %v5614_v30 }
0x11ae   :  { %v2492_v29 = vpack.c.bf16 %v2490_v28, %v2490_v28 }
0x11b2   :  { %4829 = vmatmul.mubr.msk.bf16.vlgmr.msra.gmra.mrb[64].mxu1 %vm474_vm3, %v2492_v29 }
0x11b3   :  { %4839 = vmatpush3.bf16.msra.mxu1 %v6216_v26  ;;  %4840 = vmatprep.mubr.msk.bf16.mxu1 %vm5264_vm1, %v5263_v8 }
0x11b4   :  { %4850 = vmatprep.subr.bf16.mxu1 %v5263_v8 }
0x127b   :  { %v2533_v47 = vpop.f32.mrb[60].mxu1 }
0x127c   :  { %v2534_v32 = vadd.f32 %v6226_v37, %v2533_v47  ;;  %v4824_v41 = vpop.f32.mrb[61].mxu1 }
0x127d   :  { %v2536_v31 = vpop.f32.mrb[62].mxu1 }
0x127e   :  { %v4825_v33 = vpop.f32.mrb[63].mxu1  ;;  %v2585_v43 = vsel %vm361_vm2, %v2534_v32, -inf }
0x127f   :  { %2586 = vmax.xlane.f32.xlu0 %v2585_v43  ;;  %v2701_v43 = vmul.f32 %v6131_v51, %v5606_v15 }
0x1285   :  { %v2579_v22 = vpop.f32.mrb[64].mxu1 }
0x1286   :  { %v2580_v63 = vadd.f32 %v6226_v37, %v2579_v22  ;;  %v4830_v38 = vpop.f32.mrb[65].mxu1 }
0x1287   :  { %v2582_v61 = vpop.f32.mrb[66].mxu1 }
0x1288   :  { %v4831_v56 = vpop.f32.mrb[67].mxu1  ;;  %v2588_v6 = vsel %vm361_vm2, %v2580_v63, -inf  ;;  %v2715_v61 = vmul.f32 %v6131_v51, %v5608_v20 }
0x1289   :  { %2589 = vmax.xlane.f32.xlu1 %v2588_v6 }
0x1295   :  { %2707 = vrot.lane.b32.xlu0 %v2703_v19, %s5266_s21 }
0x1299   :  { %2721 = vrot.lane.b32.xlu0 %v2717_v53, %s5265_s6  ;;  %v2716_v53 = vmul.f32 %v6135_v14, %v5610_v25 }
0x129a   :  { %2709 = vrot.lane.b32.xlu1 %v2704_v24, %s5266_s21 }
0x129e   :  { %2723 = vrot.lane.b32.xlu1 %v2718_v1, %s5265_s6 }
0x130c   :  { %v2587_v44 = vpop.xlane.xlu0 %2586 }
0x130d   :  { %v2591_v36 = vsub.f32 %v2534_v32, %v2587_v44 }
0x130f   :  { %v2593_v2 = vmul.f32 1.442695, %v2591_v36 }
0x1310   :  { %v2708_v33 = vpop.permute.xlu0 %2707 }
0x1311   :  { %5201 = vpow2.f32 %v2593_v2  ;;  %v2713_v22 = vsub.f32 %v2701_v43, %v2708_v33 }
0x1314   :  { %v2722_v38 = vpop.permute.xlu0 %2721 }
0x1315   :  { %v2727_v56 = vadd.f32 %v2722_v38, %v2715_v61 }
0x1316   :  { %v2590_v58 = vpop.xlane.xlu1 %2589 }
0x1317   :  { %v2592_v31 = vsub.f32 %v2580_v63, %v2590_v58 }
0x1319   :  { %v2595_v32 = vmul.f32 1.442695, %v2592_v31 }
0x131a   :  { %v2710_v28 = vpop.permute.xlu1 %2709 }
0x131b   :  { %v5202_v29 = vpop.eup %5201  ;;  %v2714_v47 = vsub.f32 %v2702_v39, %v2710_v28  ;;  %5203 = vpow2.f32 %v2595_v32 }
0x131c   :  { %v2597_v41 = vsel %vm361_vm2, %v5202_v29, 0.0 }
0x131d   :  { %2598 = vadd.xlane.f32.xlu0 %v2597_v41  ;;  %2733 = vrot.lane.b32.xlu1 %v2714_v47, %s5269_s26 }
0x131e   :  { %v2724_v63 = vpop.permute.xlu1 %2723 }
0x131f   :  { %v2728_v24 = vadd.f32 %v2724_v63, %v2716_v53 }
0x1325   :  { %v5204_v6 = vpop.eup %5203 }
0x1326   :  { %v2600_v19 = vsel %vm361_vm2, %v5204_v6, 0.0 }
0x1333   :  { %2731 = vrot.lane.b32.xlu0 %v2713_v22, %s5269_s26 }
0x1337   :  { %2739 = vrot.lane.b32.xlu0 %v2727_v56, %s5269_s26 }
0x1341   :  { %2601 = vadd.xlane.f32.xlu1 %v2600_v19 }
0x1352   :  { %2741 = vrot.lane.b32.xlu1 %v2728_v24, %s5269_s26 }
0x13aa   :  { %v2599_v1 = vpop.xlane.xlu0 %2598 }
0x13ab   :  { %5205 = vrcp.f32 %v2599_v1 }
0x13ae   :  { %v2732_v44 = vpop.permute.xlu0 %2731 }
0x13b2   :  { %v2740_v58 = vpop.permute.xlu0 %2739 }
0x13b3   :  { %v2745_v28 = vsel %vm361_vm2, %v2732_v44, %v2740_v58 }
0x13b4   :  { %v2747_v47 = vmul.f32 0.25, %v2745_v28 }
0x13b5   :  { %v5206_v36 = vpop.eup %5205 }
0x13b6   :  { %v2605_v2 = vmul.f32 %v5206_v36, %v5202_v29  ;;  %v2749_v41 = vpack.c.bf16 %v2747_v47, %v2747_v47  ;;  %v2734_v29 = vpop.permute.xlu1 %2733  ;;  %v2949_v47 = vmul.f32 %v6131_v51, %v5676_v55  ;;  %v2428_v55 = vmul.f32 %v6153_v27, %v5593_v7 }
0x13b7   :  { %v2412_v7 = vmul.f32 %v6153_v27, %v5614_v30  ;;  %v2948_v30 = vmul.f32 %v6135_v14, %v5729_v59 }
0x13b8   :  { %v2607_v39 = vpack.c.bf16 %v2605_v2, %v2605_v2  ;;  %v2427_v2 = vmul.f32 %v6145_v18, %v5586_v5 }
0x13ba   :  { %4835 = vmatmul.mubr.msk.bf16.vlgmr.msra.gmra.mrb[48].mxu0 %vm361_vm2, %v2607_v39 }
0x13bb   :  { %4845 = vmatpush3.bf16.xpose.msra.mxu0 %v6183_v16  ;;  %4846 = vmatprep.mubr.msk.bf16.mxu0 %vm5264_vm1, %v5263_v8 }
0x13bc   :  { %4856 = vmatprep.subr.bf16.mxu0 %v5263_v8 }
0x13c2   :  { %4847 = vmatmul.mubr.msk.bf16.vlgmr.msra.gmra.mrb[52].mxu0 %vm474_vm3, %v2749_v41 }
0x13c3   :  { %4857 = vmatpush3.bf16.msra.mxu0 %v6141_v23  ;;  %4858 = vmatprep.mubr.msk.bf16.mxu0 %vm5264_vm1, %v5263_v8 }
0x13c4   :  { %4868 = vmatprep.subr.bf16.mxu0 %v5263_v8 }
0x13ce   :  { %v2602_v31 = vpop.xlane.xlu1 %2601 }
0x13cf   :  { %5207 = vrcp.f32 %v2602_v31 }
0x13d2   :  { %v2742_v43 = vpop.permute.xlu1 %2741 }
0x13d3   :  { %v2746_v22 = vsel %vm361_vm2, %v2734_v29, %v2742_v43  ;;  %v2414_v43 = vmul.f32 %v6153_v27, %v5582_v4 }
0x13d4   :  { %v2748_v23 = vmul.f32 0.25, %v2746_v22 }
0x13d6   :  { %v2750_v38 = vpack.c.bf16 %v2748_v23, %v2748_v23 }
0x13d9   :  { %v5208_v16 = vpop.eup %5207 }
0x13da   :  { %v2606_v33 = vmul.f32 %v5208_v16, %v5204_v6 }
0x13dc   :  { %v2608_v32 = vpack.c.bf16 %v2606_v33, %v2606_v33 }
0x13de   :  { %4841 = vmatmul.mubr.msk.bf16.vlgmr.msra.gmra.mrb[68].mxu1 %vm361_vm2, %v2608_v32  ;;  %v2964_v32 = vmul.f32 %v6135_v14, %v5705_v12  ;;  %v2426_v12 = vmul.f32 %v6153_v27, %v5610_v25 }
0x13df   :  { %4851 = vmatpush3.bf16.xpose.msra.mxu1 %v6205_v48  ;;  %4852 = vmatprep.mubr.msk.bf16.mxu1 %vm5264_vm1, %v5263_v8 }
0x13e0   :  { %4862 = vmatprep.subr.bf16.mxu1 %v5263_v8 }
0x13e6   :  { %4853 = vmatmul.mubr.msk.bf16.vlgmr.msra.gmra.mrb[72].mxu1 %vm474_vm3, %v2750_v38  ;;  %v2411_v38 = vmul.f32 %v6145_v18, %v5606_v15 }
0x13e7   :  { %4863 = vmatpush3.bf16.msra.mxu1 %v6216_v26  ;;  %4864 = vmatprep.mubr.msk.bf16.mxu1 %vm5264_vm1, %v5263_v8  ;;  %v2413_v26 = vmul.f32 %v6145_v18, %v5578_v3  ;;  %v2963_v3 = vmul.f32 %v6131_v51, %v5700_v9  ;;  %v2950_v9 = vmul.f32 %v6135_v14, %v5695_v0 }
0x13e8   :  { %4874 = vmatprep.subr.bf16.mxu1 %v5263_v8 }
0x148d   :  { %v6280_v61 = vpop.f32.mrb[48].mxu0 }
0x148e   :  { %v4836_v56 = vpop.f32.mrb[49].mxu0 }
0x148f   :  { %v2652_v48 = vpop.f32.mrb[50].mxu0 }
0x1490   :  { %v4837_v6 = vpop.f32.mrb[51].mxu0 }
0x1495   :  { %v2788_v19 = vpop.f32.mrb[52].mxu0 }
0x1496   :  { %v2789_v63 = vadd.f32 %v6226_v37, %v2788_v19  ;;  %v4848_v53 = vpop.f32.mrb[53].mxu0  ;;  %v2425_v19 = vmul.f32 %v6145_v18, %v5608_v20 }
0x1497   :  { %v2791_v24 = vpop.f32.mrb[54].mxu0 }
0x1498   :  { %v4849_v1 = vpop.f32.mrb[55].mxu0  ;;  %v2837_v44 = vsel %vm361_vm2, %v2789_v63, -inf }
0x1499   :  { %2838 = vmax.xlane.f32.xlu0 %v2837_v44 }
0x14af   :  { %2417 = vrot.lane.b32.xlu0 %v2413_v26, %s5266_s21 }
0x14b1   :  { %v6287_v36 = vpop.f32.mrb[68].mxu1 }
0x14b2   :  { %v4842_v58 = vpop.f32.mrb[69].mxu1 }
0x14b3   :  { %2431 = vrot.lane.b32.xlu0 %v2427_v2, %s5265_s6  ;;  %v2698_v39 = vpop.f32.mrb[70].mxu1 }
0x14b4   :  { %v4843_v28 = vpop.f32.mrb[71].mxu1 }
0x14b7   :  { %2953 = vrot.lane.b32.xlu0 %v2949_v47, %s5266_s21 }
0x14b9   :  { %v2831_v41 = vpop.f32.mrb[72].mxu1 }
0x14ba   :  { %v2832_v29 = vadd.f32 %v6226_v37, %v2831_v41  ;;  %v4854_v31 = vpop.f32.mrb[73].mxu1  ;;  %v2947_v41 = vmul.f32 %v6131_v51, %v5720_v40 }
0x14bb   :  { %2967 = vrot.lane.b32.xlu0 %v2963_v3, %s5265_s6  ;;  %v2834_v5 = vpop.f32.mrb[74].mxu1 }
0x14bc   :  { %v4855_v16 = vpop.f32.mrb[75].mxu1  ;;  %v2840_v33 = vsel %vm361_vm2, %v2832_v29, -inf }
0x14bd   :  { %2841 = vmax.xlane.f32.xlu1 %v2840_v33  ;;  %v2962_v16 = vmul.f32 %v6135_v14, %v5731_v62 }
0x14ce   :  { %2419 = vrot.lane.b32.xlu1 %v2414_v43, %s5266_s21 }
0x14d2   :  { %2433 = vrot.lane.b32.xlu1 %v2428_v55, %s5265_s6 }
0x14d6   :  { %2955 = vrot.lane.b32.xlu1 %v2950_v9, %s5266_s21 }
0x14da   :  { %2969 = vrot.lane.b32.xlu1 %v2964_v32, %s5265_s6 }
0x1526   :  { %v2839_v22 = vpop.xlane.xlu0 %2838 }
0x1527   :  { %v2843_v20 = vsub.f32 %v2789_v63, %v2839_v22  ;;  %v2961_v63 = vmul.f32 %v6131_v51, %v5722_v52 }
0x1529   :  { %v2845_v18 = vmul.f32 1.442695, %v2843_v20 }
0x152a   :  { %v2418_v23 = vpop.permute.xlu0 %2417 }
0x152b   :  { %v2423_v48 = vsub.f32 %v2411_v38, %v2418_v23  ;;  %5209 = vpow2.f32 %v2845_v18 }
0x152e   :  { %v2432_v0 = vpop.permute.xlu0 %2431 }
0x152f   :  { %v2437_v1 = vadd.f32 %v2432_v0, %v2425_v19 }
0x1532   :  { %v2954_v59 = vpop.permute.xlu0 %2953 }
0x1533   :  { %v2959_v3 = vsub.f32 %v2947_v41, %v2954_v59 }
0x1535   :  { %v5210_v27 = vpop.eup %5209 }
0x1536   :  { %v2849_v39 = vsel %vm361_vm2, %v5210_v27, 0.0  ;;  %v2968_v31 = vpop.permute.xlu0 %2967 }
0x154a   :  { %v2842_v4 = vpop.xlane.xlu1 %2841 }
0x154b   :  { %v2844_v58 = vsub.f32 %v2832_v29, %v2842_v4  ;;  %v2973_v29 = vadd.f32 %v2968_v31, %v2961_v63 }
0x154d   :  { %v2847_v25 = vmul.f32 1.442695, %v2844_v58 }
0x154e   :  { %v2420_v56 = vpop.permute.xlu1 %2419 }
0x154f   :  { %v2424_v6 = vsub.f32 %v2412_v7, %v2420_v56  ;;  %5211 = vpow2.f32 %v2847_v25 }
0x1551   :  { %v4992_v53 = vpack.i.bf16 %v2424_v6, %v2423_v48 }
0x1552   :  { %v2434_v24 = vpop.permute.xlu1 %2433 }
0x1553   :  { %v2438_v44 = vadd.f32 %v2434_v24, %v2426_v12  ;;  %4993 = vrot.lane.b32.xlu0 %v4992_v53, %s5269_s26 }
0x1555   :  { %v4997_v15 = vpack.i.bf16 %v2438_v44, %v2437_v1 }
0x1556   :  { %v2956_v26 = vpop.permute.xlu1 %2955 }
0x1557   :  { %4998 = vrot.lane.b32.xlu1 %v4997_v15, %s5269_s26  ;;  %v2960_v2 = vsub.f32 %v2948_v30, %v2956_v26 }
0x1559   :  { %v5212_v28 = vpop.eup %5211 }
0x155a   :  { %v2852_v47 = vsel %vm361_vm2, %v5212_v28, 0.0  ;;  %v2970_v5 = vpop.permute.xlu1 %2969 }
0x155b   :  { %2979 = vrot.lane.b32.xlu1 %v2960_v2, %s5272_s0  ;;  %v2974_v33 = vadd.f32 %v2970_v5, %v2962_v16 }
0x1572   :  { %2850 = vadd.xlane.f32.xlu0 %v2849_v39 }
0x157f   :  { %2853 = vadd.xlane.f32.xlu1 %v2852_v47 }
0x1588   :  { %2977 = vrot.lane.b32.xlu0 %v2959_v3, %s5272_s0 }
0x158c   :  { %2985 = vrot.lane.b32.xlu0 %v2973_v29, %s5272_s0 }
0x1590   :  { %2987 = vrot.lane.b32.xlu1 %v2974_v33, %s5272_s0 }
0x15c5   :  { %v4994_v43 = vpop.permute.xlu0 %4993 }
0x15c6   :  { %v4995_v22 = vunpack.i.l.bf16 %v4994_v43  ;;  %v4996_v12 = vunpack.i.h.bf16 %v4994_v43 }
0x15c9   :  { %v4999_v40 = vpop.permute.xlu1 %4998 }
0x15ca   :  { %v5000_v9 = vunpack.i.l.bf16 %v4999_v40  ;;  %v5001_v19 = vunpack.i.h.bf16 %v4999_v40 }
0x15cc   :  { %v2455_v23 = vsel %vm361_vm2, %v4995_v22, %v5000_v9  ;;  %v2456_v1 = vsel %vm361_vm2, %v4996_v12, %v5001_v19  ;;  %v3212_v12 = vmul.f32 %v6135_v14, %v5827_v45  ;;  %v3225_v45 = vmul.f32 %v6131_v51, %v5820_v49 }
0x15cd   :  { %v2980_v52 = vpop.permute.xlu1 %2979  ;;  %v2457_v56 = vpack.c.bf16 %v2455_v23, %v2455_v23  ;;  %v2458_v30 = vpack.c.bf16 %v2456_v1, %v2456_v1 }
0x15cf   :  { %v6340_v0 = vsel %vm474_vm3, %v2457_v56, 0  ;;  %v6353_v18 = vsel %vm474_vm3, %v2458_v30, 0  ;;  %v3228_v56 = vmul.f32 %v6135_v14, %v5809_v21  ;;  %v3211_v30 = vmul.f32 %v6131_v51, %v5817_v35 }
0x15ff   :  { %v2851_v55 = vpop.xlane.xlu0 %2850 }
0x1600   :  { %5213 = vrcp.f32 %v2851_v55 }
0x1603   :  { %v2978_v32 = vpop.permute.xlu0 %2977 }
0x1607   :  { %v2986_v7 = vpop.permute.xlu0 %2985 }
0x1608   :  { %v2991_v6 = vsel %vm361_vm2, %v2978_v32, %v2986_v7  ;;  %v3214_v7 = vmul.f32 %v6135_v14, %v5799_v11 }
0x1609   :  { %v2993_v53 = vmul.f32 0.25, %v2991_v6 }
0x160a   :  { %v5214_v4 = vpop.eup %5213 }
0x160b   :  { %v2857_v38 = vmul.f32 %v5214_v4, %v5210_v27  ;;  %v2995_v24 = vpack.c.bf16 %v2993_v53, %v2993_v53  ;;  %v3213_v4 = vmul.f32 %v6131_v51, %v5786_v57 }
0x160c   :  { %v2854_v62 = vpop.xlane.xlu1 %2853 }
0x160d   :  { %5215 = vrcp.f32 %v2854_v62  ;;  %v2859_v48 = vpack.c.bf16 %v2857_v38, %v2857_v38  ;;  %v3227_v38 = vmul.f32 %v6131_v51, %v5804_v13 }
0x160f   :  { %4859 = vmatmul.mubr.msk.bf16.vlgmr.msra.gmra.mrb[56].mxu0 %vm361_vm2, %v2859_v48 }
0x1610   :  { %4869 = vmatpush3.bf16.xpose.msra.mxu0 %v6340_v0  ;;  %4870 = vmatprep.mubr.msk.bf16.mxu0 %vm5264_vm1, %v5263_v8  ;;  %v2988_v26 = vpop.permute.xlu1 %2987 }
0x1611   :  { %4880 = vmatprep.subr.bf16.mxu0 %v5263_v8  ;;  %v2992_v20 = vsel %vm361_vm2, %v2980_v52, %v2988_v26 }
0x1612   :  { %v2994_v58 = vmul.f32 0.25, %v2992_v20 }
0x1614   :  { %v2996_v25 = vpack.c.bf16 %v2994_v58, %v2994_v58 }
0x1617   :  { %v5216_v44 = vpop.eup %5215  ;;  %4871 = vmatmul.mubr.msk.bf16.vlgmr.msra.gmra.mrb[60].mxu0 %vm474_vm3, %v2995_v24 }
0x1618   :  { %v2858_v15 = vmul.f32 %v5216_v44, %v5212_v28  ;;  %4882 = vmatprep.mubr.msk.bf16.mxu0 %vm5264_vm1, %v5263_v8 }
0x161a   :  { %v2860_v2 = vpack.c.bf16 %v2858_v15, %v2858_v15 }
0x161c   :  { %4865 = vmatmul.mubr.msk.bf16.vlgmr.msra.gmra.mrb[76].mxu1 %vm361_vm2, %v2860_v2 }
0x161d   :  { %4875 = vmatpush3.bf16.xpose.msra.mxu1 %v6353_v18  ;;  %4876 = vmatprep.mubr.msk.bf16.mxu1 %vm5264_vm1, %v5263_v8 }
0x161e   :  { %4886 = vmatprep.subr.bf16.mxu1 %v5263_v8 }
0x1624   :  { %4877 = vmatmul.mubr.msk.bf16.vlgmr.msra.gmra.mrb[80].mxu1 %vm474_vm3, %v2996_v25 }
0x1625   :  { %4888 = vmatprep.mubr.msk.bf16.mxu1 %vm5264_vm1, %v5263_v8 }
0x16e2   :  { %v6362_v27 = vpop.f32.mrb[56].mxu0 }
0x16e3   :  { %v4860_v39 = vpop.f32.mrb[57].mxu0 }
0x16e4   :  { %v2901_v28 = vpop.f32.mrb[58].mxu0 }
0x16e5   :  { %v4861_v47 = vpop.f32.mrb[59].mxu0  ;;  %v3226_v28 = vmul.f32 %v6135_v14, %v5829_v50 }
0x16ea   :  { %v3037_v59 = vpop.f32.mrb[60].mxu0 }
0x16eb   :  { %v3038_v41 = vadd.f32 %v6226_v37, %v3037_v59  ;;  %v4872_v3 = vpop.f32.mrb[61].mxu0 }
0x16ec   :  { %v3040_v31 = vpop.f32.mrb[62].mxu0 }
0x16ed   :  { %v4873_v63 = vpop.f32.mrb[63].mxu0  ;;  %v3089_v29 = vsel %vm361_vm2, %v3038_v41, -inf }
0x16ee   :  { %3090 = vmax.xlane.f32.xlu0 %v3089_v29 }
0x16ef   :  { %v6366_v5 = vpop.f32.mrb[76].mxu1 }
0x16f0   :  { %v5002_v16 = vpack.i.bf16 %v6366_v5, %v6362_v27  ;;  %v4866_v33 = vpop.f32.mrb[77].mxu1 }
0x16f1   :  { %v2944_v43 = vpop.f32.mrb[78].mxu1 }
0x16f2   :  { %v4867_v55 = vpop.f32.mrb[79].mxu1 }
0x16f7   :  { %v3083_v40 = vpop.f32.mrb[80].mxu1 }
0x16f8   :  { %v3084_v9 = vadd.f32 %v6226_v37, %v3083_v40  ;;  %v4878_v32 = vpop.f32.mrb[81].mxu1 }
0x16f9   :  { %v3086_v22 = vpop.f32.mrb[82].mxu1 }
0x16fa   :  { %v4879_v52 = vpop.f32.mrb[83].mxu1  ;;  %v3092_v23 = vsel %vm361_vm2, %v3084_v9, -inf }
0x16fb   :  { %3093 = vmax.xlane.f32.xlu1 %v3092_v23 }
0x1704   :  { %3217 = vrot.lane.b32.xlu0 %v3213_v4, %s5266_s21 }
0x1708   :  { %3231 = vrot.lane.b32.xlu0 %v3227_v38, %s5265_s6 }
0x170c   :  { %3114 = vrot.lane.b32.xlu0 %v6133_v17, %s5269_s26  ;;  %3219 = vrot.lane.b32.xlu1 %v3214_v7, %s5266_s21  ;;  %s6671_s21 = smov 32  }
0x1710   :  { %3233 = vrot.lane.b32.xlu1 %v3228_v56, %s5265_s6  ;;  %s6670_s6 = smov 16  }
0x1714   :  { %3163 = vrot.lane.b32.xlu1 %v6212_v60, %s5269_s26 }
0x177b   :  { %v3091_v57 = vpop.xlane.xlu0 %3090 }
0x177c   :  { %v3095_v13 = vsub.f32 %v3038_v41, %v3091_v57 }
0x177e   :  { %v3097_v62 = vmul.f32 1.442695, %v3095_v13 }
0x177f   :  { %v3218_v48 = vpop.permute.xlu0 %3217 }
0x1780   :  { %5217 = vpow2.f32 %v3097_v62  ;;  %v3223_v2 = vsub.f32 %v3211_v30, %v3218_v48 }
0x1783   :  { %v3232_v6 = vpop.permute.xlu0 %3231 }
0x1784   :  { %v3237_v58 = vadd.f32 %v3232_v6, %v3225_v45 }
0x1787   :  { %v3115_v11 = vpop.permute.xlu0 %3114 }
0x1788   :  { %v3120_v19 = vsel %vm594_vm4, %v3115_v11, 0  ;;  %v3094_v17 = vpop.xlane.xlu1 %3093 }
0x1789   :  { %4881 = vmatpush3.bf16.msra.mxu0 %v3120_v19  ;;  %v3096_v26 = vsub.f32 %v3084_v9, %v3094_v17 }
0x178a   :  { %v5218_v53 = vpop.eup %5217  ;;  %4892 = vmatprep.subr.bf16.mxu0 %v5263_v8 }
0x178b   :  { %v3101_v21 = vsel %vm361_vm2, %v5218_v53, 0.0  ;;  %v3099_v20 = vmul.f32 1.442695, %v3096_v26 }
0x178c   :  { %3102 = vadd.xlane.f32.xlu0 %v3101_v21  ;;  %v3220_v60 = vpop.permute.xlu1 %3219 }
0x178d   :  { %v3224_v24 = vsub.f32 %v3212_v12, %v3220_v60  ;;  %5219 = vpow2.f32 %v3099_v20 }
0x178f   :  { %3243 = vrot.lane.b32.xlu1 %v3224_v24, %s6669_s2 }
0x1790   :  { %v3234_v1 = vpop.permute.xlu1 %3233 }
0x1791   :  { %v3238_v47 = vadd.f32 %v3234_v1, %v3226_v28 }
0x1794   :  { %v3164_v44 = vpop.permute.xlu1 %3163 }
0x1795   :  { %v3169_v15 = vsel %vm594_vm4, %v3164_v44, 0 }
0x1796   :  { %4887 = vmatpush3.bf16.msra.mxu1 %v3169_v15 }
0x1797   :  { %4898 = vmatprep.subr.bf16.mxu1 %v5263_v8  ;;  %v5220_v25 = vpop.eup %5219 }
0x1798   :  { %v3104_v39 = vsel %vm361_vm2, %v5220_v25, 0.0 }
0x17a2   :  { %3241 = vrot.lane.b32.xlu0 %v3223_v2, %s6669_s2 }
0x17a6   :  { %3249 = vrot.lane.b32.xlu0 %v3237_v58, %s6669_s2 }
0x17b3   :  { %3105 = vadd.xlane.f32.xlu1 %v3104_v39 }
0x17c4   :  { %3251 = vrot.lane.b32.xlu1 %v3238_v47, %s6669_s2 }
0x1801   :  { %v3244_v63 = vpop.permute.xlu1 %3243 }
0x1819   :  { %v3103_v35 = vpop.xlane.xlu0 %3102 }
0x181a   :  { %5221 = vrcp.f32 %v3103_v35 }
0x181d   :  { %v3242_v59 = vpop.permute.xlu0 %3241 }
0x1821   :  { %v3250_v41 = vpop.permute.xlu0 %3249 }
0x1822   :  { %v3255_v31 = vsel %vm361_vm2, %v3242_v59, %v3250_v41  ;;  %v5089_v59 = vld [vmem:[%s6649_s10 + $0x20] sm:$0xff]   ;;  %v5093_v41 = vld [vmem:[%s6650_s9 + $0x28] sm:$0xff]  }
0x1823   :  { %v3257_v50 = vmul.f32 0.25, %v3255_v31  ;;  %v5095_v31 = vld [vmem:[%s6650_s9 + $0x30] sm:$0xff]  }
0x1824   :  { %v5222_v49 = vpop.eup %5221 }
0x1825   :  { %v3109_v51 = vmul.f32 %v5222_v49, %v5218_v53  ;;  %v3259_v14 = vpack.c.bf16 %v3257_v50, %v3257_v50  ;;  %v5091_v49 = vld [vmem:[%s6650_s9 + $0x20] sm:$0xff]   ;;  %v5094_v50 = vld [vmem:[%s6649_s10 + $0x38] sm:$0xff]  }
0x1827   :  { %v3111_v3 = vpack.c.bf16 %v3109_v51, %v3109_v51  ;;  %v5090_v51 = vld [vmem:[%s6649_s10 + $0x28] sm:$0xff]  }
0x1829   :  { %4883 = vmatmul.mubr.msk.bf16.vlgmr.msra.gmra.mrb[64].mxu0 %vm361_vm2, %v3111_v3  ;;  %v5092_v3 = vld [vmem:[%s6649_s10 + $0x30] sm:$0xff]  }
0x182a   :  { %4893 = vmatpush3.bf16.xpose.msra.mxu0 %v6340_v0  ;;  %4894 = vmatprep.mubr.msk.bf16.mxu0 %vm5264_vm1, %v5263_v8 }
0x182b   :  { %4904 = vmatprep.subr.bf16.mxu0 %v5263_v8 }
0x1831   :  { %4895 = vmatmul.mubr.msk.bf16.vlgmr.msra.gmra.mrb[68].mxu0 %vm474_vm3, %v3259_v14  ;;  %v5262_v14 = vld [vmem:[%s6651_s1] sm:$0x1] }
0x1832   :  { %4905 = vmatpush3.bf16.msra.mxu0 %v3120_v19  ;;  %4906 = vmatprep.mubr.msk.bf16.mxu0 %vm5264_vm1, %v5263_v8 }
0x1833   :  { %4916 = vmatprep.subr.bf16.mxu0 %v5263_v8 }
0x1840   :  { %v3106_v29 = vpop.xlane.xlu1 %3105 }
0x1841   :  { %5223 = vrcp.f32 %v3106_v29 }
0x1844   :  { %v3252_v43 = vpop.permute.xlu1 %3251 }
0x1845   :  { %v3256_v40 = vsel %vm361_vm2, %v3244_v63, %v3252_v43  ;;  %v5096_v43 = vld [vmem:[%s6650_s9 + $0x38] sm:$0xff]  }
0x1846   :  { %v3258_v9 = vmul.f32 0.25, %v3256_v40 }
0x1848   :  { %v3260_v32 = vpack.c.bf16 %v3258_v9, %v3258_v9 }
0x184b   :  { %v5224_v33 = vpop.eup %5223 }
0x184c   :  { %v3110_v0 = vmul.f32 %v5224_v33, %v5220_v25 }
0x184e   :  { %v3112_v55 = vpack.c.bf16 %v3110_v0, %v3110_v0 }
0x1850   :  { %4889 = vmatmul.mubr.msk.bf16.vlgmr.msra.gmra.mrb[84].mxu1 %vm361_vm2, %v3112_v55 }
0x1851   :  { %4899 = vmatpush3.bf16.xpose.msra.mxu1 %v6353_v18  ;;  %4900 = vmatprep.mubr.msk.bf16.mxu1 %vm5264_vm1, %v5263_v8 }
0x1852   :  { %4910 = vmatprep.subr.bf16.mxu1 %v5263_v8 }
0x1858   :  { %4901 = vmatmul.mubr.msk.bf16.vlgmr.msra.gmra.mrb[88].mxu1 %vm474_vm3, %v3260_v32 }
0x1859   :  { %4911 = vmatpush3.bf16.msra.mxu1 %v3169_v15  ;;  %4912 = vmatprep.mubr.msk.bf16.mxu1 %vm5264_vm1, %v5263_v8 }
0x185a   :  { %4928 = vmatprep.subr.bf16.mxu1 %v5263_v8 }
0x18fc   :  { %v3156_v22 = vpop.f32.mrb[64].mxu0 }
0x18fd   :  { %v4884_v52 = vpop.f32.mrb[65].mxu0 }
0x18fe   :  { %v3159_v23 = vpop.f32.mrb[66].mxu0 }
0x18ff   :  { %v4885_v4 = vpop.f32.mrb[67].mxu0 }
0x1904   :  { %v3298_v18 = vpop.f32.mrb[68].mxu0 }
0x1905   :  { %v3299_v38 = vadd.f32 %v6226_v37, %v3298_v18  ;;  %v4896_v7 = vpop.f32.mrb[69].mxu0 }
0x1906   :  { %v3301_v56 = vpop.f32.mrb[70].mxu0 }
0x1907   :  { %v4897_v57 = vpop.f32.mrb[71].mxu0  ;;  %v3347_v13 = vsel %vm361_vm2, %v3299_v38, -inf }
0x1908   :  { %3348 = vmax.xlane.f32.xlu0 %v3347_v13 }
0x1923   :  { %v3205_v62 = vpop.f32.mrb[84].mxu1 }
0x1924   :  { %v5007_v48 = vpack.i.bf16 %v3205_v62, %v3156_v22  ;;  %v4890_v6 = vpop.f32.mrb[85].mxu1 }
0x1925   :  { %v3208_v11 = vpop.f32.mrb[86].mxu1 }
0x1926   :  { %v4891_v19 = vpop.f32.mrb[87].mxu1 }
0x192b   :  { %v3341_v17 = vpop.f32.mrb[88].mxu1 }
0x192c   :  { %v3342_v53 = vadd.f32 %v6226_v37, %v3341_v17  ;;  %v4902_v21 = vpop.f32.mrb[89].mxu1 }
0x192d   :  { %v3344_v12 = vpop.f32.mrb[90].mxu1 }
0x192e   :  { %v4903_v60 = vpop.f32.mrb[91].mxu1  ;;  %v3350_v24 = vsel %vm361_vm2, %v3342_v53, -inf }
0x192f   :  { %3351 = vmax.xlane.f32.xlu1 %v3350_v24 }
0x1940   :  { %5003 = vrot.lane.b32.xlu1 %v5002_v16, %s6670_s6 }
0x1995   :  { %v3349_v1 = vpop.xlane.xlu0 %3348 }
0x1996   :  { %v3353_v44 = vsub.f32 %v3299_v38, %v3349_v1 }
0x1998   :  { %v3355_v15 = vmul.f32 1.442695, %v3353_v44 }
0x199a   :  { %5225 = vpow2.f32 %v3355_v15 }
0x19a4   :  { %v5226_v26 = vpop.eup %5225 }
0x19a5   :  { %v3359_v30 = vsel %vm361_vm2, %v5226_v26, 0.0 }
0x19a6   :  { %3360 = vadd.xlane.f32.xlu0 %v3359_v30 }
0x19bc   :  { %v3352_v37 = vpop.xlane.xlu1 %3351 }
0x19bd   :  { %v3354_v2 = vsub.f32 %v3342_v53, %v3352_v37 }
0x19bf   :  { %v3357_v20 = vmul.f32 1.442695, %v3354_v2 }
0x19c0   :  { %v5004_v38 = vpop.permute.xlu1 %5003 }
0x19c1   :  { %5227 = vpow2.f32 %v3357_v20  ;;  %v5006_v56 = vunpack.i.h.bf16 %v5004_v38  ;;  %v5005_v57 = vunpack.i.l.bf16 %v5004_v38 }
0x19c3   :  { %v3482_v6 = vsel %vm474_vm3, %v6287_v36, %v5006_v56  ;;  %v3481_v11 = vsel %vm474_vm3, %v6280_v61, %v5005_v57  ;;  %v5122_v56 = vld [vmem:[%s6655_s14 + $0x80] sm:$0xff]   ;;  %v5123_v57 = vld [vmem:[%s6655_s14 + $0xc8] sm:$0xff]  }
0x19cb   :  { %v5228_v45 = vpop.eup %5227 }
0x19cc   :  { %v3362_v58 = vsel %vm361_vm2, %v5228_v45, 0.0 }
0x19cd   :  { %3363 = vadd.xlane.f32.xlu0 %v3362_v58 }
0x19e3   :  { %5008 = vrot.lane.b32.xlu0 %v5007_v48, %s6671_s21 }
0x1a33   :  { %v3361_v27 = vpop.xlane.xlu0 %3360 }
0x1a34   :  { %5229 = vrcp.f32 %v3361_v27 }
0x1a3e   :  { %v5230_v5 = vpop.eup %5229 }
0x1a3f   :  { %v3367_v16 = vmul.f32 %v5230_v5, %v5226_v26 }
0x1a41   :  { %v3369_v25 = vpack.c.bf16 %v3367_v16, %v3367_v16 }
0x1a43   :  { %4907 = vmatmul.mubr.msk.bf16.vlgmr.msra.gmra.mrb[72].mxu0 %vm361_vm2, %v3369_v25  ;;  %v5097_v25 = vld [vmem:[%s6652_s12 + $0x40] ss:$8 sps:$4 sm:$0xff]  }
0x1a44   :  { %4924 = vmatprep.mubr.msk.bf16.mxu0 %vm5264_vm1, %v5263_v8  ;;  %4917 = vmatpush3.bf16.msra.mxu0 %v5091_v49  ;;  %v5111_v49 = vld [vmem:[%s6652_s12 + $0x64] ss:$8 sps:$4 sm:$0xff]  }
0x1a45   :  { %4918 = vmatprep.subr.bf16.mxu0 %v5263_v8 }
0x1a48   :  { %4919 = vmatpush3.bf16.msra.mxu0 %v5093_v41  ;;  %v5109_v41 = vld [vmem:[%s6652_s12 + $0x60] ss:$8 sps:$4 sm:$0xff]  }
0x1a49   :  { %4920 = vmatprep.subr.bf16.mxu0 %v5263_v8 }
0x1a4c   :  { %4921 = vmatpush3.bf16.msra.mxu0 %v5095_v31  ;;  %v5117_v31 = vld [vmem:[%s6652_s12 + $0x74] ss:$8 sps:$4 sm:$0xff]  }
0x1a4d   :  { %4922 = vmatprep.subr.bf16.mxu0 %v5263_v8 }
0x1a50   :  { %4923 = vmatpush3.bf16.msra.mxu0 %v5096_v43 }
0x1a5a   :  { %v3364_v39 = vpop.xlane.xlu0 %3363 }
0x1a5b   :  { %5231 = vrcp.f32 %v3364_v39  ;;  %v5100_v39 = vld [vmem:[%s6653_s13 + $0x40] ss:$8 sps:$4 sm:$0xff]  }
0x1a5e   :  { %v5009_v7 = vpop.permute.xlu0 %5008 }
0x1a5f   :  { %v5011_v13 = vunpack.i.h.bf16 %v5009_v7  ;;  %v5010_v62 = vunpack.i.l.bf16 %v5009_v7  ;;  %v5121_v7 = vld [vmem:[%s6655_s14 + $0xc0] sm:$0xff]  }
0x1a61   :  { %v3483_v53 = vsel %vm1514_vm5, %v3481_v11, %v5010_v62  ;;  %v3484_v21 = vsel %vm1514_vm5, %v3482_v6, %v5011_v13  ;;  %v5124_v13 = vld [vmem:[%s6655_s14 + $0x88] sm:$0xff]   ;;  %v5125_v62 = vld [vmem:[%s6655_s14 + $0xd0] sm:$0xff]   ;;  %v5127_v6 = vld [vmem:[%s6655_s14 + $0xd8] sm:$0xff]  }
0x1a62   :  { %v5128_v11 = vld [vmem:[%s6655_s14 + $0x98] sm:$0xff]  }
0x1a65   :  { %v5232_v28 = vpop.eup %5231 }
0x1a66   :  { %v3368_v47 = vmul.f32 %v5232_v28, %v5228_v45  ;;  %v5105_v28 = vld [vmem:[%s6652_s12 + $0x54] ss:$8 sps:$4 sm:$0xff]  }
0x1a68   :  { %v3370_v35 = vpack.c.bf16 %v3368_v47, %v3368_v47  ;;  %v5108_v47 = vld [vmem:[%s6653_s13 + $0x54] ss:$8 sps:$4 sm:$0xff]  }
0x1a6a   :  { %4913 = vmatmul.mubr.msk.bf16.vlgmr.msra.gmra.mrb[92].mxu1 %vm361_vm2, %v3370_v35  ;;  %v5103_v35 = vld [vmem:[%s6652_s12 + $0x50] ss:$8 sps:$4 sm:$0xff]  }
0x1a6b   :  { %4936 = vmatprep.mubr.msk.bf16.mxu1 %vm5264_vm1, %v5263_v8  ;;  %4929 = vmatpush3.bf16.msra.mxu1 %v5089_v59  ;;  %v5106_v59 = vld [vmem:[%s6653_s13 + $0x50] ss:$8 sps:$4 sm:$0xff]  }
0x1a6c   :  { %4930 = vmatprep.subr.bf16.mxu1 %v5263_v8 }
0x1a6f   :  { %4931 = vmatpush3.bf16.msra.mxu1 %v5090_v51  ;;  %v5114_v51 = vld [vmem:[%s6653_s13 + $0x64] ss:$8 sps:$4 sm:$0xff]  }
0x1a70   :  { %4932 = vmatprep.subr.bf16.mxu1 %v5263_v8 }
0x1a73   :  { %4933 = vmatpush3.bf16.msra.mxu1 %v5092_v3  ;;  %v5112_v3 = vld [vmem:[%s6653_s13 + $0x60] ss:$8 sps:$4 sm:$0xff]  }
0x1a74   :  { %4934 = vmatprep.subr.bf16.mxu1 %v5263_v8 }
0x1a77   :  { %4935 = vmatpush3.bf16.msra.mxu1 %v5094_v50  ;;  %v5120_v50 = vld [vmem:[%s6653_s13 + $0x74] ss:$8 sps:$4 sm:$0xff]  }
0x1a7a   :  { %4937 = vmatmul.mubr.msk.bf16.vlgmr.msra.gmra.mrb[96].mxu1 %vm70_vm0, %v5262_v14  ;;  %v5115_v14 = vld [vmem:[%s6652_s12 + $0x70] ss:$8 sps:$4 sm:$0xff]  }
0x1a7b   :  { %3878 = vmatprep.mubr.bf16.mxu1 %v5277_v46 }
0x1b16   :  { %v3408_v63 = vpop.f32.mrb[72].mxu0 }
0x1b17   :  { %v4908_v29 = vpop.f32.mrb[73].mxu0 }
0x1b18   :  { %v3411_v33 = vpop.f32.mrb[74].mxu0 }
0x1b19   :  { %v4909_v0 = vpop.f32.mrb[75].mxu0 }
0x1b3d   :  { %v3451_v55 = vpop.f32.mrb[92].mxu1 }
0x1b3e   :  { %v5012_v40 = vpack.i.bf16 %v3451_v55, %v3408_v63  ;;  %v4914_v9 = vpop.f32.mrb[93].mxu1  ;;  %v5118_v63 = vld [vmem:[%s6653_s13 + $0x70] ss:$8 sps:$4 sm:$0xff]  }
0x1b3f   :  { %v3454_v32 = vpop.f32.mrb[94].mxu1 }
0x1b40   :  { %5013 = vrot.lane.b32.xlu1 %v5012_v40, %s6672_s30  ;;  %v4915_v22 = vpop.f32.mrb[95].mxu1 }
0x1b4d   :  { %v3632_v52 = vpop.f32.mrb[96].mxu1 }
0x1b4e   :  { %v4938_v23 = vpop.f32.mrb[97].mxu1  ;;  %v3647_v36 = vrot.slane %v3632_v52, %v5925_v34  ;;  %v4368_v52 = vld [vmem:[%s6654_s11 + $0x1] ss:$0 sm:$0xff] }
0x1b4f   :  { %v3635_v4 = vpop.f32.mrb[98].mxu1 }
0x1b50   :  { %v4939_v18 = vpop.f32.mrb[99].mxu1  ;;  %v3648_v1 = vcombine.high %v3647_v36, %v3647_v36  ;;  %v3655_v61 = vrot.slane %v3647_v36, %v5925_v34  ;;  %v5136_v36 = vld [vmem:[%s6655_s14 + $0xb8] sm:$0xff]  }
0x1b52   :  { %v3662_v44 = vrot.slane %v3648_v1, %v5925_v34  ;;  %v3666_v15 = vrot.slane %v3655_v61, %v5929_v54 }
0x1b54   :  { %v3670_v2 = vrot.slane %v3662_v44, %v5929_v54  ;;  %v5099_v54 = vld [vmem:[%s6652_s12 + $0x44] ss:$8 sps:$4 sm:$0xff]  }
0x1b55   :  { %3754 = vmatprep.subr.bf16.mxu0 %v5099_v54 }
0x1bb2   :  { %v5014_v48 = vpop.permute.xlu1 %5013 }
0x1bb3   :  { %v5016_v19 = vunpack.i.h.bf16 %v5014_v48  ;;  %v5015_v17 = vunpack.i.l.bf16 %v5014_v48  ;;  %v5126_v48 = vld [vmem:[%s6655_s14 + $0x90] sm:$0xff]  }
0x1bb5   :  { %v3486_v12 = vsel %vm1517_vm6, %v3484_v21, %v5016_v19  ;;  %v3485_v60 = vsel %vm1517_vm6, %v3483_v53, %v5015_v17  ;;  %v5129_v19 = vld [vmem:[%s6655_s14 + $0xe0] sm:$0xff]   ;;  %v5131_v53 = vld [vmem:[%s6655_s14 + $0xe8] sm:$0xff]  }
0x1bb6   :  { %v3487_v24 = vpack.c.bf16 %v3486_v12, %v3485_v60  ;;  %v5130_v17 = vld [vmem:[%s6655_s14 + $0xa0] sm:$0xff]   ;;  %v5132_v21 = vld [vmem:[%s6655_s14 + $0xa8] sm:$0xff]   ;;  %v5133_v12 = vld [vmem:[%s6655_s14 + $0xf0] sm:$0xff]  }
0x1bb7   :  { %v5134_v60 = vld [vmem:[%s6655_s14 + $0xb0] sm:$0xff]  }
0x1bb8   :  { %4925 = vmatmul.mubr.msk.bf16.vlgmr.msra.gmra.mrb[76].mxu0 %vm70_vm0, %v3487_v24  ;;  %v5135_v24 = vld [vmem:[%s6655_s14 + $0xf8] sm:$0xff]  }
0x1bb9   :  { %3786 = vmatprep.mubr.bf16.mxu0 %v5277_v46  ;;  %3755 = vmatpush1.bf16.msra.mxu0 %v5097_v25 }
0x1bba   :  { %3756 = vmatprep.subr.bf16.mxu0 %v5105_v28 }
0x1bbd   :  { %3757 = vmatpush1.bf16.msra.mxu0 %v5103_v35 }
0x1bbe   :  { %3758 = vmatprep.subr.bf16.mxu0 %v5111_v49 }
0x1bc1   :  { %3759 = vmatpush1.bf16.msra.mxu0 %v5109_v41 }
0x1bc2   :  { %3760 = vmatprep.subr.bf16.mxu0 %v5117_v31 }
0x1bc5   :  { %3761 = vmatpush1.bf16.msra.mxu0 %v5115_v14 }
0x1bc6   :  { %4601 = vmatprep.subr.bf16.mxu0 %v5121_v7 }
0x1c8b   :  { %v3558_v26 = vpop.f32.mrb[76].mxu0 }
0x1c8c   :  { %v3638_v30 = vadd.f32 %v3558_v26, %v6058_v42  ;;  %v4926_v37 = vpop.f32.mrb[77].mxu0 }
0x1c8d   :  { %v3561_v20 = vpop.f32.mrb[78].mxu0 }
0x1c8e   :  { %v6495_v45 = vadd.f32 %v3666_v15, %v3638_v30  ;;  %v3639_v46 = vadd.f32 %v3561_v20, %v6061_v10  ;;  %v4927_v58 = vpop.f32.mrb[79].mxu0  ;;  %v5102_v10 = vld [vmem:[%s6653_s13 + $0x44] ss:$8 sps:$4 sm:$0xff]  }
0x1c8f   :  { %3846 = vmatprep.subr.bf16.mxu1 %v5102_v10 }
0x1c90   :  { %v6498_v27 = vadd.f32 %v3670_v2, %v3639_v46  ;;  %v3677_v5 = vmul.f32 %v6495_v45, %v6495_v45  ;;  %3847 = vmatpush1.bf16.msra.mxu1 %v5100_v39 }
0x1c91   :  { %3848 = vmatprep.subr.bf16.mxu1 %v5108_v47 }
0x1c92   :  { %v3679_v34 = vsel %vm70_vm0, %v3677_v5, 0.0  ;;  %v3678_v16 = vmul.f32 %v6498_v27, %v6498_v27 }
0x1c93   :  { %3680 = vadd.xlane.f32.xlu1 %v3679_v34 }
0x1c94   :  { %v3682_v42 = vsel %vm70_vm0, %v3678_v16, 0.0  ;;  %3849 = vmatpush1.bf16.msra.mxu1 %v5106_v59 }
0x1c95   :  { %3683 = vadd.xlane.f32.xlu0 %v3682_v42  ;;  %3850 = vmatprep.subr.bf16.mxu1 %v5114_v51 }
0x1c98   :  { %3851 = vmatpush1.bf16.msra.mxu1 %v5112_v3 }
0x1c99   :  { %3852 = vmatprep.subr.bf16.mxu1 %v5120_v50 }
0x1c9c   :  { %3853 = vmatpush1.bf16.msra.mxu1 %v5118_v63 }
0x1c9d   :  { %4940 = vmatprep.subr.bf16.mxu1 %v5263_v8 }
0x1d20   :  { %v3681_v29 = vpop.xlane.xlu1 %3680 }
0x1d21   :  { %v3685_v33 = vmul.f32 0.015625, %v3681_v29 }
0x1d22   :  { %v3684_v0 = vpop.xlane.xlu0 %3683 }
0x1d23   :  { %v3687_v43 = vadd.f32 1e-05, %v3685_v33  ;;  %v3686_v55 = vmul.f32 0.015625, %v3684_v0 }
0x1d25   :  { %5233 = vrsqrt.f32 %v3687_v43  ;;  %v3688_v40 = vadd.f32 1e-05, %v3686_v55 }
0x1d27   :  { %5235 = vrsqrt.f32 %v3688_v40 }
0x1d2f   :  { %v5234_v9 = vpop.eup %5233 }
0x1d30   :  { %v3691_v32 = vmul.f32 %v5234_v9, %v6495_v45 }
0x1d31   :  { %v5236_v22 = vpop.eup %5235 }
0x1d32   :  { %v3692_v23 = vmul.f32 %v5236_v22, %v6498_v27  ;;  %v3699_v4 = vmul.f32 %v4368_v52, %v3691_v32 }
0x1d34   :  { %v3700_v18 = vmul.f32 %v4368_v52, %v3692_v23 }
0x1d36   :  { %v3701_v38 = vpack.c.bf16 %v3700_v18, %v3699_v4 }
0x1d38   :  { %4385 = vmatmul.mubr.msk.bf16.vlgmr.msra.gmra.mrb[80].mxu0 %vm70_vm0, %v3701_v38  ;;  %4402 = vmatmul.mubr.msk.bf16.vlgmr.msra.gmra.mrb[100].mxu1 %vm70_vm0, %v3701_v38 }
0x1d39   :  { %4948 = vmatprep.mubr.msk.bf16.mxu1 %vm5264_vm1, %v5263_v8  ;;  %4602 = vmatpush3.bf16.msra.mxu0 %v5122_v56  ;;  %v5137_v56 = vld [vmem:[%s6656_s16] sm:$0xff]  }
0x1d3a   :  { %4603 = vmatprep.subr.bf16.mxu0 %v5123_v57  ;;  %4941 = vmatpush3.bf16.msra.mxu1 %v5137_v56  ;;  %v5140_v57 = vld [vmem:[%s6656_s16 + $0x18] sm:$0xff]  }
0x1d3b   :  { %4942 = vmatprep.subr.bf16.mxu1 %v5263_v8 }
0x1d3d   :  { %4604 = vmatpush3.bf16.msra.mxu0 %v5124_v13 }
0x1d3e   :  { %4605 = vmatprep.subr.bf16.mxu0 %v5125_v62 }
0x1d41   :  { %4606 = vmatpush3.bf16.msra.mxu0 %v5126_v48 }
0x1d42   :  { %4607 = vmatprep.subr.bf16.mxu0 %v5127_v6 }
0x1d45   :  { %4608 = vmatpush3.bf16.msra.mxu0 %v5128_v11 }
0x1d46   :  { %4609 = vmatprep.subr.bf16.mxu0 %v5129_v19 }
0x1d49   :  { %4610 = vmatpush3.bf16.msra.mxu0 %v5130_v17 }
0x1d4a   :  { %4611 = vmatprep.subr.bf16.mxu0 %v5131_v53 }
0x1d4d   :  { %4612 = vmatpush3.bf16.msra.mxu0 %v5132_v21 }
0x1d4e   :  { %4613 = vmatprep.subr.bf16.mxu0 %v5133_v12  ;;  %v4455_v12 = vld [vmem:[%s6657_s15] ss:$0 sm:$0xff] }
0x1d51   :  { %4614 = vmatpush3.bf16.msra.mxu0 %v5134_v60 }
0x1d52   :  { %4615 = vmatprep.subr.bf16.mxu0 %v5135_v24 }
0x1d55   :  { %4616 = vmatpush3.bf16.msra.mxu0 %v5136_v36 }
0x1e0b   :  { %v3788_v1 = vpop.f32.mrb[80].mxu0  ;;  %v3880_v61 = vpop.f32.mrb[100].mxu1 }
0x1e0c   :  { %v4403_v44 = vmul.f32 -1.442695, %v3788_v1  ;;  %v3790_v15 = vpop.f32.mrb[81].mxu0  ;;  %v3882_v26 = vpop.f32.mrb[101].mxu1 }
0x1e0d   :  { %v4404_v30 = vmul.f32 -1.442695, %v3790_v15  ;;  %v3792_v37 = vpop.f32.mrb[82].mxu0  ;;  %v3884_v2 = vpop.f32.mrb[102].mxu1 }
0x1e0e   :  { %5237 = vpow2.f32 %v4403_v44  ;;  %v4405_v20 = vmul.f32 -1.442695, %v3792_v37  ;;  %v3794_v46 = vpop.f32.mrb[83].mxu0  ;;  %v3886_v58 = vpop.f32.mrb[103].mxu1 }
0x1e0f   :  { %5239 = vpow2.f32 %v4404_v30  ;;  %v4406_v5 = vmul.f32 -1.442695, %v3794_v46 }
0x1e10   :  { %5241 = vpow2.f32 %v4405_v20 }
0x1e11   :  { %5243 = vpow2.f32 %v4406_v5 }
0x1e18   :  { %v5238_v34 = vpop.eup %5237 }
0x1e19   :  { %v5240_v16 = vpop.eup %5239  ;;  %v3901_v42 = vadd.f32 1.0, %v5238_v34 }
0x1e1a   :  { %v5242_v54 = vpop.eup %5241  ;;  %v3902_v10 = vadd.f32 1.0, %v5240_v16 }
0x1e1b   :  { %v5244_v25 = vpop.eup %5243  ;;  %5245 = vrcp.f32 %v3901_v42  ;;  %v3903_v39 = vadd.f32 1.0, %v5242_v54 }
0x1e1c   :  { %5247 = vrcp.f32 %v3902_v10  ;;  %v3904_v28 = vadd.f32 1.0, %v5244_v25 }
0x1e1d   :  { %5249 = vrcp.f32 %v3903_v39 }
0x1e1e   :  { %5251 = vrcp.f32 %v3904_v28 }
0x1e25   :  { %v5246_v47 = vpop.eup %5245 }
0x1e26   :  { %v5248_v35 = vpop.eup %5247  ;;  %v3913_v59 = vmul.f32 %v5246_v47, %v3788_v1 }
0x1e27   :  { %v5250_v49 = vpop.eup %5249  ;;  %v3914_v51 = vmul.f32 %v5248_v35, %v3790_v15 }
0x1e28   :  { %v5252_v41 = vpop.eup %5251  ;;  %v3917_v3 = vmul.f32 %v3913_v59, %v3880_v61  ;;  %v3915_v31 = vmul.f32 %v5250_v49, %v3792_v37 }
0x1e29   :  { %v3918_v50 = vmul.f32 %v3914_v51, %v3882_v26  ;;  %v3916_v14 = vmul.f32 %v5252_v41, %v3794_v46 }
0x1e2a   :  { %v3919_v63 = vmul.f32 %v3915_v31, %v3884_v2 }
0x1e2b   :  { %v3920_v29 = vmul.f32 %v3916_v14, %v3886_v58 }
0x1e2c   :  { %v3921_v33 = vpack.c.bf16 %v3919_v63, %v3917_v3 }
0x1e2d   :  { %v3922_v0 = vpack.c.bf16 %v3920_v29, %v3918_v50 }
0x1e2f   :  { %4084 = vmatprep.mubr.bf16.mxu0 %v3922_v0 }
0x1e30   :  { %4085 = vmatmul.mubr.bf16.vlgmr.msra.gmra.mrb[84].mxu0 %v3921_v33 }
0x1f03   :  { %v4617_v43 = vpop.f32.mrb[84].mxu0 }
0x1f04   :  { %v4618_v55 = vpop.f32.mrb[85].mxu0 }
0x1f05   :  { %v4619_v40 = vadd.f32 %v4618_v55, %v4617_v43  ;;  %v4620_v9 = vpop.f32.mrb[86].mxu0 }
0x1f06   :  { %v4621_v32 = vpop.f32.mrb[87].mxu0 }
0x1f07   :  { %v4093_v22 = vadd.f32 %v4619_v40, %v6495_v45  ;;  %v4622_v52 = vadd.f32 %v4621_v32, %v4620_v9  ;;  %v5138_v45 = vld [vmem:[%s6656_s16 + $0x8] sm:$0xff]  }
0x1f08   :  { %4943 = vmatpush3.bf16.msra.mxu1 %v5138_v45 }
0x1f09   :  { %v4094_v23 = vadd.f32 %v4622_v52, %v6498_v27  ;;  %v4096_v4 = vmul.f32 %v4093_v22, %v4093_v22  ;;  %v5139_v27 = vld [vmem:[%s6656_s16 + $0x10] sm:$0xff]   ;;  %4944 = vmatprep.subr.bf16.mxu1 %v5263_v8 }
0x1f0b   :  { %v4098_v18 = vsel %vm70_vm0, %v4096_v4, 0.0  ;;  %v4097_v38 = vmul.f32 %v4094_v23, %v4094_v23 }
0x1f0c   :  { %4099 = vadd.xlane.f32.xlu0 %v4098_v18  ;;  %4945 = vmatpush3.bf16.msra.mxu1 %v5139_v27 }
0x1f0d   :  { %v4101_v7 = vsel %vm70_vm0, %v4097_v38, 0.0  ;;  %4946 = vmatprep.subr.bf16.mxu1 %v5263_v8 }
0x1f0e   :  { %4102 = vadd.xlane.f32.xlu1 %v4101_v7 }
0x1f10   :  { %4947 = vmatpush3.bf16.msra.mxu1 %v5140_v57 }
0x1f99   :  { %v4100_v13 = vpop.xlane.xlu0 %4099 }
0x1f9a   :  { %v4104_v62 = vmul.f32 0.015625, %v4100_v13 }
0x1f9b   :  { %v4103_v48 = vpop.xlane.xlu1 %4102 }
0x1f9c   :  { %v4106_v6 = vadd.f32 1e-05, %v4104_v62  ;;  %v4105_v11 = vmul.f32 0.015625, %v4103_v48 }
0x1f9e   :  { %5253 = vrsqrt.f32 %v4106_v6  ;;  %v4107_v19 = vadd.f32 1e-05, %v4105_v11 }
0x1fa0   :  { %5255 = vrsqrt.f32 %v4107_v19 }
0x1fa8   :  { %v5254_v17 = vpop.eup %5253 }
0x1fa9   :  { %v4110_v53 = vmul.f32 %v5254_v17, %v4093_v22 }
0x1faa   :  { %v5256_v21 = vpop.eup %5255 }
0x1fab   :  { %v4111_v60 = vmul.f32 %v5256_v21, %v4094_v23  ;;  %v4118_v24 = vmul.f32 %v4455_v12, %v4110_v53 }
0x1fad   :  { %v4119_v36 = vmul.f32 %v4455_v12, %v4111_v60 }
0x1faf   :  { %v4120_v8 = vpack.c.bf16 %v4119_v36, %v4118_v24 }
0x1fb1   :  { %4949 = vmatmul.mubr.msk.bf16.vlgmr.msra.gmra.mrb[104].mxu1 %vm70_vm0, %v4120_v8 }
0x2084   :  { %v4190_v1 = vpop.f32.mrb[104].mxu1 }
0x2085   :  { %4197 = vst [vmem:[%s6658_s17] sm:$0xff] %v4190_v1  ;;  %v4950_v61 = vpop.f32.mrb[105].mxu1 }
0x2086   :  { %v4193_v44 = vpop.f32.mrb[106].mxu1 }
0x2087   :  { %4198 = vst [vmem:[%s6658_s17 + $0x8] sm:$0xff] %v4193_v44  ;;  %v4951_v15 = vpop.f32.mrb[107].mxu1 }

</bundles_post_ra>
